<compile_context>
chip_gen: v6e
topology: v6e:2x2x1
jax: 0.10.0
libtpu: 0.0.40
codegen_flags: <defaults>
</compile_context>

<pallas_src>
import math
import functools

import jax
import jax.numpy as jnp
import numpy as np
from jax.experimental import pallas as pl
from jax.experimental.pallas import tpu as pltpu

BN_EPS = 1e-5                      # torch.nn.BatchNorm2d default
_INV_SQRT2 = 1.0 / math.sqrt(2.0)
_DOT_PREC = jax.lax.Precision.HIGHEST


def _round_up(a, b):
    return ((a + b - 1) // b) * b


def _pad2(rows, cols, itemsize):
    """Rough VMEM footprint of a 2D tile after (8,128) layout padding."""
    return _round_up(max(rows, 1), 8) * _round_up(max(cols, 1), 128) * itemsize


def _gelu_exact(v):
    # exact (erf) GELU -- matches torch.nn.GELU() default
    return 0.5 * v * (1.0 + jax.lax.erf(v * _INV_SQRT2))


def _vmem_capacity_bytes():
    # Chip-aware: 128 MiB on v5e/v6e, 64 MiB per TensorCore on v7x.
    try:
        cap = int(getattr(pltpu.get_tpu_info(), "vmem_capacity_bytes", 0))
        if cap > 0:
            return cap
    except Exception:
        pass
    return 64 * 1024 * 1024        # conservative (v7x-sized) fallback


# -----------------------------------------------------------------------------
# Fused 2-layer kernel.  grid = (phase, m_tile), both axes sequential.
# -----------------------------------------------------------------------------
def _fc2_fused_kernel(x_ref, w1_ref, w2_ref, g1_ref, be1_ref, g2_ref, be2_ref,
                      o_ref,
                      h_ref, st1, st2, sc1, sc2,
                      *, tm, m_total, n_m, eps, act1_gelu, act2_gelu,
                      keep_h, h_dtype):
    p = pl.program_id(0)                       # phase
    m = pl.program_id(1)                       # M-tile index
    needs_mask = (n_m * tm != m_total)         # static Python bool
    cnt0 = float(min(tm, m_total))             # valid rows in tile 0

    def valid_rows():
        rid = jax.lax.broadcasted_iota(jnp.int32, (tm, 1), 0) + m * tm
        return rid < m_total

    def mask_rows(v):
        return jnp.where(valid_rows(), v, 0.0) if needs_mask else v

    def accum_stats(st_ref, y):
        # Pilot-shifted single-pass stats (avoids E[y^2]-E[y]^2 cancellation):
        #   st[0] = pilot (per-channel mean of tile 0)
        #   st[1] = sum(y - pilot), st[2] = sum((y - pilot)^2) over valid rows.
        @pl.when(m == 0)
        def _():
            st_ref[0:1, :] = (jnp.sum(mask_rows(y), axis=0, keepdims=True)
                              * (1.0 / cnt0))
            st_ref[1:3, :] = jnp.zeros_like(st_ref[1:3, :])
        d = mask_rows(y - st_ref[0:1, :])
        st_ref[1:2, :] += jnp.sum(d, axis=0, keepdims=True)
        st_ref[2:3, :] += jnp.sum(d * d, axis=0, keepdims=True)

    def fold_bn(st_ref, g_ref, be_ref, sc_ref):
        # Training-mode BatchNorm2d: biased batch mean/var over all M rows,
        # folded into per-channel (scale, shift).
        inv_m = 1.0 / float(m_total)
        dmean = st_ref[1:2, :] * inv_m
        mean = st_ref[0:1, :] + dmean
        var = jnp.maximum(st_ref[2:3, :] * inv_m - dmean * dmean, 0.0)
        scale = g_ref[...].astype(jnp.float32) * jax.lax.rsqrt(var + eps)
        sc_ref[0:1, :] = scale
        sc_ref[1:2, :] = be_ref[...].astype(jnp.float32) - mean * scale

    def layer1_out():
        # In-kernel cast: x streamed in its native dtype (bf16 or f32).
        xv = mask_rows(x_ref[...].astype(jnp.float32))
        return jnp.dot(xv, w1_ref[...].astype(jnp.float32),
                       preferred_element_type=jnp.float32, precision=_DOT_PREC)

    def act1(y1):
        a = y1 * sc1[0:1, :] + sc1[1:2, :]
        return _gelu_exact(a) if act1_gelu else a

    def y2_of(a1):
        return jnp.dot(a1, w2_ref[...].astype(jnp.float32),
                       preferred_element_type=jnp.float32, precision=_DOT_PREC)

    # ---- phase 0: y1 = x @ W1, keep in VMEM (or drop if re-streaming) --------
    @pl.when(p == 0)
    def _():
        y1 = layer1_out()
        if keep_h:
            y1s = y1.astype(h_dtype)
            h_ref[m] = y1s
            y1 = y1s.astype(jnp.float32)   # stats consistent with stored value
        accum_stats(st1, y1)

    # ---- phase 1: bn1 + GELU, y2 = a1 @ W2 (statistics only) -----------------
    @pl.when(p == 1)
    def _():
        @pl.when(m == 0)
        def _():
            fold_bn(st1, g1_ref, be1_ref, sc1)
        y1 = h_ref[m].astype(jnp.float32) if keep_h else layer1_out()
        a1 = act1(y1)
        if keep_h:
            a1s = a1.astype(h_dtype)
            h_ref[m] = a1s                 # overwrite y1 in place with a1
            a1 = a1s.astype(jnp.float32)
        accum_stats(st2, y2_of(a1))

    # ---- phase 2: recompute y2, bn2 (+act2), the only HBM write --------------
    @pl.when(p == 2)
    def _():
        @pl.when(m == 0)
        def _():
            fold_bn(st2, g2_ref, be2_ref, sc2)
        if keep_h:
            a1 = h_ref[m].astype(jnp.float32)
        else:
            a1 = act1(layer1_out())        # re-stream x, recompute layer 1
        out = y2_of(a1) * sc2[0:1, :] + sc2[1:2, :]
        if act2_gelu:
            out = _gelu_exact(out)
        o_ref[...] = out.astype(o_ref.dtype)


# -----------------------------------------------------------------------------
# Wrapper: flattened 2-layer FC (Conv1x1 no-bias + training BN + act) forward.
# -----------------------------------------------------------------------------
def fc2_fused(x2d, w1, gamma1, beta1, w2, gamma2, beta2, *,
              act1_gelu=True, act2_gelu=False, tm=4096,
              h_dtype=jnp.bfloat16, out_dtype=None, keep_intermediate=None):
    M, C = x2d.shape
    Cw, N1 = w1.shape
    N1w, N2 = w2.shape
    assert Cw == C and N1w == N1
    out_dtype = x2d.dtype if out_dtype is None else out_dtype

    # M-tile: big tiles so each grid step moves >= ~0.5 MiB of HBM data;
    # clipped to M (rounded to the (8,*) sublane granule) for small problems.
    tm = max(8, min(int(tm), _round_up(M, 8)))
    tm = _round_up(tm, 8)
    n_m = pl.cdiv(M, tm)

    # ---- chip-aware VMEM budgeting -------------------------------------------
    budget = (_vmem_capacity_bytes() * 3) // 4      # 48 MiB v7x, 96 MiB v5e/v6e
    hsz = np.dtype(h_dtype).itemsize
    # NOTE: W1/W2/gamma/beta have constant block indices and could be
    # single-buffered with pipeline_mode=pl.Buffered(1); counted at 2 buffers.
    fixed = (2 * _pad2(tm, C, np.dtype(x2d.dtype).itemsize)       # x tile x2
             + 2 * _pad2(tm, N2, np.dtype(out_dtype).itemsize)    # out tile x2
             + 2 * (_pad2(C, N1, 4) + _pad2(N1, N2, 4))           # W1, W2
             + 4 * (_pad2(1, N1, 4) + _pad2(1, N2, 4))            # gamma/beta
             + _pad2(3, N1, 4) + _pad2(3, N2, 4)                  # BN stats
             + _pad2(2, N1, 4) + _pad2(2, N2, 4))                 # scale/shift
    h_full = n_m * _pad2(tm, N1, hsz)

    if keep_intermediate is None:
        keep_h = (fixed + h_full) <= budget          # auto low-VMEM fallback
    else:
        keep_h = bool(keep_intermediate)
    n_m_h = n_m if keep_h else 1                     # dummy 1-tile scratch
    est = fixed + (h_full if keep_h else _pad2(tm, N1, hsz))
    # TODO(synk): if even the fixed tiles/weights exceed VMEM (huge C/d), a
    # K/N-tiled variant with an HBM-spilled intermediate would be needed.
    assert est <= budget, f"VMEM estimate {est} exceeds budget {budget}"
    vmem_limit = int(min(max(2 * est, 32 * 1024 * 1024), budget))

    g1 = gamma1.reshape(1, N1)
    b1 = beta1.reshape(1, N1)
    g2 = gamma2.reshape(1, N2)
    b2 = beta2.reshape(1, N2)

    kernel = functools.partial(
        _fc2_fused_kernel, tm=tm, m_total=M, n_m=n_m, eps=BN_EPS,
        act1_gelu=act1_gelu, act2_gelu=act2_gelu, keep_h=keep_h, h_dtype=h_dtype)

    if keep_h:
        # keep the last-fetched x block resident for p >= 1 (no re-DMA).
        x_map = lambda p, m: (jnp.where(p == 0, m, n_m - 1), 0)
    else:
        x_map = lambda p, m: (m, 0)                  # re-stream x every phase

    out = pl.pallas_call(
        kernel,
        out_shape=jax.ShapeDtypeStruct((M, N2), out_dtype),
        grid_spec=pltpu.PrefetchScalarGridSpec(
            num_scalar_prefetch=0,
            grid=(3, n_m),
            in_specs=[
                pl.BlockSpec((tm, C), x_map),
                pl.BlockSpec((C, N1), lambda p, m: (0, 0)),    # W1 (resident)
                pl.BlockSpec((N1, N2), lambda p, m: (0, 0)),   # W2 (resident)
                pl.BlockSpec((1, N1), lambda p, m: (0, 0)),    # gamma1
                pl.BlockSpec((1, N1), lambda p, m: (0, 0)),    # beta1
                pl.BlockSpec((1, N2), lambda p, m: (0, 0)),    # gamma2
                pl.BlockSpec((1, N2), lambda p, m: (0, 0)),    # beta2
            ],
            # GUARD: the output block index MUST stay constant (0) through
            # phases 0-1 so no stale buffer is written back before phase 2
            # writes real data; only phase 2 sweeps m -> single HBM write.
            # TODO(synk): if N2 < 128 and phase-2 stores ever dominate, a
            # lane-dense (fold rows into lanes / pad N2 to 128) output layout
            # would remove the masked partial stores.
            out_specs=pl.BlockSpec((tm, N2),
                                   lambda p, m: (jnp.where(p == 2, m, 0), 0)),
            scratch_shapes=[
                pltpu.VMEM((n_m_h, tm, N1), h_dtype),   # y1 -> a1 intermediate
                pltpu.VMEM((3, N1), jnp.float32),       # BN1 pilot/sum/sumsq
                pltpu.VMEM((3, N2), jnp.float32),       # BN2 pilot/sum/sumsq
                pltpu.VMEM((2, N1), jnp.float32),       # BN1 folded scale/shift
                pltpu.VMEM((2, N2), jnp.float32),       # BN2 folded scale/shift
            ],
        ),
        compiler_params=pltpu.CompilerParams(
            # Phases and the shared stats accumulators are sequential deps.
            # TODO(synk): a v7x 2-TensorCore split (core-parallel m with
            # per-core partial stats + cross-core reduce) is not implemented.
            dimension_semantics=("arbitrary", "arbitrary"),
            vmem_limit_bytes=vmem_limit),
    )(x2d, w1, w2, g1, b1, g2, b2)
    return out


def graph_node_feature_forward(x, params, *, tm=4096, h_dtype=jnp.bfloat16,
                               out_dtype=None, keep_intermediate=None):
    """GraphNodeFeature.forward (the FC/conv part).  x: (B, T1, T2, C)."""
    (w1, g1, b1), (w2, g2, b2) = params
    B, T1, T2, C = x.shape
    h = fc2_fused(x.reshape(B * T1 * T2, C), w1, g1, b1, w2, g2, b2,
                  act1_gelu=True, act2_gelu=False, tm=tm, h_dtype=h_dtype,
                  out_dtype=out_dtype, keep_intermediate=keep_intermediate)
    # TODO(synk): CentralityEncoder / GraphFeatures (degree-embedding add after
    # the FC) are not defined in the provided spec, so that step is omitted.
    return h.reshape(B, T1, T2, -1)


# -----------------------------------------------------------------------------
# Pure-JAX reference (mirrors the PyTorch module in training mode, no bias).
# -----------------------------------------------------------------------------
def _ref_forward(x, params):
    (w1, g1, b1), (w2, g2, b2) = params
    B, T1, T2, C = x.shape
    h = x.reshape(-1, C).astype(jnp.float32)
    for (w, g, be), use_gelu in (((w1, g1, b1), True), ((w2, g2, b2), False)):
        y = jnp.dot(h, w.astype(jnp.float32), precision=_DOT_PREC)
        mean = jnp.mean(y, axis=0, keepdims=True)
        var = jnp.mean((y - mean) ** 2, axis=0, keepdims=True)  # biased (train BN)
        y = (y - mean) * jax.lax.rsqrt(var + BN_EPS)
        y = y * g.reshape(1, -1) + be.reshape(1, -1)
        if use_gelu:
            y = _gelu_exact(y)
        h = y
    return h.reshape(B, T1, T2, -1)


if __name__ == "__main__":
    key = jax.random.PRNGKey(0)
    # GraphNodeFeature(N, C, d): conv = FC(input_dims=[C, d], units=[d, d],
    #                                      activations=[GELU, None], use_bias=False)
    B, T1, T2 = 2, 16, 8          # M = B*T1*T2 = 256 flattened positions
    C, d = 4, 32

    ks = jax.random.split(key, 7)
    x = jax.random.normal(ks[0], (B, T1, T2, C), dtype=jnp.float32)

    def conv_weight(k, cin, cout):
        bound = 1.0 / math.sqrt(cin)      # nn.Conv2d default init range
        return jax.random.uniform(k, (cin, cout), minval=-bound, maxval=bound,
                                  dtype=jnp.float32)

    w1 = conv_weight(ks[1], C, d)
    w2 = conv_weight(ks[2], d, d)
    g1 = 1.0 + 0.05 * jax.random.normal(ks[3], (d,), dtype=jnp.float32)
    b1 = 0.05 * jax.random.normal(ks[4], (d,), dtype=jnp.float32)
    g2 = 1.0 + 0.05 * jax.random.normal(ks[5], (d,), dtype=jnp.float32)
    b2 = 0.05 * jax.random.normal(ks[6], (d,), dtype=jnp.float32)
    params = ((w1, g1, b1), (w2, g2, b2))

    # Tolerances: TPU MXU f32 matmuls may internally run as bf16 passes and BN
    # stats are single-pass (pilot-shifted), so comparisons are not bitwise.
    TOL = dict(rtol=2e-2, atol=2e-2)
    BF16_TOL = dict(rtol=4e-2, atol=4e-2)

    ref = np.asarray(_ref_forward(x, params))

    # 1) f32 input / f32 VMEM intermediate, single-tile fast path.
    out = jax.block_until_ready(
        graph_node_feature_forward(x, params, h_dtype=jnp.float32))
    np.testing.assert_allclose(np.asarray(out), ref, **TOL)

    # 2) default path: bf16 input, bf16 VMEM intermediate, bf16 output.
    xb = x.astype(jnp.bfloat16)
    out_b = jax.block_until_ready(graph_node_feature_forward(xb, params))
    ref_b = np.asarray(_ref_forward(xb.astype(jnp.float32), params))
    np.testing.assert_allclose(np.asarray(out_b).astype(np.float32), ref_b,
                               **BF16_TOL)

    # 3) low-VMEM "re-stream x" fallback, multi-tile (n_m = 4).
    out_s = jax.block_until_ready(
        graph_node_feature_forward(x, params, tm=64, h_dtype=jnp.float32,
                                   keep_intermediate=False))
    np.testing.assert_allclose(np.asarray(out_s), ref, **TOL)

    # 4) ragged M (45 rows, not a multiple of 8): partial block + masked stats.
    x_r = jax.random.normal(ks[0], (1, 9, 5, C), dtype=jnp.float32)
    ref_r = np.asarray(_ref_forward(x_r, params))
    out_r = jax.block_until_ready(
        graph_node_feature_forward(x_r, params, h_dtype=jnp.float32))
    np.testing.assert_allclose(np.asarray(out_r), ref_r, **TOL)

    # 5) ragged + multi-tile (tm=16 -> 3 tiles, last one partial).
    out_r2 = jax.block_until_ready(
        graph_node_feature_forward(x_r, params, tm=16, h_dtype=jnp.float32))
    np.testing.assert_allclose(np.asarray(out_r2), ref_r, **TOL)

    print("KERNEL_OK")
</pallas_src>

<mosaic_0001>
module attributes {stable_mosaic.version = 11 : i64} {
  func.func @_fc2_fused_kernel(%arg0: i32, %arg1: i32, %arg2: memref<256x4xf32, #tpu.memory_space<vmem>>, %arg3: memref<4x32xf32, #tpu.memory_space<vmem>>, %arg4: memref<32x32xf32, #tpu.memory_space<vmem>>, %arg5: memref<1x32xf32, #tpu.memory_space<vmem>>, %arg6: memref<1x32xf32, #tpu.memory_space<vmem>>, %arg7: memref<1x32xf32, #tpu.memory_space<vmem>>, %arg8: memref<1x32xf32, #tpu.memory_space<vmem>>, %arg9: memref<256x32xf32, #tpu.memory_space<vmem>>, %arg10: memref<1x256x32xf32, #tpu.memory_space<vmem>>, %arg11: memref<3x32xf32, #tpu.memory_space<vmem>>, %arg12: memref<3x32xf32, #tpu.memory_space<vmem>>, %arg13: memref<2x32xf32, #tpu.memory_space<vmem>>, %arg14: memref<2x32xf32, #tpu.memory_space<vmem>>) attributes {dimension_semantics = [#tpu.dimension_semantics<arbitrary>, #tpu.dimension_semantics<arbitrary>], iteration_bounds = array<i64: 3, 1>, scalar_prefetch = 0 : i64, scratch_operands = 5 : i64, tpu.core_type = #tpu.core_type<tc>, window_params = [{transform_indices = @transform_0, window_bounds = array<i64: 256, 4>}, {pipeline_mode = #tpu.pipeline_mode<synchronous>, transform_indices = @transform_1, window_bounds = array<i64: 4, 32>}, {pipeline_mode = #tpu.pipeline_mode<synchronous>, transform_indices = @transform_2, window_bounds = array<i64: 32, 32>}, {pipeline_mode = #tpu.pipeline_mode<synchronous>, transform_indices = @transform_3, window_bounds = array<i64: 1, 32>}, {pipeline_mode = #tpu.pipeline_mode<synchronous>, transform_indices = @transform_4, window_bounds = array<i64: 1, 32>}, {pipeline_mode = #tpu.pipeline_mode<synchronous>, transform_indices = @transform_5, window_bounds = array<i64: 1, 32>}, {pipeline_mode = #tpu.pipeline_mode<synchronous>, transform_indices = @transform_6, window_bounds = array<i64: 1, 32>}, {transform_indices = @transform_7, window_bounds = array<i64: 256, 32>}]} {
    %c0_i32 = arith.constant 0 : i32
    %0 = arith.cmpi eq, %arg0, %c0_i32 : i32
    %1 = arith.extui %0 : i1 to i32
    %c0_i32_0 = arith.constant 0 : i32
    %2 = arith.cmpi ne, %1, %c0_i32_0 : i32
    scf.if %2 {
      %c0 = arith.constant 0 : index
      %c0_3 = arith.constant 0 : index
      %9 = vector.load %arg2[%c0, %c0_3] : memref<256x4xf32, #tpu.memory_space<vmem>>, vector<256x4xf32>
      %c0_4 = arith.constant 0 : index
      %c0_5 = arith.constant 0 : index
      %10 = vector.load %arg3[%c0_4, %c0_5] : memref<4x32xf32, #tpu.memory_space<vmem>>, vector<4x32xf32>
      %cst = arith.constant dense<0.000000e+00> : vector<256x32xf32>
      %11 = tpu.matmul %9, %10, %cst {dimension_numbers = #tpu.dot_dimension_numbers<[1], [0], [0], [1], [0, 0, 1, 1], [], []>, precision = #tpu.contract_precision<fp32>} : vector<256x4xf32>, vector<4x32xf32>, vector<256x32xf32> -> vector<256x32xf32>
      %12 = arith.index_cast %arg1 : i32 to index
      %c0_6 = arith.constant 0 : index
      %c0_7 = arith.constant 0 : index
      %13 = vector.load %arg10[%12, %c0_6, %c0_7] : memref<1x256x32xf32, #tpu.memory_space<vmem>>, vector<1x256x32xf32>
      %14 = vector.shape_cast %13 : vector<1x256x32xf32> to vector<256x32xf32>
      %15 = vector.shape_cast %11 : vector<256x32xf32> to vector<1x256x32xf32>
      tpu.vector_store %arg10[%12, %c0_6, %c0_7], %15 {strides = array<i32>} : memref<1x256x32xf32, #tpu.memory_space<vmem>>, vector<1x256x32xf32>,
      %c0_i32_8 = arith.constant 0 : i32
      %16 = arith.cmpi eq, %arg1, %c0_i32_8 : i32
      %17 = arith.extui %16 : i1 to i32
      %c0_i32_9 = arith.constant 0 : i32
      %18 = arith.cmpi ne, %17, %c0_i32_9 : i32
      scf.if %18 {
        %cst_20 = arith.constant dense<0.000000e+00> : vector<32xf32>
        %33 = vector.multi_reduction <add>, %11, %cst_20 [0] : vector<256x32xf32> to vector<32xf32>
        %34 = vector.shape_cast %33 : vector<32xf32> to vector<1x32xf32>
        %cst_21 = arith.constant 3.906250e-03 : f32
        %35 = vector.broadcast %cst_21 : f32 to vector<1x32xf32>
        %36 = arith.mulf %34, %35 : vector<1x32xf32>
        %c0_22 = arith.constant 0 : index
        %c0_23 = arith.constant 0 : index
        %37 = vector.load %arg11[%c0_22, %c0_23] : memref<3x32xf32, #tpu.memory_space<vmem>>, vector<1x32xf32>
        tpu.vector_store %arg11[%c0_22, %c0_23], %36 {strides = array<i32>} : memref<3x32xf32, #tpu.memory_space<vmem>>, vector<1x32xf32>,
        %cst_24 = arith.constant 0.000000e+00 : f32
        %38 = vector.broadcast %cst_24 : f32 to vector<2x32xf32>
        %c1_25 = arith.constant 1 : index
        %c0_26 = arith.constant 0 : index
        %39 = vector.load %arg11[%c1_25, %c0_26] : memref<3x32xf32, #tpu.memory_space<vmem>>, vector<2x32xf32>
        tpu.vector_store %arg11[%c1_25, %c0_26], %38 {strides = array<i32>} : memref<3x32xf32, #tpu.memory_space<vmem>>, vector<2x32xf32>,
      } else {
      }
      %c0_10 = arith.constant 0 : index
      %c0_11 = arith.constant 0 : index
      %19 = vector.load %arg11[%c0_10, %c0_11] : memref<3x32xf32, #tpu.memory_space<vmem>>, vector<1x32xf32>
      %20 = vector.broadcast %19 : vector<1x32xf32> to vector<256x32xf32>
      %21 = arith.subf %11, %20 : vector<256x32xf32>
      %c1 = arith.constant 1 : index
      %c0_12 = arith.constant 0 : index
      %22 = vector.load %arg11[%c1, %c0_12] : memref<3x32xf32, #tpu.memory_space<vmem>>, vector<1x32xf32>
      %cst_13 = arith.constant dense<0.000000e+00> : vector<32xf32>
      %23 = vector.multi_reduction <add>, %21, %cst_13 [0] : vector<256x32xf32> to vector<32xf32>
      %24 = vector.shape_cast %23 : vector<32xf32> to vector<1x32xf32>
      %25 = arith.addf %22, %24 : vector<1x32xf32>
      %c1_14 = arith.constant 1 : index
      %c0_15 = arith.constant 0 : index
      %26 = vector.load %arg11[%c1_14, %c0_15] : memref<3x32xf32, #tpu.memory_space<vmem>>, vector<1x32xf32>
      tpu.vector_store %arg11[%c1_14, %c0_15], %25 {strides = array<i32>} : memref<3x32xf32, #tpu.memory_space<vmem>>, vector<1x32xf32>,
      %c2 = arith.constant 2 : index
      %c0_16 = arith.constant 0 : index
      %27 = vector.load %arg11[%c2, %c0_16] : memref<3x32xf32, #tpu.memory_space<vmem>>, vector<1x32xf32>
      %28 = arith.mulf %21, %21 : vector<256x32xf32>
      %cst_17 = arith.constant dense<0.000000e+00> : vector<32xf32>
      %29 = vector.multi_reduction <add>, %28, %cst_17 [0] : vector<256x32xf32> to vector<32xf32>
      %30 = vector.shape_cast %29 : vector<32xf32> to vector<1x32xf32>
      %31 = arith.addf %27, %30 : vector<1x32xf32>
      %c2_18 = arith.constant 2 : index
      %c0_19 = arith.constant 0 : index
      %32 = vector.load %arg11[%c2_18, %c0_19] : memref<3x32xf32, #tpu.memory_space<vmem>>, vector<1x32xf32>
      tpu.vector_store %arg11[%c2_18, %c0_19], %31 {strides = array<i32>} : memref<3x32xf32, #tpu.memory_space<vmem>>, vector<1x32xf32>,
    } else {
    }
    %c1_i32 = arith.constant 1 : i32
    %3 = arith.cmpi eq, %arg0, %c1_i32 : i32
    %4 = arith.extui %3 : i1 to i32
    %c0_i32_1 = arith.constant 0 : i32
    %5 = arith.cmpi ne, %4, %c0_i32_1 : i32
    scf.if %5 {
      %c0_i32_3 = arith.constant 0 : i32
      %9 = arith.cmpi eq, %arg1, %c0_i32_3 : i32
      %10 = arith.extui %9 : i1 to i32
      %c0_i32_4 = arith.constant 0 : i32
      %11 = arith.cmpi ne, %10, %c0_i32_4 : i32
      scf.if %11 {
        %c1_29 = arith.constant 1 : index
        %c0_30 = arith.constant 0 : index
        %52 = vector.load %arg11[%c1_29, %c0_30] : memref<3x32xf32, #tpu.memory_space<vmem>>, vector<1x32xf32>
        %cst_31 = arith.constant 3.906250e-03 : f32
        %53 = vector.broadcast %cst_31 : f32 to vector<1x32xf32>
        %54 = arith.mulf %52, %53 : vector<1x32xf32>
        %c0_32 = arith.constant 0 : index
        %c0_33 = arith.constant 0 : index
        %55 = vector.load %arg11[%c0_32, %c0_33] : memref<3x32xf32, #tpu.memory_space<vmem>>, vector<1x32xf32>
        %56 = arith.addf %55, %54 : vector<1x32xf32>
        %c2_34 = arith.constant 2 : index
        %c0_35 = arith.constant 0 : index
        %57 = vector.load %arg11[%c2_34, %c0_35] : memref<3x32xf32, #tpu.memory_space<vmem>>, vector<1x32xf32>
        %cst_36 = arith.constant 3.906250e-03 : f32
        %58 = vector.broadcast %cst_36 : f32 to vector<1x32xf32>
        %59 = arith.mulf %57, %58 : vector<1x32xf32>
        %60 = arith.mulf %54, %54 : vector<1x32xf32>
        %61 = arith.subf %59, %60 : vector<1x32xf32>
        %cst_37 = arith.constant 0.000000e+00 : f32
        %62 = vector.broadcast %cst_37 : f32 to vector<1x32xf32>
        %63 = arith.maximumf %61, %62 : vector<1x32xf32>
        %c0_38 = arith.constant 0 : index
        %c0_39 = arith.constant 0 : index
        %64 = vector.load %arg5[%c0_38, %c0_39] : memref<1x32xf32, #tpu.memory_space<vmem>>, vector<1x32xf32>
        %cst_40 = arith.constant 9.99999974E-6 : f32
        %65 = vector.broadcast %cst_40 : f32 to vector<1x32xf32>
        %66 = arith.addf %63, %65 : vector<1x32xf32>
        %67 = math.rsqrt %66 : vector<1x32xf32>
        %68 = arith.mulf %64, %67 : vector<1x32xf32>
        %c0_41 = arith.constant 0 : index
        %c0_42 = arith.constant 0 : index
        %69 = vector.load %arg13[%c0_41, %c0_42] : memref<2x32xf32, #tpu.memory_space<vmem>>, vector<1x32xf32>
        tpu.vector_store %arg13[%c0_41, %c0_42], %68 {strides = array<i32>} : memref<2x32xf32, #tpu.memory_space<vmem>>, vector<1x32xf32>,
        %c0_43 = arith.constant 0 : index
        %c0_44 = arith.constant 0 : index
        %70 = vector.load %arg6[%c0_43, %c0_44] : memref<1x32xf32, #tpu.memory_space<vmem>>, vector<1x32xf32>
        %71 = arith.mulf %56, %68 : vector<1x32xf32>
        %72 = arith.subf %70, %71 : vector<1x32xf32>
        %c1_45 = arith.constant 1 : index
        %c0_46 = arith.constant 0 : index
        %73 = vector.load %arg13[%c1_45, %c0_46] : memref<2x32xf32, #tpu.memory_space<vmem>>, vector<1x32xf32>
        tpu.vector_store %arg13[%c1_45, %c0_46], %72 {strides = array<i32>} : memref<2x32xf32, #tpu.memory_space<vmem>>, vector<1x32xf32>,
      } else {
      }
      %12 = arith.index_cast %arg1 : i32 to index
      %c0 = arith.constant 0 : index
      %c0_5 = arith.constant 0 : index
      %13 = vector.load %arg10[%12, %c0, %c0_5] : memref<1x256x32xf32, #tpu.memory_space<vmem>>, vector<1x256x32xf32>
      %14 = vector.shape_cast %13 : vector<1x256x32xf32> to vector<256x32xf32>
      %c0_6 = arith.constant 0 : index
      %c0_7 = arith.constant 0 : index
      %15 = vector.load %arg13[%c0_6, %c0_7] : memref<2x32xf32, #tpu.memory_space<vmem>>, vector<1x32xf32>
      %16 = vector.broadcast %15 : vector<1x32xf32> to vector<256x32xf32>
      %17 = arith.mulf %14, %16 : vector<256x32xf32>
      %c1 = arith.constant 1 : index
      %c0_8 = arith.constant 0 : index
      %18 = vector.load %arg13[%c1, %c0_8] : memref<2x32xf32, #tpu.memory_space<vmem>>, vector<1x32xf32>
      %19 = vector.broadcast %18 : vector<1x32xf32> to vector<256x32xf32>
      %20 = arith.addf %17, %19 : vector<256x32xf32>
      %cst = arith.constant 5.000000e-01 : f32
      %21 = vector.broadcast %cst : f32 to vector<256x32xf32>
      %22 = arith.mulf %21, %20 : vector<256x32xf32>
      %cst_9 = arith.constant 0.707106769 : f32
      %23 = vector.broadcast %cst_9 : f32 to vector<256x32xf32>
      %24 = arith.mulf %20, %23 : vector<256x32xf32>
      %25 = math.erf %24 : vector<256x32xf32>
      %cst_10 = arith.constant 1.000000e+00 : f32
      %26 = vector.broadcast %cst_10 : f32 to vector<256x32xf32>
      %27 = arith.addf %26, %25 : vector<256x32xf32>
      %28 = arith.mulf %22, %27 : vector<256x32xf32>
      %29 = arith.index_cast %arg1 : i32 to index
      %c0_11 = arith.constant 0 : index
      %c0_12 = arith.constant 0 : index
      %30 = vector.load %arg10[%29, %c0_11, %c0_12] : memref<1x256x32xf32, #tpu.memory_space<vmem>>, vector<1x256x32xf32>
      %31 = vector.shape_cast %30 : vector<1x256x32xf32> to vector<256x32xf32>
      %32 = vector.shape_cast %28 : vector<256x32xf32> to vector<1x256x32xf32>
      tpu.vector_store %arg10[%29, %c0_11, %c0_12], %32 {strides = array<i32>} : memref<1x256x32xf32, #tpu.memory_space<vmem>>, vector<1x256x32xf32>,
      %c0_13 = arith.constant 0 : index
      %c0_14 = arith.constant 0 : index
      %33 = vector.load %arg4[%c0_13, %c0_14] : memref<32x32xf32, #tpu.memory_space<vmem>>, vector<32x32xf32>
      %cst_15 = arith.constant dense<0.000000e+00> : vector<256x32xf32>
      %34 = tpu.matmul %28, %33, %cst_15 {dimension_numbers = #tpu.dot_dimension_numbers<[1], [0], [0], [1], [0, 0, 1, 1], [], []>, precision = #tpu.contract_precision<fp32>} : vector<256x32xf32>, vector<32x32xf32>, vector<256x32xf32> -> vector<256x32xf32>
      %c0_i32_16 = arith.constant 0 : i32
      %35 = arith.cmpi eq, %arg1, %c0_i32_16 : i32
      %36 = arith.extui %35 : i1 to i32
      %c0_i32_17 = arith.constant 0 : i32
      %37 = arith.cmpi ne, %36, %c0_i32_17 : i32
      scf.if %37 {
        %cst_29 = arith.constant dense<0.000000e+00> : vector<32xf32>
        %52 = vector.multi_reduction <add>, %34, %cst_29 [0] : vector<256x32xf32> to vector<32xf32>
        %53 = vector.shape_cast %52 : vector<32xf32> to vector<1x32xf32>
        %cst_30 = arith.constant 3.906250e-03 : f32
        %54 = vector.broadcast %cst_30 : f32 to vector<1x32xf32>
        %55 = arith.mulf %53, %54 : vector<1x32xf32>
        %c0_31 = arith.constant 0 : index
        %c0_32 = arith.constant 0 : index
        %56 = vector.load %arg12[%c0_31, %c0_32] : memref<3x32xf32, #tpu.memory_space<vmem>>, vector<1x32xf32>
        tpu.vector_store %arg12[%c0_31, %c0_32], %55 {strides = array<i32>} : memref<3x32xf32, #tpu.memory_space<vmem>>, vector<1x32xf32>,
        %cst_33 = arith.constant 0.000000e+00 : f32
        %57 = vector.broadcast %cst_33 : f32 to vector<2x32xf32>
        %c1_34 = arith.constant 1 : index
        %c0_35 = arith.constant 0 : index
        %58 = vector.load %arg12[%c1_34, %c0_35] : memref<3x32xf32, #tpu.memory_space<vmem>>, vector<2x32xf32>
        tpu.vector_store %arg12[%c1_34, %c0_35], %57 {strides = array<i32>} : memref<3x32xf32, #tpu.memory_space<vmem>>, vector<2x32xf32>,
      } else {
      }
      %c0_18 = arith.constant 0 : index
      %c0_19 = arith.constant 0 : index
      %38 = vector.load %arg12[%c0_18, %c0_19] : memref<3x32xf32, #tpu.memory_space<vmem>>, vector<1x32xf32>
      %39 = vector.broadcast %38 : vector<1x32xf32> to vector<256x32xf32>
      %40 = arith.subf %34, %39 : vector<256x32xf32>
      %c1_20 = arith.constant 1 : index
      %c0_21 = arith.constant 0 : index
      %41 = vector.load %arg12[%c1_20, %c0_21] : memref<3x32xf32, #tpu.memory_space<vmem>>, vector<1x32xf32>
      %cst_22 = arith.constant dense<0.000000e+00> : vector<32xf32>
      %42 = vector.multi_reduction <add>, %40, %cst_22 [0] : vector<256x32xf32> to vector<32xf32>
      %43 = vector.shape_cast %42 : vector<32xf32> to vector<1x32xf32>
      %44 = arith.addf %41, %43 : vector<1x32xf32>
      %c1_23 = arith.constant 1 : index
      %c0_24 = arith.constant 0 : index
      %45 = vector.load %arg12[%c1_23, %c0_24] : memref<3x32xf32, #tpu.memory_space<vmem>>, vector<1x32xf32>
      tpu.vector_store %arg12[%c1_23, %c0_24], %44 {strides = array<i32>} : memref<3x32xf32, #tpu.memory_space<vmem>>, vector<1x32xf32>,
      %c2 = arith.constant 2 : index
      %c0_25 = arith.constant 0 : index
      %46 = vector.load %arg12[%c2, %c0_25] : memref<3x32xf32, #tpu.memory_space<vmem>>, vector<1x32xf32>
      %47 = arith.mulf %40, %40 : vector<256x32xf32>
      %cst_26 = arith.constant dense<0.000000e+00> : vector<32xf32>
      %48 = vector.multi_reduction <add>, %47, %cst_26 [0] : vector<256x32xf32> to vector<32xf32>
      %49 = vector.shape_cast %48 : vector<32xf32> to vector<1x32xf32>
      %50 = arith.addf %46, %49 : vector<1x32xf32>
      %c2_27 = arith.constant 2 : index
      %c0_28 = arith.constant 0 : index
      %51 = vector.load %arg12[%c2_27, %c0_28] : memref<3x32xf32, #tpu.memory_space<vmem>>, vector<1x32xf32>
      tpu.vector_store %arg12[%c2_27, %c0_28], %50 {strides = array<i32>} : memref<3x32xf32, #tpu.memory_space<vmem>>, vector<1x32xf32>,
    } else {
    }
    %c2_i32 = arith.constant 2 : i32
    %6 = arith.cmpi eq, %arg0, %c2_i32 : i32
    %7 = arith.extui %6 : i1 to i32
    %c0_i32_2 = arith.constant 0 : i32
    %8 = arith.cmpi ne, %7, %c0_i32_2 : i32
    scf.if %8 {
      %c0_i32_3 = arith.constant 0 : i32
      %9 = arith.cmpi eq, %arg1, %c0_i32_3 : i32
      %10 = arith.extui %9 : i1 to i32
      %c0_i32_4 = arith.constant 0 : i32
      %11 = arith.cmpi ne, %10, %c0_i32_4 : i32
      scf.if %11 {
        %c1_13 = arith.constant 1 : index
        %c0_14 = arith.constant 0 : index
        %24 = vector.load %arg12[%c1_13, %c0_14] : memref<3x32xf32, #tpu.memory_space<vmem>>, vector<1x32xf32>
        %cst_15 = arith.constant 3.906250e-03 : f32
        %25 = vector.broadcast %cst_15 : f32 to vector<1x32xf32>
        %26 = arith.mulf %24, %25 : vector<1x32xf32>
        %c0_16 = arith.constant 0 : index
        %c0_17 = arith.constant 0 : index
        %27 = vector.load %arg12[%c0_16, %c0_17] : memref<3x32xf32, #tpu.memory_space<vmem>>, vector<1x32xf32>
        %28 = arith.addf %27, %26 : vector<1x32xf32>
        %c2 = arith.constant 2 : index
        %c0_18 = arith.constant 0 : index
        %29 = vector.load %arg12[%c2, %c0_18] : memref<3x32xf32, #tpu.memory_space<vmem>>, vector<1x32xf32>
        %cst_19 = arith.constant 3.906250e-03 : f32
        %30 = vector.broadcast %cst_19 : f32 to vector<1x32xf32>
        %31 = arith.mulf %29, %30 : vector<1x32xf32>
        %32 = arith.mulf %26, %26 : vector<1x32xf32>
        %33 = arith.subf %31, %32 : vector<1x32xf32>
        %cst_20 = arith.constant 0.000000e+00 : f32
        %34 = vector.broadcast %cst_20 : f32 to vector<1x32xf32>
        %35 = arith.maximumf %33, %34 : vector<1x32xf32>
        %c0_21 = arith.constant 0 : index
        %c0_22 = arith.constant 0 : index
        %36 = vector.load %arg7[%c0_21, %c0_22] : memref<1x32xf32, #tpu.memory_space<vmem>>, vector<1x32xf32>
        %cst_23 = arith.constant 9.99999974E-6 : f32
        %37 = vector.broadcast %cst_23 : f32 to vector<1x32xf32>
        %38 = arith.addf %35, %37 : vector<1x32xf32>
        %39 = math.rsqrt %38 : vector<1x32xf32>
        %40 = arith.mulf %36, %39 : vector<1x32xf32>
        %c0_24 = arith.constant 0 : index
        %c0_25 = arith.constant 0 : index
        %41 = vector.load %arg14[%c0_24, %c0_25] : memref<2x32xf32, #tpu.memory_space<vmem>>, vector<1x32xf32>
        tpu.vector_store %arg14[%c0_24, %c0_25], %40 {strides = array<i32>} : memref<2x32xf32, #tpu.memory_space<vmem>>, vector<1x32xf32>,
        %c0_26 = arith.constant 0 : index
        %c0_27 = arith.constant 0 : index
        %42 = vector.load %arg8[%c0_26, %c0_27] : memref<1x32xf32, #tpu.memory_space<vmem>>, vector<1x32xf32>
        %43 = arith.mulf %28, %40 : vector<1x32xf32>
        %44 = arith.subf %42, %43 : vector<1x32xf32>
        %c1_28 = arith.constant 1 : index
        %c0_29 = arith.constant 0 : index
        %45 = vector.load %arg14[%c1_28, %c0_29] : memref<2x32xf32, #tpu.memory_space<vmem>>, vector<1x32xf32>
        tpu.vector_store %arg14[%c1_28, %c0_29], %44 {strides = array<i32>} : memref<2x32xf32, #tpu.memory_space<vmem>>, vector<1x32xf32>,
      } else {
      }
      %12 = arith.index_cast %arg1 : i32 to index
      %c0 = arith.constant 0 : index
      %c0_5 = arith.constant 0 : index
      %13 = vector.load %arg10[%12, %c0, %c0_5] : memref<1x256x32xf32, #tpu.memory_space<vmem>>, vector<1x256x32xf32>
      %14 = vector.shape_cast %13 : vector<1x256x32xf32> to vector<256x32xf32>
      %c0_6 = arith.constant 0 : index
      %c0_7 = arith.constant 0 : index
      %15 = vector.load %arg4[%c0_6, %c0_7] : memref<32x32xf32, #tpu.memory_space<vmem>>, vector<32x32xf32>
      %cst = arith.constant dense<0.000000e+00> : vector<256x32xf32>
      %16 = tpu.matmul %14, %15, %cst {dimension_numbers = #tpu.dot_dimension_numbers<[1], [0], [0], [1], [0, 0, 1, 1], [], []>, precision = #tpu.contract_precision<fp32>} : vector<256x32xf32>, vector<32x32xf32>, vector<256x32xf32> -> vector<256x32xf32>
      %c0_8 = arith.constant 0 : index
      %c0_9 = arith.constant 0 : index
      %17 = vector.load %arg14[%c0_8, %c0_9] : memref<2x32xf32, #tpu.memory_space<vmem>>, vector<1x32xf32>
      %18 = vector.broadcast %17 : vector<1x32xf32> to vector<256x32xf32>
      %19 = arith.mulf %16, %18 : vector<256x32xf32>
      %c1 = arith.constant 1 : index
      %c0_10 = arith.constant 0 : index
      %20 = vector.load %arg14[%c1, %c0_10] : memref<2x32xf32, #tpu.memory_space<vmem>>, vector<1x32xf32>
      %21 = vector.broadcast %20 : vector<1x32xf32> to vector<256x32xf32>
      %22 = arith.addf %19, %21 : vector<256x32xf32>
      %c0_11 = arith.constant 0 : index
      %c0_12 = arith.constant 0 : index
      %23 = vector.load %arg9[%c0_11, %c0_12] : memref<256x32xf32, #tpu.memory_space<vmem>>, vector<256x32xf32>
      tpu.vector_store %arg9[%c0_11, %c0_12], %22 {strides = array<i32>} : memref<256x32xf32, #tpu.memory_space<vmem>>, vector<256x32xf32>,
    } else {
    }
    return
  }
  func.func @transform_0(%arg0: i32, %arg1: i32) -> (i32, i32) {
    %c0_i32 = arith.constant 0 : i32
    %0 = arith.cmpi eq, %arg0, %c0_i32 : i32
    %c0_i32_0 = arith.constant 0 : i32
    %1 = arith.select %0, %arg1, %c0_i32_0 : i32
    %c0_i32_1 = arith.constant 0 : i32
    %c0_i32_2 = arith.constant 0 : i32
    return %1, %c0_i32_1 : i32, i32
  }
  func.func @transform_1(%arg0: i32, %arg1: i32) -> (i32, i32) {
    %c0_i32 = arith.constant 0 : i32
    %c0_i32_0 = arith.constant 0 : i32
    %c0_i32_1 = arith.constant 0 : i32
    return %c0_i32, %c0_i32_0 : i32, i32
  }
  func.func @transform_2(%arg0: i32, %arg1: i32) -> (i32, i32) {
    %c0_i32 = arith.constant 0 : i32
    %c0_i32_0 = arith.constant 0 : i32
    %c0_i32_1 = arith.constant 0 : i32
    return %c0_i32, %c0_i32_0 : i32, i32
  }
  func.func @transform_3(%arg0: i32, %arg1: i32) -> (i32, i32) {
    %c0_i32 = arith.constant 0 : i32
    %c0_i32_0 = arith.constant 0 : i32
    %c0_i32_1 = arith.constant 0 : i32
    return %c0_i32, %c0_i32_0 : i32, i32
  }
  func.func @transform_4(%arg0: i32, %arg1: i32) -> (i32, i32) {
    %c0_i32 = arith.constant 0 : i32
    %c0_i32_0 = arith.constant 0 : i32
    %c0_i32_1 = arith.constant 0 : i32
    return %c0_i32, %c0_i32_0 : i32, i32
  }
  func.func @transform_5(%arg0: i32, %arg1: i32) -> (i32, i32) {
    %c0_i32 = arith.constant 0 : i32
    %c0_i32_0 = arith.constant 0 : i32
    %c0_i32_1 = arith.constant 0 : i32
    return %c0_i32, %c0_i32_0 : i32, i32
  }
  func.func @transform_6(%arg0: i32, %arg1: i32) -> (i32, i32) {
    %c0_i32 = arith.constant 0 : i32
    %c0_i32_0 = arith.constant 0 : i32
    %c0_i32_1 = arith.constant 0 : i32
    return %c0_i32, %c0_i32_0 : i32, i32
  }
  func.func @transform_7(%arg0: i32, %arg1: i32) -> (i32, i32) {
    %c2_i32 = arith.constant 2 : i32
    %0 = arith.cmpi eq, %arg0, %c2_i32 : i32
    %c0_i32 = arith.constant 0 : i32
    %1 = arith.select %0, %arg1, %c0_i32 : i32
    %c0_i32_0 = arith.constant 0 : i32
    %c0_i32_1 = arith.constant 0 : i32
    return %1, %c0_i32_0 : i32, i32
  }
}

</mosaic_0001>

<bundles_post_ra>
// kernel: tpu_custom_call.1
= control target key start
LH: loop header
LB: loop body
LE: loop exit
PB: predicated region body
PF: predicated region fallthrough
CT: control target
= control target key end

     0   :  { %s9043_s24 = smov 0   ;;  %s9045_s25 = smov 0   ;;  %s12725_s0 = inlined_call_operand.vmem [shape: f32[256,4], index: 0, kind: input, shape index: {}]   ;;  %s12726_s1 = inlined_call_operand.vmem [shape: f32[4,32], index: 1, kind: input, shape index: {}]   ;;  %s12727_s2 = inlined_call_operand.vmem [shape: f32[32,32], index: 2, kind: input, shape index: {}]   ;;  %s12728_s3 = inlined_call_operand.vmem [shape: f32[1,32], index: 3, kind: input, shape index: {}]   ;;  %s12729_s4 = inlined_call_operand.vmem [shape: f32[1,32], index: 4, kind: input, shape index: {}]   ;;  %s12730_s5 = inlined_call_operand.vmem [shape: f32[1,32], index: 5, kind: input, shape index: {}]   ;;  %s12731_s6 = inlined_call_operand.vmem [shape: f32[1,32], index: 6, kind: input, shape index: {}]   ;;  %s12732_s7 = inlined_call_operand.vmem [shape: f32[256,32], index: 7, kind: output, shape index: {}]  }
   0x1   :  { %s9047_s26 = smov 0  }
   0x2 LB: > { %s29_s27 = sadd.s32 1, %s8995_s25  ;;  %p7267_p0 = scmp.ge.s32.totalorder %s8999_s26, 1  ;;  %s8999_s26 = sphi %s9047_s26, %s17_s26   ;;  %s8995_s25 = sphi %s9045_s25, %s13324_s25   ;;  %s8991_s24 = sphi %s9043_s24, %s13323_s24  }
   0x3   : > { %p31_p1 = scmp.ge.s32.totalorder %s29_s27, 3  ;;  %p262_p2 = scmp.lt.s32.totalorder %s8999_s26, 4 }
   0x5   : > { %s13326_s27 = smov (%p31_p1, %s29_s27), 0  ;;  %p263_p3 = pnand %p7267_p0, %p262_p2 }
   0x6   : > { %p7268_p4 = scmp.ne.s32.totalorder (!%p263_p3), %s8991_s24, 0 }
   0x7   : > { %266 = sbr.rel (%p263_p3) target bundleno = 1546 (0x60a), region = 48 }
   0xc   : > { %321 = sbr.rel (%p7268_p4) target bundleno = 531 (0x213), region = 52 }
  0x11   : > { %v354_v0 = vld [vmem:[%s12726_s1] sm:$0xf]  ;;  %vm452_vm0 = vcmask 1043456   ;;  %vm355_vm1 = vcmask 31744   ;;  %v323_v2 = vld [vmem:[%s12725_s0 + $0x8] sm:$0xff]  ;;  %v324_v6 = vld [vmem:[%s12725_s0 + $0x10] sm:$0xff] }
  0x12   : > { %v322_v1 = vld [vmem:[%s12725_s0] sm:$0xff]  ;;  %v454_v3 = vsel %vm452_vm0, %v354_v0, 0  ;;  %v360_v5 = vsel %vm355_vm1, %v323_v2, 0  ;;  %v325_v7 = vld [vmem:[%s12725_s0 + $0x18] sm:$0xff]  ;;  %v363_v12 = vsel %vm355_vm1, %v324_v6, 0  ;;  %v327_v13 = vld [vmem:[%s12725_s0 + $0x28] sm:$0xff] }
  0x13   : > { %v357_v4 = vsel %vm355_vm1, %v322_v1, 0  ;;  %v326_v8 = vld [vmem:[%s12725_s0 + $0x20] sm:$0xff]  ;;  %v9084_v9 = vand.u32 4294901760, %v454_v3  ;;  %v9088_v11 = vand.u32 4294901760, %v360_v5  ;;  %v328_v14 = vld [vmem:[%s12725_s0 + $0x30] sm:$0xff]  ;;  %v9097_v15 = vand.u32 4294901760, %v363_v12 }
  0x14   : > { %v9086_v10 = vand.u32 4294901760, %v357_v4  ;;  %v366_v16 = vsel %vm355_vm1, %v325_v7, 0  ;;  %v369_v17 = vsel %vm355_vm1, %v326_v8, 0  ;;  %v372_v18 = vsel %vm355_vm1, %v327_v13, 0  ;;  %v329_v43 = vld [vmem:[%s12725_s0 + $0x38] sm:$0xff]  ;;  %v330_v44 = vld [vmem:[%s12725_s0 + $0x40] sm:$0xff] }
  0x15   : > { %7911 = vmatprep.subr.mxu0 %v9084_v9  ;;  %v874_v20 = vsub.f32 %v454_v3, %v9084_v9  ;;  %v9108_v21 = vsub.f32 %v360_v5, %v9088_v11  ;;  %v9111_v22 = vand.u32 4294901760, %v366_v16  ;;  %v9115_v23 = vsub.f32 %v363_v12, %v9097_v15  ;;  %v331_v45 = vld [vmem:[%s12725_s0 + $0x48] sm:$0xff]  ;;  %v332_v54 = vld [vmem:[%s12725_s0 + $0x50] sm:$0xff]  ;;  %v333_v55 = vld [vmem:[%s12725_s0 + $0x58] sm:$0xff] }
  0x16   : > { %v9104_v19 = vsub.f32 %v357_v4, %v9086_v10  ;;  %7963 = vmatprep.mubr.f32.mxu1 %v9086_v10  ;;  %7912 = vmatpush3.msra.mxu0 %v9084_v9  ;;  %v9117_v24 = vand.u32 4294901760, %v369_v17  ;;  %v9119_v25 = vand.u32 4294901760, %v372_v18  ;;  %v375_v26 = vsel %vm355_vm1, %v328_v14, 0  ;;  %v334_v0 = vld [vmem:[%s12725_s0 + $0x60] sm:$0xff]  ;;  %v335_v1 = vld [vmem:[%s12725_s0 + $0x68] sm:$0xff]  ;;  %v336_v13 = vld [vmem:[%s12725_s0 + $0x70] sm:$0xff] }
  0x17   : > { %v9123_v28 = vand.u32 4294901760, %v874_v20  ;;  %8011 = vmatprep.subr.mxu0 %v874_v20  ;;  %v12748_v29 = vand.u32 4294901760, %v9108_v21  ;;  %v9127_v30 = vsub.f32 %v366_v16, %v9111_v22  ;;  %v12746_v31 = vand.u32 4294901760, %v9115_v23 }
  0x18   : > { %v12749_v27 = vand.u32 4294901760, %v9104_v19  ;;  %v9131_v32 = vsub.f32 %v369_v17, %v9117_v24  ;;  %v9134_v33 = vsub.f32 %v372_v18, %v9119_v25  ;;  %v9136_v34 = vand.u32 4294901760, %v375_v26 }
  0x19   : > { %v876_v36 = vsub.f32 %v874_v20, %v9123_v28  ;;  %v535_v37 = vsub.f32 %v9108_v21, %v12748_v29  ;;  %v12744_v38 = vand.u32 4294901760, %v9127_v30  ;;  %v545_v39 = vsub.f32 %v9115_v23, %v12746_v31 }
  0x1a   : > { %v525_v35 = vsub.f32 %v9104_v19, %v12749_v27  ;;  %v12743_v40 = vand.u32 4294901760, %v9131_v32  ;;  %v12742_v41 = vand.u32 4294901760, %v9134_v33  ;;  %v9152_v42 = vsub.f32 %v375_v26, %v9136_v34 }
  0x1b   : > { %v877_v47 = vand.u32 4294901760, %v876_v36  ;;  %v536_v48 = vand.u32 4294901760, %v535_v37  ;;  %v555_v49 = vsub.f32 %v9127_v30, %v12744_v38  ;;  %v546_v50 = vand.u32 4294901760, %v545_v39 }
  0x1c   : > { %v526_v46 = vand.u32 4294901760, %v525_v35  ;;  %v565_v51 = vsub.f32 %v9131_v32, %v12743_v40  ;;  %v575_v52 = vsub.f32 %v9134_v33, %v12742_v41  ;;  %v12741_v53 = vand.u32 4294901760, %v9152_v42 }
  0x1d   : > { %7961 = vmatprep.subr.mxu1 %v877_v47  ;;  %v556_v56 = vand.u32 4294901760, %v555_v49  ;;  %v378_v57 = vsel %vm355_vm1, %v329_v43, 0  ;;  %v381_v58 = vsel %vm355_vm1, %v330_v44, 0  ;;  %v384_v59 = vsel %vm355_vm1, %v331_v45, 0 }
  0x1e   : > { %7913 = vmatprep.mubr.f32.mxu0 %v526_v46  ;;  %7962 = vmatpush3.msra.mxu1 %v877_v47  ;;  %v566_v60 = vand.u32 4294901760, %v565_v51  ;;  %v576_v61 = vand.u32 4294901760, %v575_v52  ;;  %v585_v62 = vsub.f32 %v9152_v42, %v12741_v53  ;;  %v9185_v63 = vand.u32 4294901760, %v378_v57  ;;  %v337_v52 = vld [vmem:[%s12725_s0 + $0x78] sm:$0xff] }
  0x1f   : > { %7914 = vmatmul.mubr.f32.vlgmr.msra.gmra.mxu0 %v536_v48  ;;  %7964 = vmatmul.mubr.f32.vlgmr.msra.gmra.mxu1 %v9088_v11  ;;  %v9194_v2 = vand.u32 4294901760, %v381_v58  ;;  %v9196_v3 = vand.u32 4294901760, %v384_v59  ;;  %v387_v4 = vsel %vm355_vm1, %v332_v54, 0  ;;  %v390_v5 = vsel %vm355_vm1, %v333_v55, 0 }
  0x20   : > { %12907 = vst [vmem:[#allocation7_spill] sm:$0xff] %v9185_v63  ;;  %8012 = vmatpush3.msra.mxu0 %v874_v20  ;;  %8061 = vmatprep.subr.mxu1 %v9084_v9  ;;  %v586_v6 = vand.u32 4294901760, %v585_v62  ;;  %v9202_v7 = vsub.f32 %v378_v57, %v9185_v63  ;;  %v9204_v8 = vand.u32 4294901760, %v387_v4  ;;  %v9206_v12 = vand.u32 4294901760, %v390_v5  ;;  %v340_v62 = vld [vmem:[%s12725_s0 + $0x90] sm:$0xff] }
  0x21   : > { %12908 = vst [vmem:[#allocation8_spill] sm:$0xff] %v9194_v2  ;;  %12909 = vst [vmem:[#allocation9_spill] sm:$0xff] %v9196_v3  ;;  %7916 = vmatprep.mubr.f32.mxu0 %v546_v50  ;;  %8062 = vmatpush3.msra.mxu1 %v9084_v9  ;;  %v9214_v14 = vsub.f32 %v381_v58, %v9194_v2  ;;  %v9217_v16 = vsub.f32 %v384_v59, %v9196_v3  ;;  %v393_v17 = vsel %vm355_vm1, %v334_v0, 0  ;;  %vm2346_vm2 = vcmask 254976  }
  0x22   : > { %12910 = vst [vmem:[#allocation10_spill] sm:$0xff] %v9204_v8  ;;  %12911 = vst [vmem:[#allocation11_spill] sm:$0xff] %v9206_v12  ;;  %7966 = vmatprep.mubr.f32.mxu1 %v9097_v15  ;;  %v396_v18 = vsel %vm355_vm1, %v335_v1, 0  ;;  %v12740_v20 = vand.u32 4294901760, %v9202_v7  ;;  %v9223_v26 = vsub.f32 %v387_v4, %v9204_v8  ;;  %v9226_v35 = vsub.f32 %v390_v5, %v9206_v12 }
  0x23   : > { %7917 = vmatmul.mubr.f32.gmra.mxu0 %v556_v56  ;;  %v9228_v36 = vand.u32 4294901760, %v393_v17  ;;  %8111 = vmatprep.subr.mxu0 %v9123_v28  ;;  %v12737_v37 = vand.u32 4294901760, %v9214_v14  ;;  %v12735_v39 = vand.u32 4294901760, %v9217_v16  ;;  %v9234_v43 = vand.u32 4294901760, %v396_v18  ;;  %v338_v56 = vld [vmem:[%s12725_s0 + $0x80] sm:$0xff] }
  0x24   : > { %7967 = vmatmul.mubr.f32.gmra.mxu1 %v9111_v22  ;;  %7919 = vmatprep.mubr.f32.mxu0 %v566_v60  ;;  %v399_v44 = vsel %vm355_vm1, %v336_v13, 0  ;;  %v595_v45 = vsub.f32 %v9202_v7, %v12740_v20  ;;  %v12734_v46 = vand.u32 4294901760, %v9223_v26  ;;  %v12733_v47 = vand.u32 4294901760, %v9226_v35 }
  0x25   : > { %12912 = vst [vmem:[#allocation12_spill] sm:$0xff] %v9228_v36  ;;  %12913 = vst [vmem:[#allocation13_spill] sm:$0xff] %v9234_v43  ;;  %7969 = vmatprep.mubr.f32.mxu1 %v9117_v24  ;;  %v9244_v48 = vsub.f32 %v393_v17, %v9228_v36  ;;  %8161 = vmatprep.subr.mxu1 %v9084_v9  ;;  %v605_v49 = vsub.f32 %v9214_v14, %v12737_v37  ;;  %v9253_v51 = vand.u32 4294901760, %v399_v44  ;;  %v341_v17 = vld [vmem:[%s12725_s0 + $0x98] sm:$0xff]  ;;  %vm2237_vm3 = vcmask 261120  }
  0x26   : > { %v9251_v50 = vsub.f32 %v396_v18, %v9234_v43  ;;  %v596_v54 = vand.u32 4294901760, %v595_v45  ;;  %v615_v55 = vsub.f32 %v9217_v16, %v12735_v39  ;;  %v625_v58 = vsub.f32 %v9223_v26, %v12734_v46  ;;  %v342_v18 = vld [vmem:[%s12725_s0 + $0xa0] sm:$0xff] }
  0x27   : > { %12914 = vst [vmem:[#allocation14_spill] sm:$0xff] %v9253_v51  ;;  %7920 = vmatmul.mubr.f32.gmra.mxu0 %v576_v61  ;;  %v606_v57 = vand.u32 4294901760, %v605_v49  ;;  %v12736_v59 = vand.u32 4294901760, %v9244_v48  ;;  %v9270_v60 = vsub.f32 %v399_v44, %v9253_v51  ;;  %v339_v61 = vld [vmem:[%s12725_s0 + $0x88] sm:$0xff]  ;;  %v635_v0 = vsub.f32 %v9226_v35, %v12733_v47 }
  0x28   : > { %7970 = vmatmul.mubr.f32.gmra.mxu1 %v9119_v25  ;;  %7922 = vmatprep.mubr.f32.mxu0 %v586_v6  ;;  %v402_v1 = vsel %vm355_vm1, %v337_v52, 0  ;;  %v12738_v4 = vand.u32 4294901760, %v9251_v50  ;;  %v405_v13 = vsel %vm355_vm1, %v338_v56, 0  ;;  %v616_v44 = vand.u32 4294901760, %v615_v55 }
  0x29   : > { %7972 = vmatprep.mubr.f32.mxu1 %v9136_v34  ;;  %v12739_v5 = vand.u32 4294901760, %v9270_v60  ;;  %v9285_v6 = vand.u32 4294901760, %v402_v1  ;;  %v9294_v45 = vand.u32 4294901760, %v405_v13  ;;  %v408_v49 = vsel %vm355_vm1, %v339_v61, 0 }
  0x2a   : > { %v411_v52 = vsel %vm355_vm1, %v340_v62, 0  ;;  %v626_v56 = vand.u32 4294901760, %v625_v58  ;;  %v645_v47 = vsub.f32 %v9244_v48, %v12736_v59  ;;  %v9305_v39 = vand.u32 4294901760, %v408_v49 }
  0x2b   : > { %12915 = vst [vmem:[#allocation15_spill] sm:$0xff] %v9285_v6  ;;  %7923 = vmatmul.mubr.f32.gmra.mxu0 %v596_v54  ;;  %12916 = vst [vmem:[#allocation16_spill] sm:$0xff] %v9294_v45  ;;  %v9303_v46 = vsub.f32 %v402_v1, %v9285_v6  ;;  %v343_v54 = vld [vmem:[%s12725_s0 + $0xa8] sm:$0xff]  ;;  %v9312_v55 = vsub.f32 %v405_v13, %v9294_v45  ;;  %v414_v58 = vsel %vm355_vm1, %v341_v17, 0  ;;  %v417_v61 = vsel %vm355_vm1, %v342_v18, 0  ;;  %v344_v13 = vld [vmem:[%s12725_s0 + $0xb0] sm:$0xff] }
  0x2c   : > { %7973 = vmatmul.mubr.f32.gmra.mxu1 %v9185_v63  ;;  %7925 = vmatprep.mubr.f32.mxu0 %v606_v57  ;;  %12917 = vst [vmem:[#allocation17_spill] sm:$0xff] %v9305_v39  ;;  %v9314_v57 = vand.u32 4294901760, %v411_v52  ;;  %v636_v62 = vand.u32 4294901760, %v635_v0  ;;  %v655_v1 = vsub.f32 %v9251_v50, %v12738_v4  ;;  %v665_v59 = vsub.f32 %v9270_v60, %v12739_v5 }
  0x2d   : > { %7975 = vmatprep.mubr.f32.mxu1 %v9194_v2  ;;  %v12745_v37 = vand.u32 4294901760, %v9303_v46  ;;  %v9329_v17 = vsub.f32 %v408_v49, %v9305_v39  ;;  %v9331_v18 = vand.u32 4294901760, %v414_v58  ;;  %v420_v0 = vsel %vm355_vm1, %v343_v54, 0  ;;  %v345_v49 = vld [vmem:[%s12725_s0 + $0xb8] sm:$0xff] }
  0x2e   : > { %12918 = vst [vmem:[#allocation18_spill] sm:$0xff] %v9314_v57  ;;  %v646_v4 = vand.u32 4294901760, %v645_v47  ;;  %v12747_v5 = vand.u32 4294901760, %v9312_v55  ;;  %v9337_v20 = vsub.f32 %v411_v52, %v9314_v57  ;;  %v9339_v53 = vand.u32 4294901760, %v417_v61 }
  0x2f   : > { %7926 = vmatmul.mubr.f32.gmra.mxu0 %v616_v44  ;;  %12919 = vst [vmem:[#allocation19_spill] sm:$0xff] %v9331_v18  ;;  %v423_v44 = vsel %vm355_vm1, %v344_v13, 0  ;;  %v656_v54 = vand.u32 4294901760, %v655_v1  ;;  %v666_v41 = vand.u32 4294901760, %v665_v59  ;;  %v9346_v40 = vand.u32 4294901760, %v420_v0  ;;  %v346_v13 = vld [vmem:[%s12725_s0 + $0xc0] sm:$0xff] }
  0x30   : > { %7976 = vmatmul.mubr.f32.gmra.mxu1 %v9196_v3  ;;  %7928 = vmatprep.mubr.f32.mxu0 %v626_v56  ;;  %12920 = vst [vmem:[#allocation20_spill] sm:$0xff] %v9339_v53  ;;  %v675_v47 = vsub.f32 %v9303_v46, %v12745_v37  ;;  %v12754_v52 = vand.u32 4294901760, %v9329_v17  ;;  %v9353_v56 = vsub.f32 %v414_v58, %v9331_v18  ;;  %v9355_v38 = vand.u32 4294901760, %v423_v44  ;;  %v347_v37 = vld [vmem:[%s12725_s0 + $0xc8] sm:$0xff] }
  0x31   : > { %7978 = vmatprep.mubr.f32.mxu1 %v9204_v8  ;;  %v685_v59 = vsub.f32 %v9312_v55, %v12747_v5  ;;  %v9366_v1 = vsub.f32 %v417_v61, %v9339_v53  ;;  %v426_v58 = vsel %vm355_vm1, %v345_v49, 0  ;;  %v9374_v31 = vsub.f32 %v420_v0, %v9346_v40  ;;  %v348_v61 = vld [vmem:[%s12725_s0 + $0xd0] sm:$0xff] }
  0x32   : > { %v9379_v5 = vand.u32 4294901760, %v426_v58  ;;  %v429_v29 = vsel %vm355_vm1, %v346_v13, 0  ;;  %v676_v49 = vand.u32 4294901760, %v675_v47  ;;  %v695_v27 = vsub.f32 %v9329_v17, %v12754_v52  ;;  %v349_v52 = vld [vmem:[%s12725_s0 + $0xd8] sm:$0xff] }
  0x33   : > { %7929 = vmatmul.mubr.f32.gmra.mxu0 %v636_v62  ;;  %v9389_v62 = vand.u32 4294901760, %v429_v29  ;;  %v12921_v13 = vand.u32 4294901760, %v9337_v20  ;;  %v435_v47 = vsel %vm355_vm1, %v348_v61, 0  ;;  %vm2344_vm4 = vcmask 253952  }
  0x34   : > { %7979 = vmatmul.mubr.f32.gmra.mxu1 %v9206_v12  ;;  %7931 = vmatprep.mubr.f32.mxu0 %v646_v4  ;;  %v9377_v4 = vsub.f32 %v423_v44, %v9355_v38  ;;  %v686_v44 = vand.u32 4294901760, %v685_v59  ;;  %v9405_v59 = vsub.f32 %v426_v58, %v9379_v5  ;;  %v12922_v12 = vand.u32 4294901760, %v9353_v56 }
  0x35   : > { %7981 = vmatprep.mubr.f32.mxu1 %v9228_v36  ;;  %v705_v36 = vsub.f32 %v9337_v20, %v12921_v13  ;;  %v350_v13 = vld [vmem:[%s12725_s0 + $0xe0] sm:$0xff]  ;;  %v9422_v8 = vand.u32 4294901760, %v435_v47 }
  0x36   : > { %v715_v61 = vsub.f32 %v9353_v56, %v12922_v12  ;;  %v441_v12 = vsel %vm355_vm1, %v350_v13, 0 }
  0x37   : > { %7932 = vmatmul.mubr.f32.gmra.mxu0 %v656_v54  ;;  %v432_v54 = vsel %vm355_vm1, %v347_v37, 0  ;;  %v696_v37 = vand.u32 4294901760, %v695_v27  ;;  %v706_v58 = vand.u32 4294901760, %v705_v36  ;;  %v438_v27 = vsel %vm355_vm1, %v349_v52, 0  ;;  %v352_v52 = vld [vmem:[%s12725_s0 + $0xf0] sm:$0xff] }
  0x38   : > { %7982 = vmatmul.mubr.f32.gmra.mxu1 %v9234_v43  ;;  %7934 = vmatprep.mubr.f32.mxu0 %v666_v41  ;;  %v9416_v43 = vand.u32 4294901760, %v432_v54  ;;  %v12923_v41 = vand.u32 4294901760, %v9366_v1  ;;  %v716_v13 = vand.u32 4294901760, %v715_v61  ;;  %v9444_v2 = vand.u32 4294901760, %v438_v27 }
  0x39   : > { %7984 = vmatprep.mubr.f32.mxu1 %v9253_v51  ;;  %v9414_v51 = vsub.f32 %v429_v29, %v9389_v62  ;;  %v351_v29 = vld [vmem:[%s12725_s0 + $0xe8] sm:$0xff] }
  0x3a   : > { %v725_v0 = vsub.f32 %v9366_v1, %v12923_v41  ;;  %v9442_v3 = vsub.f32 %v432_v54, %v9416_v43  ;;  %v444_v63 = vsel %vm355_vm1, %v351_v29, 0  ;;  %v353_v54 = vld [vmem:[%s12725_s0 + $0xf8] sm:$0xff] }
  0x3b   : > { %7935 = vmatmul.mubr.f32.gmra.mxu0 %v676_v49  ;;  %v12924_v49 = vand.u32 4294901760, %v9374_v31 }
  0x3c   : > { %7985 = vmatmul.mubr.f32.gmra.mxu1 %v9285_v6  ;;  %7937 = vmatprep.mubr.f32.mxu0 %v686_v44  ;;  %v12925_v44 = vand.u32 4294901760, %v9377_v4  ;;  %v9450_v6 = vand.u32 4294901760, %v441_v12  ;;  %v12779_v29 = vand.u32 4294901760, %v9442_v3 }
  0x3d   : > { %7987 = vmatprep.mubr.f32.mxu1 %v9294_v45  ;;  %v735_v36 = vsub.f32 %v9374_v31, %v12924_v49  ;;  %v726_v49 = vand.u32 4294901760, %v725_v0 }
  0x3e   : > { %v745_v41 = vsub.f32 %v9377_v4, %v12925_v44  ;;  %v9448_v44 = vsub.f32 %v435_v47, %v9422_v8  ;;  %v12927_v47 = vand.u32 4294901760, %v9414_v51 }
  0x3f   : > { %7938 = vmatmul.mubr.f32.gmra.mxu0 %v696_v37  ;;  %v447_v37 = vsel %vm355_vm1, %v352_v52, 0  ;;  %v736_v61 = vand.u32 4294901760, %v735_v36  ;;  %v9468_v52 = vand.u32 4294901760, %v444_v63 }
  0x40   : > { %7988 = vmatmul.mubr.f32.gmra.mxu1 %v9305_v39  ;;  %7940 = vmatprep.mubr.f32.mxu0 %v706_v58  ;;  %v746_v45 = vand.u32 4294901760, %v745_v41  ;;  %v12926_v58 = vand.u32 4294901760, %v9405_v59  ;;  %v765_v39 = vsub.f32 %v9414_v51, %v12927_v47  ;;  %v9473_v41 = vsub.f32 %v441_v12, %v9450_v6 }
  0x41   : > { %7990 = vmatprep.mubr.f32.mxu1 %v9314_v57  ;;  %v9466_v57 = vsub.f32 %v438_v27, %v9444_v2  ;;  %v775_v27 = vsub.f32 %v9442_v3, %v12779_v29 }
  0x42   : > { %v755_v0 = vsub.f32 %v9405_v59, %v12926_v58  ;;  %v450_v58 = vsel %vm355_vm1, %v353_v54, 0  ;;  %v766_v12 = vand.u32 4294901760, %v765_v39  ;;  %v12928_v54 = vand.u32 4294901760, %v9448_v44 }
  0x43   : > { %7941 = vmatmul.mubr.f32.gmra.mxu0 %v716_v13  ;;  %v9475_v13 = vand.u32 4294901760, %v447_v37  ;;  %v9486_v36 = vand.u32 4294901760, %v450_v58 }
  0x44   : > { %7991 = vmatmul.mubr.f32.gmra.mxu1 %v9331_v18  ;;  %7943 = vmatprep.mubr.f32.mxu0 %v726_v49  ;;  %v756_v47 = vand.u32 4294901760, %v755_v0  ;;  %v12780_v18 = vand.u32 4294901760, %v9466_v57  ;;  %v9484_v49 = vsub.f32 %v444_v63, %v9468_v52  ;;  %v785_v0 = vsub.f32 %v9448_v44, %v12928_v54 }
  0x45   : > { %7993 = vmatprep.mubr.f32.mxu1 %v9339_v53  ;;  %v9494_v53 = vsub.f32 %v447_v37, %v9475_v13  ;;  %v776_v63 = vand.u32 4294901760, %v775_v27  ;;  %v9502_v39 = vsub.f32 %v450_v58, %v9486_v36 }
  0x46   : > { %v795_v29 = vsub.f32 %v9466_v57, %v12780_v18  ;;  %v786_v54 = vand.u32 4294901760, %v785_v0 }
  0x47   : > { %7944 = vmatmul.mubr.f32.gmra.mxu0 %v736_v61  ;;  %v12781_v61 = vand.u32 4294901760, %v9473_v41  ;;  %v834_v58 = vand.u32 4294901760, %v9502_v39 }
  0x48   : > { %7994 = vmatmul.mubr.f32.gmra.mxu1 %v9346_v40  ;;  %7946 = vmatprep.mubr.f32.mxu0 %v746_v45  ;;  %v814_v45 = vand.u32 4294901760, %v9484_v49  ;;  %v796_v27 = vand.u32 4294901760, %v795_v29 }
  0x49   : > { %7996 = vmatprep.mubr.f32.mxu1 %v9355_v38  ;;  %v805_v37 = vsub.f32 %v9473_v41, %v12781_v61  ;;  %v835_v29 = vsub.f32 %v9502_v39, %v834_v58 }
  0x4a   : > { %v815_v18 = vsub.f32 %v9484_v49, %v814_v45 }
  0x4b   : > { %7947 = vmatmul.mubr.f32.gmra.mxu0 %v756_v47  ;;  %v824_v47 = vand.u32 4294901760, %v9494_v53 }
  0x4c   : > { %7997 = vmatmul.mubr.f32.gmra.mxu1 %v9379_v5  ;;  %7949 = vmatprep.mubr.f32.mxu0 %v766_v12  ;;  %v806_v12 = vand.u32 4294901760, %v805_v37  ;;  %v816_v61 = vand.u32 4294901760, %v815_v18  ;;  %v12929_v18 = vand.u32 4294901760, %v9104_v19  ;;  %v12931_v37 = vand.u32 4294901760, %v9115_v23 }
  0x4d   : > { %7999 = vmatprep.mubr.f32.mxu1 %v9389_v62  ;;  %v825_v0 = vsub.f32 %v9494_v53, %v824_v47 }
  0x4f   : > { %7950 = vmatmul.mubr.f32.gmra.mxu0 %v776_v63  ;;  %v826_v63 = vand.u32 4294901760, %v825_v0 }
  0x50   : > { %8000 = vmatmul.mubr.f32.gmra.mxu1 %v9416_v43  ;;  %7952 = vmatprep.mubr.f32.mxu0 %v786_v54  ;;  %v836_v54 = vand.u32 4294901760, %v835_v29 }
  0x51   : > { %8002 = vmatprep.mubr.f32.mxu1 %v9422_v8 }
  0x53   : > { %7953 = vmatmul.mubr.f32.gmra.mxu0 %v796_v27  ;;  %v12932_v27 = vand.u32 4294901760, %v9127_v30 }
  0x54   : > { %8003 = vmatmul.mubr.f32.gmra.mxu1 %v9444_v2  ;;  %7955 = vmatprep.mubr.f32.mxu0 %v806_v12 }
  0x55   : > { %8005 = vmatprep.mubr.f32.mxu1 %v9450_v6 }
  0x57   : > { %7956 = vmatmul.mubr.f32.gmra.mxu0 %v816_v61  ;;  %v12930_v61 = vand.u32 4294901760, %v9108_v21 }
  0x58   : > { %8006 = vmatmul.mubr.f32.gmra.mxu1 %v9468_v52  ;;  %7958 = vmatprep.mubr.f32.mxu0 %v826_v63 }
  0x59   : > { %8008 = vmatprep.mubr.f32.mxu1 %v9475_v13 }
  0x5b   : > { %7959 = vmatmul.mubr.f32.gmra.mxu0 %v836_v54 }
  0x5c   : > { %8009 = vmatmul.mubr.f32.gmra.mxu1 %v9486_v36  ;;  %8013 = vmatprep.mubr.f32.mxu0 %v9104_v19  ;;  %v12933_v19 = vand.u32 4294901760, %v9131_v32 }
  0x5d   : > { %8063 = vmatprep.mubr.f32.mxu1 %v12929_v18 }
  0x5f   : > { %8014 = vmatmul.mubr.f32.vlgmr.msra.gmra.mxu0 %v9108_v21  ;;  %v12934_v21 = vand.u32 4294901760, %v9134_v33 }
  0x60   : > { %8112 = vmatpush3.msra.mxu0 %v9123_v28  ;;  %8064 = vmatmul.mubr.f32.vlgmr.msra.gmra.mxu1 %v12930_v61  ;;  %v12937_v28 = vand.u32 4294901760, %v9214_v14 }
  0x61   : > { %8162 = vmatpush3.msra.mxu1 %v9084_v9  ;;  %8016 = vmatprep.mubr.f32.mxu0 %v9115_v23  ;;  %v12935_v9 = vand.u32 4294901760, %v9152_v42  ;;  %v12936_v23 = vand.u32 4294901760, %v9202_v7 }
  0x62   : > { %8066 = vmatprep.mubr.f32.mxu1 %v12931_v37 }
  0x63   : > { %8017 = vmatmul.mubr.f32.gmra.mxu0 %v9127_v30  ;;  %v12938_v30 = vand.u32 4294901760, %v9217_v16 }
  0x64   : > { %8067 = vmatmul.mubr.f32.gmra.mxu1 %v12932_v27  ;;  %8019 = vmatprep.mubr.f32.mxu0 %v9131_v32  ;;  %v12939_v32 = vand.u32 4294901760, %v9223_v26 }
  0x65   : > { %8069 = vmatprep.mubr.f32.mxu1 %v12933_v19 }
  0x67   : > { %8020 = vmatmul.mubr.f32.gmra.mxu0 %v9134_v33  ;;  %v12940_v33 = vand.u32 4294901760, %v9226_v35 }
  0x68   : > { %8070 = vmatmul.mubr.f32.gmra.mxu1 %v12934_v21  ;;  %8022 = vmatprep.mubr.f32.mxu0 %v9152_v42  ;;  %v12941_v42 = vand.u32 4294901760, %v9244_v48 }
  0x69   : > { %8072 = vmatprep.mubr.f32.mxu1 %v12935_v9 }
  0x6b   : > { %8023 = vmatmul.mubr.f32.gmra.mxu0 %v9202_v7  ;;  %v12942_v7 = vand.u32 4294901760, %v9251_v50 }
  0x6c   : > { %8073 = vmatmul.mubr.f32.gmra.mxu1 %v12936_v23  ;;  %8025 = vmatprep.mubr.f32.mxu0 %v9214_v14  ;;  %v12943_v14 = vand.u32 4294901760, %v9270_v60 }
  0x6d   : > { %8075 = vmatprep.mubr.f32.mxu1 %v12937_v28 }
  0x6f   : > { %8026 = vmatmul.mubr.f32.gmra.mxu0 %v9217_v16  ;;  %v12944_v16 = vand.u32 4294901760, %v9303_v46 }
  0x70   : > { %8076 = vmatmul.mubr.f32.gmra.mxu1 %v12938_v30  ;;  %8028 = vmatprep.mubr.f32.mxu0 %v9223_v26  ;;  %v12945_v26 = vand.u32 4294901760, %v9312_v55 }
  0x71   : > { %8078 = vmatprep.mubr.f32.mxu1 %v12939_v32 }
  0x73   : > { %8029 = vmatmul.mubr.f32.gmra.mxu0 %v9226_v35  ;;  %v12946_v35 = vand.u32 4294901760, %v9329_v17 }
  0x74   : > { %8079 = vmatmul.mubr.f32.gmra.mxu1 %v12940_v33  ;;  %8031 = vmatprep.mubr.f32.mxu0 %v9244_v48  ;;  %v12947_v48 = vand.u32 4294901760, %v9337_v20 }
  0x75   : > { %8081 = vmatprep.mubr.f32.mxu1 %v12941_v42 }
  0x77   : > { %8032 = vmatmul.mubr.f32.gmra.mxu0 %v9251_v50  ;;  %v12949_v50 = vand.u32 4294901760, %v9366_v1 }
  0x78   : > { %8082 = vmatmul.mubr.f32.gmra.mxu1 %v12942_v7  ;;  %8034 = vmatprep.mubr.f32.mxu0 %v9270_v60  ;;  %v12950_v60 = vand.u32 4294901760, %v9374_v31 }
  0x79   : > { %8084 = vmatprep.mubr.f32.mxu1 %v12943_v14 }
  0x7b   : > { %8035 = vmatmul.mubr.f32.gmra.mxu0 %v9303_v46  ;;  %v12948_v46 = vand.u32 4294901760, %v9353_v56 }
  0x7c   : > { %8085 = vmatmul.mubr.f32.gmra.mxu1 %v12944_v16  ;;  %8037 = vmatprep.mubr.f32.mxu0 %v9312_v55  ;;  %v12952_v55 = vand.u32 4294901760, %v9405_v59 }
  0x7d   : > { %8087 = vmatprep.mubr.f32.mxu1 %v12945_v26 }
  0x7f   : > { %8038 = vmatmul.mubr.f32.gmra.mxu0 %v9329_v17  ;;  %v12953_v17 = vand.u32 4294901760, %v9414_v51 }
  0x80   : > { %8088 = vmatmul.mubr.f32.gmra.mxu1 %v12946_v35  ;;  %8040 = vmatprep.mubr.f32.mxu0 %v9337_v20  ;;  %v12951_v20 = vand.u32 4294901760, %v9377_v4 }
  0x81   : > { %8090 = vmatprep.mubr.f32.mxu1 %v12947_v48 }
  0x83   : > { %8041 = vmatmul.mubr.f32.gmra.mxu0 %v9353_v56  ;;  %v12955_v56 = vand.u32 4294901760, %v9448_v44 }
  0x84   : > { %8091 = vmatmul.mubr.f32.gmra.mxu1 %v12948_v46  ;;  %8043 = vmatprep.mubr.f32.mxu0 %v9366_v1  ;;  %v12956_v1 = vand.u32 4294901760, %v9466_v57 }
  0x85   : > { %8093 = vmatprep.mubr.f32.mxu1 %v12949_v50 }
  0x87   : > { %8044 = vmatmul.mubr.f32.gmra.mxu0 %v9374_v31  ;;  %v12954_v31 = vand.u32 4294901760, %v9442_v3 }
  0x88   : > { %8094 = vmatmul.mubr.f32.gmra.mxu1 %v12950_v60  ;;  %8046 = vmatprep.mubr.f32.mxu0 %v9377_v4  ;;  %v12968_v4 = vld [vmem:[#allocation17_spill] sm:$0xff] }
  0x89   : > { %8096 = vmatprep.mubr.f32.mxu1 %v12951_v20 }
  0x8b   : > { %8047 = vmatmul.mubr.f32.gmra.mxu0 %v9405_v59  ;;  %v12969_v59 = vld [vmem:[#allocation18_spill] sm:$0xff] }
  0x8c   : > { %8097 = vmatmul.mubr.f32.gmra.mxu1 %v12952_v55  ;;  %8049 = vmatprep.mubr.f32.mxu0 %v9414_v51  ;;  %v12957_v51 = vand.u32 4294901760, %v9473_v41 }
  0x8d   : > { %8099 = vmatprep.mubr.f32.mxu1 %v12953_v17 }
  0x8f   : > { %8050 = vmatmul.mubr.f32.gmra.mxu0 %v9442_v3  ;;  %v12966_v3 = vld [vmem:[#allocation15_spill] sm:$0xff] }
  0x90   : > { %8100 = vmatmul.mubr.f32.gmra.mxu1 %v12954_v31  ;;  %8052 = vmatprep.mubr.f32.mxu0 %v9448_v44  ;;  %v12970_v44 = vld [vmem:[#allocation19_spill] sm:$0xff] }
  0x91   : > { %8102 = vmatprep.mubr.f32.mxu1 %v12955_v56 }
  0x93   : > { %8053 = vmatmul.mubr.f32.gmra.mxu0 %v9466_v57  ;;  %v12967_v57 = vld [vmem:[#allocation16_spill] sm:$0xff] }
  0x94   : > { %8103 = vmatmul.mubr.f32.gmra.mxu1 %v12956_v1  ;;  %8055 = vmatprep.mubr.f32.mxu0 %v9473_v41  ;;  %v12971_v41 = vld [vmem:[#allocation20_spill] sm:$0xff] }
  0x95   : > { %8105 = vmatprep.mubr.f32.mxu1 %v12957_v51 }
  0x97   : > { %8056 = vmatmul.mubr.f32.gmra.mxu0 %v9484_v49 }
  0x98   : > { %8106 = vmatmul.mubr.f32.gmra.mxu1 %v814_v45  ;;  %8058 = vmatprep.mubr.f32.mxu0 %v9494_v53  ;;  %v12965_v53 = vld [vmem:[#allocation14_spill] sm:$0xff] }
  0x99   : > { %8108 = vmatprep.mubr.f32.mxu1 %v824_v47 }
  0x9b   : > { %8059 = vmatmul.mubr.f32.gmra.mxu0 %v9502_v39 }
  0x9c   : > { %8109 = vmatmul.mubr.f32.gmra.mxu1 %v834_v58  ;;  %8113 = vmatprep.mubr.f32.mxu0 %v9086_v10 }
  0x9d   : > { %8163 = vmatprep.mubr.f32.mxu1 %v9086_v10  ;;  %v12958_v10 = vld [vmem:[#allocation7_spill] sm:$0xff] }
  0x9f   : > { %8114 = vmatmul.mubr.f32.vlgmr.msra.gmra.mxu0 %v9088_v11 }
  0xa0   : > { %8164 = vmatmul.mubr.f32.vlgmr.msra.gmra.mxu1 %v9088_v11  ;;  %8116 = vmatprep.mubr.f32.mxu0 %v9097_v15  ;;  %v12959_v11 = vld [vmem:[#allocation8_spill] sm:$0xff] }
  0xa1   : > { %8166 = vmatprep.mubr.f32.mxu1 %v9097_v15  ;;  %v12960_v15 = vld [vmem:[#allocation9_spill] sm:$0xff] }
  0xa3   : > { %8117 = vmatmul.mubr.f32.gmra.mxu0 %v9111_v22 }
  0xa4   : > { %8167 = vmatmul.mubr.f32.gmra.mxu1 %v9111_v22  ;;  %8119 = vmatprep.mubr.f32.mxu0 %v9117_v24  ;;  %v12961_v22 = vld [vmem:[#allocation10_spill] sm:$0xff] }
  0xa5   : > { %8169 = vmatprep.mubr.f32.mxu1 %v9117_v24  ;;  %v12962_v24 = vld [vmem:[#allocation11_spill] sm:$0xff] }
  0xa7   : > { %8120 = vmatmul.mubr.f32.gmra.mxu0 %v9119_v25 }
  0xa8   : > { %8170 = vmatmul.mubr.f32.gmra.mxu1 %v9119_v25  ;;  %8122 = vmatprep.mubr.f32.mxu0 %v9136_v34  ;;  %v12963_v25 = vld [vmem:[#allocation12_spill] sm:$0xff] }
  0xa9   : > { %8172 = vmatprep.mubr.f32.mxu1 %v9136_v34  ;;  %v12964_v34 = vld [vmem:[#allocation13_spill] sm:$0xff] }
  0xab   : > { %8123 = vmatmul.mubr.f32.gmra.mxu0 %v12958_v10 }
  0xac   : > { %8173 = vmatmul.mubr.f32.gmra.mxu1 %v12958_v10  ;;  %8125 = vmatprep.mubr.f32.mxu0 %v12959_v11 }
  0xad   : > { %8175 = vmatprep.mubr.f32.mxu1 %v12959_v11 }
  0xaf   : > { %8126 = vmatmul.mubr.f32.gmra.mxu0 %v12960_v15 }
  0xb0   : > { %8176 = vmatmul.mubr.f32.gmra.mxu1 %v12960_v15  ;;  %8128 = vmatprep.mubr.f32.mxu0 %v12961_v22 }
  0xb1   : > { %8178 = vmatprep.mubr.f32.mxu1 %v12961_v22 }
  0xb3   : > { %8129 = vmatmul.mubr.f32.gmra.mxu0 %v12962_v24 }
  0xb4   : > { %8179 = vmatmul.mubr.f32.gmra.mxu1 %v12962_v24  ;;  %8131 = vmatprep.mubr.f32.mxu0 %v12963_v25 }
  0xb5   : > { %8181 = vmatprep.mubr.f32.mxu1 %v12963_v25 }
  0xb7   : > { %8132 = vmatmul.mubr.f32.gmra.mxu0 %v12964_v34 }
  0xb8   : > { %8182 = vmatmul.mubr.f32.gmra.mxu1 %v12964_v34  ;;  %8134 = vmatprep.mubr.f32.mxu0 %v12965_v53 }
  0xb9   : > { %8184 = vmatprep.mubr.f32.mxu1 %v12965_v53 }
  0xbb   : > { %8135 = vmatmul.mubr.f32.gmra.mxu0 %v12966_v3 }
  0xbc   : > { %8185 = vmatmul.mubr.f32.gmra.mxu1 %v12966_v3  ;;  %8137 = vmatprep.mubr.f32.mxu0 %v12967_v57 }
  0xbd   : > { %8187 = vmatprep.mubr.f32.mxu1 %v12967_v57 }
  0xbf   : > { %8138 = vmatmul.mubr.f32.gmra.mxu0 %v12968_v4 }
  0xc0   : > { %8188 = vmatmul.mubr.f32.gmra.mxu1 %v12968_v4  ;;  %8140 = vmatprep.mubr.f32.mxu0 %v12969_v59 }
  0xc1   : > { %8190 = vmatprep.mubr.f32.mxu1 %v12969_v59 }
  0xc3   : > { %8141 = vmatmul.mubr.f32.gmra.mxu0 %v12970_v44 }
  0xc4   : > { %8191 = vmatmul.mubr.f32.gmra.mxu1 %v12970_v44  ;;  %8143 = vmatprep.mubr.f32.mxu0 %v12971_v41 }
  0xc5   : > { %8193 = vmatprep.mubr.f32.mxu1 %v12971_v41 }
  0xc7   : > { %8144 = vmatmul.mubr.f32.gmra.mxu0 %v9346_v40 }
  0xc8   : > { %8194 = vmatmul.mubr.f32.gmra.mxu1 %v9346_v40  ;;  %8146 = vmatprep.mubr.f32.mxu0 %v9355_v38 }
  0xc9   : > { %8196 = vmatprep.mubr.f32.mxu1 %v9355_v38 }
  0xcb   : > { %8147 = vmatmul.mubr.f32.gmra.mxu0 %v9379_v5 }
  0xcc   : > { %8197 = vmatmul.mubr.f32.gmra.mxu1 %v9379_v5  ;;  %8149 = vmatprep.mubr.f32.mxu0 %v9389_v62 }
  0xcd   : > { %8199 = vmatprep.mubr.f32.mxu1 %v9389_v62 }
  0xcf   : > { %8150 = vmatmul.mubr.f32.gmra.mxu0 %v9416_v43 }
  0xd0   : > { %8200 = vmatmul.mubr.f32.gmra.mxu1 %v9416_v43  ;;  %8152 = vmatprep.mubr.f32.mxu0 %v9422_v8 }
  0xd1   : > { %8202 = vmatprep.mubr.f32.mxu1 %v9422_v8 }
  0xd3   : > { %8153 = vmatmul.mubr.f32.gmra.mxu0 %v9444_v2 }
  0xd4   : > { %8203 = vmatmul.mubr.f32.gmra.mxu1 %v9444_v2  ;;  %8155 = vmatprep.mubr.f32.mxu0 %v9450_v6 }
  0xd5   : > { %8205 = vmatprep.mubr.f32.mxu1 %v9450_v6 }
  0xd7   : > { %8156 = vmatmul.mubr.f32.gmra.mxu0 %v9468_v52 }
  0xd8   : > { %8206 = vmatmul.mubr.f32.gmra.mxu1 %v9468_v52  ;;  %8158 = vmatprep.mubr.f32.mxu0 %v9475_v13 }
  0xd9   : > { %8208 = vmatprep.mubr.f32.mxu1 %v9475_v13 }
  0xdb   : > { %8159 = vmatmul.mubr.f32.gmra.mxu0 %v9486_v36 }
  0xdc   : > { %8209 = vmatmul.mubr.f32.gmra.mxu1 %v9486_v36 }
  0xdf   : > { %v7915_v38 = vpop.f32.mrf.mxu0  ;;  %v7965_v40 = vpop.f32.mrf.mxu1 }
  0xe0   : > { %v9689_v8 = vadd.f32 %v7965_v40, %v7915_v38 }
  0xe1   : > { %v528_v2 = vpop.f32.mrf.mxu0  ;;  %v914_v43 = vpop.f32.mrf.mxu1 }
  0xe2   : > { %v9691_v5 = vadd.f32 %v914_v43, %v528_v2 }
  0xe3   : > { %v7918_v6 = vpop.f32.mrf.mxu0 }
  0xe4   : > { %v7968_v62 = vpop.f32.mrf.mxu1 }
  0xe5   : > { %v9693_v49 = vadd.f32 %v7968_v62, %v7918_v6  ;;  %v548_v52 = vpop.f32.mrf.mxu0 }
  0xe6   : > { %v926_v45 = vpop.f32.mrf.mxu1 }
  0xe7   : > { %v9695_v39 = vadd.f32 %v926_v45, %v548_v52  ;;  %v7921_v13 = vpop.f32.mrf.mxu0 }
  0xe8   : > { %v7971_v47 = vpop.f32.mrf.mxu1 }
  0xe9   : > { %v9697_v58 = vadd.f32 %v7971_v47, %v7921_v13  ;;  %v568_v36 = vpop.f32.mrf.mxu0 }
  0xea   : > { %v938_v12 = vpop.f32.mrf.mxu1 }
  0xeb   : > { %v9699_v0 = vadd.f32 %v938_v12, %v568_v36  ;;  %v7924_v29 = vpop.f32.mrf.mxu0 }
  0xec   : > { %v7974_v63 = vpop.f32.mrf.mxu1 }
  0xed   : > { %v9701_v54 = vadd.f32 %v7974_v63, %v7924_v29  ;;  %v588_v18 = vpop.f32.mrf.mxu0 }
  0xee   : > { %v950_v61 = vpop.f32.mrf.mxu1 }
  0xef   : > { %v9703_v37 = vadd.f32 %v950_v61, %v588_v18  ;;  %v7927_v27 = vpop.f32.mrf.mxu0 }
  0xf0   : > { %v7977_v19 = vpop.f32.mrf.mxu1 }
  0xf1   : > { %v9705_v21 = vadd.f32 %v7977_v19, %v7927_v27  ;;  %v608_v9 = vpop.f32.mrf.mxu0 }
  0xf2   : > { %v962_v23 = vpop.f32.mrf.mxu1 }
  0xf3   : > { %v9707_v28 = vadd.f32 %v962_v23, %v608_v9  ;;  %v7930_v30 = vpop.f32.mrf.mxu0 }
  0xf4   : > { %v7980_v32 = vpop.f32.mrf.mxu1 }
  0xf5   : > { %v9709_v33 = vadd.f32 %v7980_v32, %v7930_v30  ;;  %v628_v42 = vpop.f32.mrf.mxu0 }
  0xf6   : > { %v974_v7 = vpop.f32.mrf.mxu1 }
  0xf7   : > { %v9711_v14 = vadd.f32 %v974_v7, %v628_v42  ;;  %v7933_v16 = vpop.f32.mrf.mxu0 }
  0xf8   : > { %v7983_v26 = vpop.f32.mrf.mxu1 }
  0xf9   : > { %v9713_v35 = vadd.f32 %v7983_v26, %v7933_v16  ;;  %v648_v48 = vpop.f32.mrf.mxu0 }
  0xfa   : > { %v986_v46 = vpop.f32.mrf.mxu1 }
  0xfb   : > { %v9715_v50 = vadd.f32 %v986_v46, %v648_v48  ;;  %v7936_v60 = vpop.f32.mrf.mxu0 }
  0xfc   : > { %v7986_v20 = vpop.f32.mrf.mxu1 }
  0xfd   : > { %v9717_v55 = vadd.f32 %v7986_v20, %v7936_v60  ;;  %v668_v17 = vpop.f32.mrf.mxu0 }
  0xfe   : > { %v998_v31 = vpop.f32.mrf.mxu1 }
  0xff   : > { %v9719_v56 = vadd.f32 %v998_v31, %v668_v17  ;;  %v7939_v1 = vpop.f32.mrf.mxu0 }
 0x100   : > { %v7989_v51 = vpop.f32.mrf.mxu1 }
 0x101   : > { %v9721_v10 = vadd.f32 %v7989_v51, %v7939_v1  ;;  %v688_v11 = vpop.f32.mrf.mxu0 }
 0x102   : > { %v1010_v15 = vpop.f32.mrf.mxu1 }
 0x103   : > { %v9723_v22 = vadd.f32 %v1010_v15, %v688_v11  ;;  %v7942_v24 = vpop.f32.mrf.mxu0 }
 0x104   : > { %v7992_v25 = vpop.f32.mrf.mxu1 }
 0x105   : > { %v9725_v34 = vadd.f32 %v7992_v25, %v7942_v24  ;;  %v708_v53 = vpop.f32.mrf.mxu0 }
 0x106   : > { %v1022_v3 = vpop.f32.mrf.mxu1 }
 0x107   : > { %12972 = vst [vmem:[#allocation7_spill] sm:$0xff] %v9725_v34  ;;  %v9727_v57 = vadd.f32 %v1022_v3, %v708_v53  ;;  %v7945_v4 = vpop.f32.mrf.mxu0 }
 0x108   : > { %v7995_v59 = vpop.f32.mrf.mxu1 }
 0x109   : > { %12973 = vst [vmem:[#allocation8_spill] sm:$0xff] %v9727_v57  ;;  %v9729_v44 = vadd.f32 %v7995_v59, %v7945_v4  ;;  %v728_v41 = vpop.f32.mrf.mxu0 }
 0x10a   : > { %v1034_v38 = vpop.f32.mrf.mxu1 }
 0x10b   : > { %12974 = vst [vmem:[#allocation9_spill] sm:$0xff] %v9729_v44  ;;  %v9731_v40 = vadd.f32 %v1034_v38, %v728_v41  ;;  %v7948_v2 = vpop.f32.mrf.mxu0 }
 0x10c   : > { %v7998_v43 = vpop.f32.mrf.mxu1 }
 0x10d   : > { %12975 = vst [vmem:[#allocation10_spill] sm:$0xff] %v9731_v40  ;;  %v9733_v6 = vadd.f32 %v7998_v43, %v7948_v2  ;;  %v748_v62 = vpop.f32.mrf.mxu0 }
 0x10e   : > { %v1046_v52 = vpop.f32.mrf.mxu1 }
 0x10f   : > { %12976 = vst [vmem:[#allocation11_spill] sm:$0xff] %v9733_v6  ;;  %v9735_v45 = vadd.f32 %v1046_v52, %v748_v62  ;;  %v7951_v13 = vpop.f32.mrf.mxu0 }
 0x110   : > { %v8001_v47 = vpop.f32.mrf.mxu1 }
 0x111   : > { %12977 = vst [vmem:[#allocation12_spill] sm:$0xff] %v9735_v45  ;;  %v9737_v36 = vadd.f32 %v8001_v47, %v7951_v13  ;;  %v768_v12 = vpop.f32.mrf.mxu0 }
 0x112   : > { %v1058_v29 = vpop.f32.mrf.mxu1 }
 0x113   : > { %12978 = vst [vmem:[#allocation13_spill] sm:$0xff] %v9737_v36  ;;  %v9739_v63 = vadd.f32 %v1058_v29, %v768_v12  ;;  %v7954_v18 = vpop.f32.mrf.mxu0 }
 0x114   : > { %v8004_v61 = vpop.f32.mrf.mxu1 }
 0x115   : > { %12979 = vst [vmem:[#allocation14_spill] sm:$0xff] %v9739_v63  ;;  %v9741_v27 = vadd.f32 %v8004_v61, %v7954_v18  ;;  %v788_v19 = vpop.f32.mrf.mxu0 }
 0x116   : > { %v1070_v9 = vpop.f32.mrf.mxu1 }
 0x117   : > { %12980 = vst [vmem:[#allocation15_spill] sm:$0xff] %v9741_v27  ;;  %v9743_v23 = vadd.f32 %v1070_v9, %v788_v19  ;;  %v7957_v30 = vpop.f32.mrf.mxu0 }
 0x118   : > { %v8007_v32 = vpop.f32.mrf.mxu1 }
 0x119   : > { %12981 = vst [vmem:[#allocation16_spill] sm:$0xff] %v9743_v23  ;;  %v9745_v42 = vadd.f32 %v8007_v32, %v7957_v30  ;;  %v808_v7 = vpop.f32.mrf.mxu0  ;;  %v9001_v30 = vmov 0.0  }
 0x11a   : > { %v1082_v16 = vpop.f32.mrf.mxu1  ;;  %2347 = vst.msk [vmem:[#allocation3 + $0x1] sm:$0x3] %vm2346_vm2, %v9001_v30 }
 0x11b   : > { %12982 = vst [vmem:[#allocation17_spill] sm:$0xff] %v9745_v42  ;;  %v9747_v26 = vadd.f32 %v1082_v16, %v808_v7  ;;  %v7960_v48 = vpop.f32.mrf.mxu0 }
 0x11c   : > { %v8010_v46 = vpop.f32.mrf.mxu1 }
 0x11d   : > { %12983 = vst [vmem:[#allocation18_spill] sm:$0xff] %v9747_v26  ;;  %v9749_v60 = vadd.f32 %v8010_v46, %v7960_v48  ;;  %v828_v20 = vpop.f32.mrf.mxu0 }
 0x11e   : > { %v1094_v17 = vpop.f32.mrf.mxu1 }
 0x11f   : > { %12984 = vst [vmem:[#allocation19_spill] sm:$0xff] %v9749_v60  ;;  %v9751_v31 = vadd.f32 %v1094_v17, %v828_v20  ;;  %v8015_v1 = vpop.f32.mrf.mxu0 }
 0x120   : > { %v9753_v51 = vpop.f32.mrf.mxu1 }
 0x121   : > { %12985 = vst [vmem:[#allocation20_spill] sm:$0xff] %v9751_v31  ;;  %v9755_v11 = vpop.f32.mrf.mxu0 }
 0x122   : > { %v9757_v15 = vpop.f32.mrf.mxu1 }
 0x123   : > { %v9759_v24 = vpop.f32.mrf.mxu0 }
 0x124   : > { %v9761_v25 = vpop.f32.mrf.mxu1 }
 0x125   : > { %v9763_v53 = vpop.f32.mrf.mxu0 }
 0x126   : > { %v9765_v3 = vpop.f32.mrf.mxu1 }
 0x127   : > { %v9767_v4 = vpop.f32.mrf.mxu0 }
 0x128   : > { %v9769_v59 = vpop.f32.mrf.mxu1 }
 0x129   : > { %v9771_v41 = vpop.f32.mrf.mxu0 }
 0x12a   : > { %v9773_v38 = vpop.f32.mrf.mxu1 }
 0x12b   : > { %v9775_v2 = vpop.f32.mrf.mxu0 }
 0x12c   : > { %v9777_v43 = vpop.f32.mrf.mxu1 }
 0x12d   : > { %v9779_v62 = vpop.f32.mrf.mxu0 }
 0x12e   : > { %v9781_v52 = vpop.f32.mrf.mxu1 }
 0x12f   : > { %v9783_v13 = vpop.f32.mrf.mxu0 }
 0x130   : > { %v9785_v47 = vpop.f32.mrf.mxu1 }
 0x131   : > { %v9787_v12 = vpop.f32.mrf.mxu0 }
 0x132   : > { %v9789_v29 = vpop.f32.mrf.mxu1 }
 0x133   : > { %v9791_v18 = vpop.f32.mrf.mxu0 }
 0x134   : > { %v9793_v61 = vpop.f32.mrf.mxu1 }
 0x135   : > { %v9795_v19 = vpop.f32.mrf.mxu0 }
 0x136   : > { %v9797_v9 = vpop.f32.mrf.mxu1 }
 0x137   : > { %v9799_v32 = vpop.f32.mrf.mxu0 }
 0x138   : > { %v9801_v7 = vpop.f32.mrf.mxu1 }
 0x139   : > { %v9803_v16 = vpop.f32.mrf.mxu0 }
 0x13a   : > { %v9805_v48 = vpop.f32.mrf.mxu1 }
 0x13b   : > { %v9807_v46 = vpop.f32.mrf.mxu0 }
 0x13c   : > { %v9809_v20 = vpop.f32.mrf.mxu1 }
 0x13d   : > { %v9811_v17 = vpop.f32.mrf.mxu0 }
 0x13e   : > { %v9813_v31 = vpop.f32.mrf.mxu1 }
 0x13f   : > { %v9815_v60 = vpop.f32.mrf.mxu0 }
 0x140   : > { %v9817_v26 = vpop.f32.mrf.mxu1 }
 0x141   : > { %v9819_v30 = vpop.f32.mrf.mxu0 }
 0x142   : > { %v9821_v42 = vpop.f32.mrf.mxu1 }
 0x143   : > { %12986 = vst [vmem:[#allocation21_spill] sm:$0xff] %v9821_v42  ;;  %v9823_v23 = vpop.f32.mrf.mxu0 }
 0x144   : > { %12987 = vst [vmem:[#allocation22_spill] sm:$0xff] %v9823_v23  ;;  %v9825_v27 = vpop.f32.mrf.mxu1 }
 0x145   : > { %12988 = vst [vmem:[#allocation23_spill] sm:$0xff] %v9825_v27  ;;  %v9827_v63 = vpop.f32.mrf.mxu0 }
 0x146   : > { %12989 = vst [vmem:[#allocation24_spill] sm:$0xff] %v9827_v63  ;;  %v9829_v36 = vpop.f32.mrf.mxu1 }
 0x147   : > { %12990 = vst [vmem:[#allocation25_spill] sm:$0xff] %v9829_v36  ;;  %v9831_v45 = vpop.f32.mrf.mxu0 }
 0x148   : > { %12991 = vst [vmem:[#allocation26_spill] sm:$0xff] %v9831_v45  ;;  %v9833_v6 = vpop.f32.mrf.mxu1 }
 0x149   : > { %12992 = vst [vmem:[#allocation27_spill] sm:$0xff] %v9833_v6  ;;  %v9835_v40 = vpop.f32.mrf.mxu0 }
 0x14a   : > { %12993 = vst [vmem:[#allocation28_spill] sm:$0xff] %v9835_v40  ;;  %v9837_v44 = vpop.f32.mrf.mxu1 }
 0x14b   : > { %12994 = vst [vmem:[#allocation29_spill] sm:$0xff] %v9837_v44  ;;  %v9839_v57 = vpop.f32.mrf.mxu0 }
 0x14c   : > { %12995 = vst [vmem:[#allocation30_spill] sm:$0xff] %v9839_v57  ;;  %v9841_v34 = vpop.f32.mrf.mxu1 }
 0x14d   : > { %12996 = vst [vmem:[#allocation31_spill] sm:$0xff] %v9841_v34  ;;  %v9843_v42 = vpop.f32.mrf.mxu0 }
 0x14e   : > { %12997 = vst [vmem:[#allocation32_spill] sm:$0xff] %v9843_v42  ;;  %v9845_v23 = vpop.f32.mrf.mxu1 }
 0x14f   : > { %12998 = vst [vmem:[#allocation33_spill] sm:$0xff] %v9845_v23  ;;  %v9847_v27 = vpop.f32.mrf.mxu0 }
 0x150   : > { %12999 = vst [vmem:[#allocation34_spill] sm:$0xff] %v9847_v27  ;;  %v9849_v63 = vpop.f32.mrf.mxu1 }
 0x151   : > { %13000 = vst [vmem:[#allocation35_spill] sm:$0xff] %v9849_v63  ;;  %v9851_v36 = vpop.f32.mrf.mxu0  ;;  %v1182_v63 = vadd.f32 %v8015_v1, %v9689_v8  ;;  %v1189_v1 = vadd.f32 %v9763_v53, %v9695_v39 }
 0x152   : > { %13001 = vst [vmem:[#allocation36_spill] sm:$0xff] %v9851_v36  ;;  %v9853_v45 = vpop.f32.mrf.mxu1 }
 0x153   : > { %13002 = vst [vmem:[#allocation37_spill] sm:$0xff] %v9853_v45  ;;  %v9855_v6 = vpop.f32.mrf.mxu0  ;;  %v1175_v45 = vadd.f32 %v9755_v11, %v9691_v5  ;;  %v1210_v5 = vadd.f32 %v9767_v4, %v9697_v58 }
 0x154   : > { %v9857_v40 = vpop.f32.mrf.mxu1 }
 0x155   : > { %13003 = vst [vmem:[#allocation38_spill] sm:$0xff] %v9857_v40  ;;  %v9859_v44 = vpop.f32.mrf.mxu0  ;;  %v1466_v8 = vadd.f32 %v9757_v15, %v1175_v45  ;;  %v1482_v15 = vadd.f32 %v9765_v3, %v1189_v1  ;;  %v1238_v1 = vadd.f32 %v9783_v13, %v9705_v21 }
 0x156   : > { %13004 = vst [vmem:[#allocation39_spill] sm:$0xff] %v9859_v44  ;;  %v9861_v57 = vpop.f32.mrf.mxu1 }
 0x157   : > { %13005 = vst [vmem:[#allocation40_spill] sm:$0xff] %v9861_v57  ;;  %v9863_v34 = vpop.f32.mrf.mxu0  ;;  %v1474_v57 = vadd.f32 %v9753_v51, %v1182_v63 }
 0x158   : > { %13006 = vst [vmem:[#allocation41_spill] sm:$0xff] %v9863_v34  ;;  %v9865_v42 = vpop.f32.mrf.mxu1 }
 0x159   : > { %13007 = vst [vmem:[#allocation42_spill] sm:$0xff] %v9865_v42  ;;  %v9867_v23 = vpop.f32.mrf.mxu0  ;;  %v1196_v42 = vadd.f32 %v9759_v24, %v9693_v49 }
 0x15a   : > { %13008 = vst [vmem:[#allocation43_spill] sm:$0xff] %v9867_v23  ;;  %v9870_v27 = vpop.f32.mrf.mxu1 }
 0x15b   : > { %13009 = vst [vmem:[#allocation44_spill] sm:$0xff] %v9870_v27  ;;  %v9872_v36 = vpop.f32.mrf.mxu0  ;;  %v1490_v63 = vadd.f32 %v9761_v25, %v1196_v42 }
 0x15c   : > { %13010 = vst [vmem:[#allocation45_spill] sm:$0xff] %v9872_v36  ;;  %v9876_v40 = vpop.f32.mrf.mxu1 }
 0x15d   : > { %v9878_v44 = vpop.f32.mrf.mxu0 }
 0x15e   : > { %v9883_v34 = vpop.f32.mrf.mxu1 }
 0x15f   : > { %13011 = vst [vmem:[#allocation46_spill] sm:$0xff] %v9883_v34  ;;  %v8115_v23 = vpop.f32.mrf.mxu0  ;;  %v1203_v34 = vadd.f32 %v9771_v41, %v9699_v0 }
 0x160   : > { %v1794_v27 = vadd.f32 %v8115_v23, %v1474_v57  ;;  %v8165_v36 = vpop.f32.mrf.mxu1  ;;  %v1506_v23 = vadd.f32 %v9769_v59, %v1210_v5  ;;  %v1217_v59 = vadd.f32 %v9779_v62, %v9703_v37 }
 0x161   : > { %v1787_v11 = vpop.f32.mrf.mxu0  ;;  %v1498_v3 = vadd.f32 %v9773_v38, %v1203_v34 }
 0x162   : > { %v9891_v51 = vadd.f32 %v8165_v36, %v1794_v27  ;;  %v1788_v49 = vadd.f32 %v1787_v11, %v1466_v8  ;;  %v2045_v24 = vpop.f32.mrf.mxu1  ;;  %v1224_v36 = vadd.f32 %v9775_v2, %v9701_v54  ;;  %v1514_v21 = vadd.f32 %v9781_v52, %v1217_v59 }
 0x163   : > { %v8118_v45 = vpop.f32.mrf.mxu0 }
 0x164   : > { %2239 = vst.msk [vmem:[#allocation2 + $0x8] sm:$0xff] %vm2237_vm3, %v9891_v51  ;;  %v9898_v39 = vadd.f32 %v2045_v24, %v1788_v49  ;;  %v1806_v58 = vadd.f32 %v8118_v45, %v1490_v63  ;;  %v8168_v57 = vpop.f32.mrf.mxu1  ;;  %v2275_v41 = vsel %vm2237_vm3, %v9891_v51, 0.0  ;;  %v1522_v34 = vadd.f32 %v9777_v43, %v1224_v36 }
 0x165   : > { %v1799_v42 = vpop.f32.mrf.mxu0  ;;  %v1231_v49 = vadd.f32 %v9787_v12, %v9707_v28  ;;  %v1252_v28 = vadd.f32 %v9791_v18, %v9709_v33 }
 0x166   : > { %2238 = vst.msk [vmem:[#allocation2] sm:$0xff] %vm2237_vm3, %v9898_v39  ;;  %v2274_v0 = vsel %vm2237_vm3, %v9898_v39, 0.0  ;;  %v9907_v27 = vadd.f32 %v8168_v57, %v1806_v58  ;;  %v1800_v25 = vadd.f32 %v1799_v42, %v1482_v15  ;;  %v2057_v53 = vpop.f32.mrf.mxu1  ;;  %v1538_v57 = vadd.f32 %v9785_v47, %v1238_v1 }
 0x167   : > { %v8121_v4 = vpop.f32.mrf.mxu0  ;;  %v2276_v5 = vadd.f32 %v2275_v41, %v2274_v0  ;;  %v1245_v47 = vadd.f32 %v9795_v19, %v9711_v14  ;;  %v1266_v41 = vadd.f32 %v9799_v32, %v9713_v35 }
 0x168   : > { %2241 = vst.msk [vmem:[#allocation2 + $0x18] sm:$0xff] %vm2237_vm3, %v9907_v27  ;;  %v9916_v54 = vadd.f32 %v2057_v53, %v1800_v25  ;;  %v1818_v2 = vadd.f32 %v8121_v4, %v1506_v23  ;;  %v8171_v8 = vpop.f32.mrf.mxu1  ;;  %v2279_v43 = vsel %vm2237_vm3, %v9907_v27, 0.0  ;;  %v1530_v25 = vadd.f32 %v9789_v29, %v1231_v49 }
 0x169   : > { %v1811_v11 = vpop.f32.mrf.mxu0  ;;  %v1546_v35 = vadd.f32 %v9797_v9, %v1245_v47  ;;  %v1570_v49 = vadd.f32 %v9801_v7, %v1266_v41  ;;  %v1273_v7 = vadd.f32 %v9811_v17, %v9719_v56 }
 0x16a   : > { %2240 = vst.msk [vmem:[#allocation2 + $0x10] sm:$0xff] %vm2237_vm3, %v9916_v54  ;;  %v2277_v37 = vsel %vm2237_vm3, %v9916_v54, 0.0  ;;  %v9925_v38 = vadd.f32 %v8171_v8, %v1818_v2  ;;  %v1812_v62 = vadd.f32 %v1811_v11, %v1498_v3  ;;  %v2069_v63 = vpop.f32.mrf.mxu1  ;;  %v1554_v8 = vadd.f32 %v9793_v61, %v1252_v28 }
 0x16b   : > { %v2278_v24 = vadd.f32 %v2277_v37, %v2276_v5  ;;  %v8124_v45 = vpop.f32.mrf.mxu0  ;;  %v1259_v11 = vadd.f32 %v9803_v16, %v9715_v50  ;;  %v1280_v50 = vadd.f32 %v9807_v46, %v9717_v55  ;;  %v1294_v28 = vadd.f32 %v9815_v60, %v9721_v10 }
 0x16c   : > { %2243 = vst.msk [vmem:[#allocation2 + $0x28] sm:$0xff] %vm2237_vm3, %v9925_v38  ;;  %v9934_v13 = vadd.f32 %v2069_v63, %v1812_v62  ;;  %v1830_v15 = vadd.f32 %v8124_v45, %v1522_v34  ;;  %v8174_v58 = vpop.f32.mrf.mxu1  ;;  %v2283_v33 = vsel %vm2237_vm3, %v9925_v38, 0.0  ;;  %v1578_v10 = vadd.f32 %v9813_v31, %v1273_v7 }
 0x16d   : > { %v2280_v23 = vadd.f32 %v2279_v43, %v2278_v24  ;;  %v1823_v42 = vpop.f32.mrf.mxu0 }
 0x16e   : > { %2242 = vst.msk [vmem:[#allocation2 + $0x20] sm:$0xff] %vm2237_vm3, %v9934_v13  ;;  %v2281_v52 = vsel %vm2237_vm3, %v9934_v13, 0.0  ;;  %v9943_v12 = vadd.f32 %v8174_v58, %v1830_v15  ;;  %v1824_v36 = vadd.f32 %v1823_v42, %v1514_v21  ;;  %v2081_v0 = vpop.f32.mrf.mxu1  ;;  %v1562_v15 = vadd.f32 %v9805_v48, %v1259_v11 }
 0x16f   : > { %v2282_v53 = vadd.f32 %v2281_v52, %v2280_v23  ;;  %v8127_v3 = vpop.f32.mrf.mxu0 }
 0x170   : > { %2245 = vst.msk [vmem:[#allocation2 + $0x38] sm:$0xff] %vm2237_vm3, %v9943_v12  ;;  %v9952_v18 = vadd.f32 %v2081_v0, %v1824_v36  ;;  %v1842_v4 = vadd.f32 %v8127_v3, %v1538_v57  ;;  %v8177_v59 = vpop.f32.mrf.mxu1  ;;  %v2287_v61 = vsel %vm2237_vm3, %v9943_v12, 0.0  ;;  %v1586_v36 = vadd.f32 %v9809_v20, %v1280_v50  ;;  %v13018_v50 = vld [vmem:[#allocation26_spill] sm:$0xff] }
 0x171   : > { %v2284_v2 = vadd.f32 %v2283_v33, %v2282_v53  ;;  %v1835_v29 = vpop.f32.mrf.mxu0  ;;  %v1287_v53 = vadd.f32 %v9819_v30, %v9723_v22  ;;  %v13013_v22 = vld [vmem:[#allocation22_spill] sm:$0xff] }
 0x172   : > { %2244 = vst.msk [vmem:[#allocation2 + $0x30] sm:$0xff] %vm2237_vm3, %v9952_v18  ;;  %v2285_v14 = vsel %vm2237_vm3, %v9952_v18, 0.0  ;;  %v9961_v19 = vadd.f32 %v8177_v59, %v1842_v4  ;;  %v1836_v1 = vadd.f32 %v1835_v29, %v1530_v25  ;;  %v2093_v5 = vpop.f32.mrf.mxu1  ;;  %v1602_v59 = vadd.f32 %v9817_v26, %v1294_v28  ;;  %v13012_v29 = vld [vmem:[#allocation7_spill] sm:$0xff]  ;;  %v13015_v26 = vld [vmem:[#allocation8_spill] sm:$0xff] }
 0x173   : > { %v2286_v34 = vadd.f32 %v2285_v14, %v2284_v2  ;;  %v8130_v37 = vpop.f32.mrf.mxu0  ;;  %v1308_v30 = vadd.f32 %v13013_v22, %v13012_v29  ;;  %v13021_v28 = vld [vmem:[#allocation28_spill] sm:$0xff] }
 0x174   : > { %2247 = vst.msk [vmem:[#allocation2 + $0x48] sm:$0xff] %vm2237_vm3, %v9961_v19  ;;  %v9970_v32 = vadd.f32 %v2093_v5, %v1836_v1  ;;  %v1854_v62 = vadd.f32 %v8130_v37, %v1554_v8  ;;  %v8180_v63 = vpop.f32.mrf.mxu1  ;;  %v2291_v55 = vsel %vm2237_vm3, %v9961_v19, 0.0  ;;  %v13014_v5 = vld [vmem:[#allocation21_spill] sm:$0xff] }
 0x175   : > { %v2288_v24 = vadd.f32 %v2287_v61, %v2286_v34  ;;  %v1847_v45 = vpop.f32.mrf.mxu0  ;;  %v1594_v11 = vadd.f32 %v13014_v5, %v1287_v53 }
 0x176   : > { %2246 = vst.msk [vmem:[#allocation2 + $0x40] sm:$0xff] %vm2237_vm3, %v9970_v32  ;;  %v2289_v9 = vsel %vm2237_vm3, %v9970_v32, 0.0  ;;  %v9979_v16 = vadd.f32 %v8180_v63, %v1854_v62  ;;  %v1848_v21 = vadd.f32 %v1847_v45, %v1546_v35  ;;  %v2105_v43 = vpop.f32.mrf.mxu1  ;;  %v13016_v35 = vld [vmem:[#allocation24_spill] sm:$0xff]  ;;  %v13017_v45 = vld [vmem:[#allocation9_spill] sm:$0xff] }
 0x177   : > { %v2290_v58 = vadd.f32 %v2289_v9, %v2288_v24  ;;  %v8133_v57 = vpop.f32.mrf.mxu0  ;;  %v1301_v61 = vadd.f32 %v13016_v35, %v13015_v26  ;;  %v1322_v9 = vadd.f32 %v13018_v50, %v13017_v45  ;;  %v13030_v45 = vld [vmem:[#allocation34_spill] sm:$0xff] }
 0x178   : > { %2249 = vst.msk [vmem:[#allocation2 + $0x58] sm:$0xff] %vm2237_vm3, %v9979_v16  ;;  %v9988_v46 = vadd.f32 %v2105_v43, %v1848_v21  ;;  %v1866_v23 = vadd.f32 %v8133_v57, %v1570_v49  ;;  %v8183_v42 = vpop.f32.mrf.mxu1  ;;  %v2295_v60 = vsel %vm2237_vm3, %v9979_v16, 0.0 }
 0x179   : > { %v2292_v52 = vadd.f32 %v2291_v55, %v2290_v58  ;;  %v1859_v48 = vpop.f32.mrf.mxu0 }
 0x17a   : > { %2248 = vst.msk [vmem:[#allocation2 + $0x50] sm:$0xff] %vm2237_vm3, %v9988_v46  ;;  %v2293_v56 = vsel %vm2237_vm3, %v9988_v46, 0.0  ;;  %v9997_v17 = vadd.f32 %v8183_v42, %v1866_v23  ;;  %v1860_v0 = vadd.f32 %v1859_v48, %v1562_v15  ;;  %v2117_v25 = vpop.f32.mrf.mxu1  ;;  %v13019_v15 = vld [vmem:[#allocation23_spill] sm:$0xff]  ;;  %v13020_v42 = vld [vmem:[#allocation10_spill] sm:$0xff] }
 0x17b   : > { %v2294_v3 = vadd.f32 %v2293_v56, %v2292_v52  ;;  %v8136_v47 = vpop.f32.mrf.mxu0  ;;  %v1618_v58 = vadd.f32 %v13019_v15, %v1308_v30  ;;  %v1315_v52 = vadd.f32 %v13021_v28, %v13020_v42  ;;  %v13022_v56 = vld [vmem:[#allocation25_spill] sm:$0xff]  ;;  %v13032_v42 = vld [vmem:[#allocation14_spill] sm:$0xff]  ;;  %v13033_v28 = vld [vmem:[#allocation36_spill] sm:$0xff] }
 0x17c   : > { %2251 = vst.msk [vmem:[#allocation2 + $0x68] sm:$0xff] %vm2237_vm3, %v9997_v17  ;;  %v10006_v20 = vadd.f32 %v2117_v25, %v1860_v0  ;;  %v1878_v33 = vadd.f32 %v8136_v47, %v1586_v36  ;;  %v8186_v4 = vpop.f32.mrf.mxu1  ;;  %v2299_v62 = vsel %vm2237_vm3, %v9997_v17, 0.0  ;;  %v1610_v0 = vadd.f32 %v13022_v56, %v1301_v61  ;;  %v13034_v56 = vld [vmem:[#allocation33_spill] sm:$0xff] }
 0x17d   : > { %v2296_v41 = vadd.f32 %v2295_v60, %v2294_v3  ;;  %v1871_v2 = vpop.f32.mrf.mxu0 }
 0x17e   : > { %2250 = vst.msk [vmem:[#allocation2 + $0x60] sm:$0xff] %vm2237_vm3, %v10006_v20  ;;  %v2297_v31 = vsel %vm2237_vm3, %v10006_v20, 0.0  ;;  %v10015_v8 = vadd.f32 %v8186_v4, %v1878_v33  ;;  %v1872_v14 = vadd.f32 %v1871_v2, %v1578_v10  ;;  %v2129_v1 = vpop.f32.mrf.mxu1  ;;  %v13023_v10 = vld [vmem:[#allocation27_spill] sm:$0xff] }
 0x17f   : > { %v2298_v34 = vadd.f32 %v2297_v31, %v2296_v41  ;;  %v8139_v37 = vpop.f32.mrf.mxu0  ;;  %v1634_v60 = vadd.f32 %v13023_v10, %v1322_v9  ;;  %v13025_v41 = vld [vmem:[#allocation30_spill] sm:$0xff] }
 0x180   : > { %2253 = vst.msk [vmem:[#allocation2 + $0x78] sm:$0xff] %vm2237_vm3, %v10015_v8  ;;  %v10024_v63 = vadd.f32 %v2129_v1, %v1872_v14  ;;  %v1890_v49 = vadd.f32 %v8139_v37, %v1602_v59  ;;  %v8189_v24 = vpop.f32.mrf.mxu1  ;;  %v2303_v25 = vsel %vm2237_vm3, %v10015_v8, 0.0  ;;  %v13024_v59 = vld [vmem:[#allocation11_spill] sm:$0xff]  ;;  %v13026_v14 = vld [vmem:[#allocation29_spill] sm:$0xff]  ;;  %v13028_v37 = vld [vmem:[#allocation32_spill] sm:$0xff] }
 0x181   : > { %v2300_v21 = vadd.f32 %v2299_v62, %v2298_v34  ;;  %v1883_v43 = vpop.f32.mrf.mxu0  ;;  %v1336_v2 = vadd.f32 %v13025_v41, %v13024_v59  ;;  %v1626_v1 = vadd.f32 %v13026_v14, %v1315_v52  ;;  %v13027_v34 = vld [vmem:[#allocation12_spill] sm:$0xff]  ;;  %v1343_v52 = vadd.f32 %v13033_v28, %v13032_v42  ;;  %v13036_v41 = vld [vmem:[#allocation15_spill] sm:$0xff] }
 0x182   : > { %2252 = vst.msk [vmem:[#allocation2 + $0x70] sm:$0xff] %vm2237_vm3, %v10024_v63  ;;  %v2301_v57 = vsel %vm2237_vm3, %v10024_v63, 0.0  ;;  %v10033_v7 = vadd.f32 %v8189_v24, %v1890_v49  ;;  %v1884_v55 = vadd.f32 %v1883_v43, %v1594_v11  ;;  %v2141_v23 = vpop.f32.mrf.mxu1  ;;  %v1329_v26 = vadd.f32 %v13028_v37, %v13027_v34  ;;  %v13029_v24 = vld [vmem:[#allocation13_spill] sm:$0xff]  ;;  %v13031_v43 = vld [vmem:[#allocation31_spill] sm:$0xff]  ;;  %v13038_v37 = vld [vmem:[#allocation16_spill] sm:$0xff] }
 0x183   : > { %v2302_v48 = vadd.f32 %v2301_v57, %v2300_v21  ;;  %v8142_v36 = vpop.f32.mrf.mxu0  ;;  %v1350_v50 = vadd.f32 %v13030_v45, %v13029_v24  ;;  %v1650_v15 = vadd.f32 %v13031_v43, %v1336_v2  ;;  %v1364_v2 = vadd.f32 %v9855_v6, %v13036_v41  ;;  %v13040_v45 = vld [vmem:[#allocation17_spill] sm:$0xff] }
 0x184   : > { %2255 = vst.msk [vmem:[#allocation2 + $0x88] sm:$0xff] %vm2237_vm3, %v10033_v7  ;;  %v10042_v53 = vadd.f32 %v2141_v23, %v1884_v55  ;;  %v1902_v3 = vadd.f32 %v8142_v36, %v1618_v58  ;;  %v8192_v47 = vpop.f32.mrf.mxu1  ;;  %v2307_v35 = vsel %vm2237_vm3, %v10033_v7, 0.0 }
 0x185   : > { %v2304_v33 = vadd.f32 %v2303_v25, %v2302_v48  ;;  %v1895_v4 = vpop.f32.mrf.mxu0 }
 0x186   : > { %2254 = vst.msk [vmem:[#allocation2 + $0x80] sm:$0xff] %vm2237_vm3, %v10042_v53  ;;  %v2305_v29 = vsel %vm2237_vm3, %v10042_v53, 0.0  ;;  %v10051_v22 = vadd.f32 %v8192_v47, %v1902_v3  ;;  %v1896_v30 = vadd.f32 %v1895_v4, %v1610_v0  ;;  %v2153_v31 = vpop.f32.mrf.mxu1  ;;  %v1642_v0 = vadd.f32 %v13034_v56, %v1329_v26  ;;  %v13039_v26 = vld [vmem:[#allocation39_spill] sm:$0xff] }
 0x187   : > { %v2306_v5 = vadd.f32 %v2305_v29, %v2304_v33  ;;  %v8145_v11 = vpop.f32.mrf.mxu0 }
 0x188   : > { %2257 = vst.msk [vmem:[#allocation2 + $0x98] sm:$0xff] %vm2237_vm3, %v10051_v22  ;;  %v10060_v61 = vadd.f32 %v2153_v31, %v1896_v30  ;;  %v1914_v62 = vadd.f32 %v8145_v11, %v1634_v60  ;;  %v8195_v49 = vpop.f32.mrf.mxu1  ;;  %v2311_v25 = vsel %vm2237_vm3, %v10051_v22, 0.0  ;;  %v13035_v60 = vld [vmem:[#allocation35_spill] sm:$0xff] }
 0x189   : > { %v2308_v9 = vadd.f32 %v2307_v35, %v2306_v5  ;;  %v1907_v21 = vpop.f32.mrf.mxu0  ;;  %v1666_v33 = vadd.f32 %v13035_v60, %v1350_v50  ;;  %v1357_v35 = vadd.f32 %v13039_v26, %v13038_v37  ;;  %v13041_v50 = vld [vmem:[#allocation41_spill] sm:$0xff]  ;;  %v13049_v26 = vld [vmem:[#allocation44_spill] sm:$0xff] }
 0x18a   : > { %2256 = vst.msk [vmem:[#allocation2 + $0x90] sm:$0xff] %vm2237_vm3, %v10060_v61  ;;  %v2309_v58 = vsel %vm2237_vm3, %v10060_v61, 0.0  ;;  %v10069_v57 = vadd.f32 %v8195_v49, %v1914_v62  ;;  %v1908_v55 = vadd.f32 %v1907_v21, %v1626_v1  ;;  %v2165_v23 = vpop.f32.mrf.mxu1  ;;  %v13037_v1 = vld [vmem:[#allocation37_spill] sm:$0xff] }
 0x18b   : > { %v2310_v48 = vadd.f32 %v2309_v58, %v2308_v9  ;;  %v8148_v36 = vpop.f32.mrf.mxu0  ;;  %v1658_v5 = vadd.f32 %v13037_v1, %v1343_v52  ;;  %v1378_v9 = vadd.f32 %v13041_v50, %v13040_v45  ;;  %v13043_v52 = vld [vmem:[#allocation18_spill] sm:$0xff] }
 0x18c   : > { %2259 = vst.msk [vmem:[#allocation2 + $0xa8] sm:$0xff] %vm2237_vm3, %v10069_v57  ;;  %v10078_v3 = vadd.f32 %v2165_v23, %v1908_v55  ;;  %v1926_v47 = vadd.f32 %v8148_v36, %v1650_v15  ;;  %v8198_v10 = vpop.f32.mrf.mxu1  ;;  %v2315_v6 = vsel %vm2237_vm3, %v10069_v57, 0.0  ;;  %v13042_v15 = vld [vmem:[#allocation38_spill] sm:$0xff] }
 0x18d   : > { %v2312_v4 = vadd.f32 %v2311_v25, %v2310_v48  ;;  %v1919_v59 = vpop.f32.mrf.mxu0  ;;  %v1682_v58 = vadd.f32 %v13042_v15, %v1364_v2  ;;  %v13044_v48 = vld [vmem:[#allocation43_spill] sm:$0xff]  ;;  %v13045_v25 = vld [vmem:[#allocation40_spill] sm:$0xff] }
 0x18e   : > { %2258 = vst.msk [vmem:[#allocation2 + $0xa0] sm:$0xff] %vm2237_vm3, %v10078_v3  ;;  %v2313_v29 = vsel %vm2237_vm3, %v10078_v3, 0.0  ;;  %v10087_v30 = vadd.f32 %v8198_v10, %v1926_v47  ;;  %v1920_v31 = vadd.f32 %v1919_v59, %v1642_v0  ;;  %v2177_v14 = vpop.f32.mrf.mxu1  ;;  %v1371_v36 = vadd.f32 %v13044_v48, %v13043_v52  ;;  %v13046_v59 = vld [vmem:[#allocation42_spill] sm:$0xff] }
 0x18f   : > { %v2314_v11 = vadd.f32 %v2313_v29, %v2312_v4  ;;  %v8151_v34 = vpop.f32.mrf.mxu0  ;;  %v1674_v47 = vadd.f32 %v13045_v25, %v1357_v35  ;;  %v1698_v41 = vadd.f32 %v13046_v59, %v1378_v9 }
 0x190   : > { %2261 = vst.msk [vmem:[#allocation2 + $0xb8] sm:$0xff] %vm2237_vm3, %v10087_v30  ;;  %v10096_v62 = vadd.f32 %v2177_v14, %v1920_v31  ;;  %v1938_v49 = vadd.f32 %v8151_v34, %v1666_v33  ;;  %v8201_v24 = vpop.f32.mrf.mxu1  ;;  %v2319_v10 = vsel %vm2237_vm3, %v10087_v30, 0.0  ;;  %v13047_v31 = vld [vmem:[#allocation19_spill] sm:$0xff]  ;;  %v13048_v14 = vld [vmem:[#allocation45_spill] sm:$0xff]  ;;  %v1690_v35 = vadd.f32 %v13049_v26, %v1371_v36 }
 0x191   : > { %v2316_v21 = vadd.f32 %v2315_v6, %v2314_v11  ;;  %v1931_v43 = vpop.f32.mrf.mxu0  ;;  %v1392_v1 = vadd.f32 %v13048_v14, %v13047_v31 }
 0x192   : > { %2260 = vst.msk [vmem:[#allocation2 + $0xb0] sm:$0xff] %vm2237_vm3, %v10096_v62  ;;  %v2317_v55 = vsel %vm2237_vm3, %v10096_v62, 0.0  ;;  %v10105_v23 = vadd.f32 %v8201_v24, %v1938_v49  ;;  %v1932_v42 = vadd.f32 %v1931_v43, %v1658_v5  ;;  %v2189_v28 = vpop.f32.mrf.mxu1  ;;  %v13050_v24 = vld [vmem:[#allocation20_spill] sm:$0xff] }
 0x193   : > { %v2318_v56 = vadd.f32 %v2317_v55, %v2316_v21  ;;  %v8154_v0 = vpop.f32.mrf.mxu0  ;;  %v1385_v45 = vadd.f32 %v9878_v44, %v13050_v24  ;;  %v1714_v55 = vadd.f32 %v9876_v40, %v1392_v1 }
 0x194   : > { %2263 = vst.msk [vmem:[#allocation2 + $0xc8] sm:$0xff] %vm2237_vm3, %v10105_v23  ;;  %v10114_v60 = vadd.f32 %v2189_v28, %v1932_v42  ;;  %v1950_v33 = vadd.f32 %v8154_v0, %v1682_v58  ;;  %v8204_v4 = vpop.f32.mrf.mxu1  ;;  %v2323_v50 = vsel %vm2237_vm3, %v10105_v23, 0.0 }
 0x195   : > { %v2320_v2 = vadd.f32 %v2319_v10, %v2318_v56  ;;  %v1943_v29 = vpop.f32.mrf.mxu0  ;;  %v13051_v56 = vld [vmem:[#allocation46_spill] sm:$0xff] }
 0x196   : > { %2262 = vst.msk [vmem:[#allocation2 + $0xc0] sm:$0xff] %vm2237_vm3, %v10114_v60  ;;  %v2321_v5 = vsel %vm2237_vm3, %v10114_v60, 0.0  ;;  %v10123_v11 = vadd.f32 %v8204_v4, %v1950_v33  ;;  %v1944_v34 = vadd.f32 %v1943_v29, %v1674_v47  ;;  %v2201_v37 = vpop.f32.mrf.mxu1  ;;  %v1706_v0 = vadd.f32 %v13051_v56, %v1385_v45 }
 0x197   : > { %v2322_v6 = vadd.f32 %v2321_v5, %v2320_v2  ;;  %v8157_v49 = vpop.f32.mrf.mxu0 }
 0x198   : > { %2265 = vst.msk [vmem:[#allocation2 + $0xd8] sm:$0xff] %vm2237_vm3, %v10123_v11  ;;  %v10132_v9 = vadd.f32 %v2201_v37, %v1944_v34  ;;  %v1962_v21 = vadd.f32 %v8157_v49, %v1698_v41  ;;  %v8207_v43 = vpop.f32.mrf.mxu1  ;;  %v2327_v25 = vsel %vm2237_vm3, %v10123_v11, 0.0 }
 0x199   : > { %v2324_v15 = vadd.f32 %v2323_v50, %v2322_v6  ;;  %v1955_v58 = vpop.f32.mrf.mxu0 }
 0x19a   : > { %2264 = vst.msk [vmem:[#allocation2 + $0xd0] sm:$0xff] %vm2237_vm3, %v10132_v9  ;;  %v2325_v44 = vsel %vm2237_vm3, %v10132_v9, 0.0  ;;  %v10139_v42 = vadd.f32 %v8207_v43, %v1962_v21  ;;  %v1956_v28 = vadd.f32 %v1955_v58, %v1690_v35  ;;  %v2213_v52 = vpop.f32.mrf.mxu1 }
 0x19b   : > { %v2326_v48 = vadd.f32 %v2325_v44, %v2324_v15  ;;  %v8160_v36 = vpop.f32.mrf.mxu0 }
 0x19c   : > { %2267 = vst.msk [vmem:[#allocation2 + $0xe8] sm:$0xff] %vm2237_vm3, %v10139_v42  ;;  %v10146_v40 = vadd.f32 %v2213_v52, %v1956_v28  ;;  %v1974_v47 = vadd.f32 %v8160_v36, %v1714_v55  ;;  %v8210_v10 = vpop.f32.mrf.mxu1  ;;  %v2331_v14 = vsel %vm2237_vm3, %v10139_v42, 0.0 }
 0x19d   : > { %v2328_v33 = vadd.f32 %v2327_v25, %v2326_v48  ;;  %v1967_v4 = vpop.f32.mrf.mxu0 }
 0x19e   : > { %2266 = vst.msk [vmem:[#allocation2 + $0xe0] sm:$0xff] %vm2237_vm3, %v10146_v40  ;;  %v2329_v59 = vsel %vm2237_vm3, %v10146_v40, 0.0  ;;  %v10152_v41 = vadd.f32 %v8210_v10, %v1974_v47  ;;  %v1968_v2 = vadd.f32 %v1967_v4, %v1706_v0  ;;  %v2225_v29 = vpop.f32.mrf.mxu1 }
 0x19f   : > { %v2330_v31 = vadd.f32 %v2329_v59, %v2328_v33 }
 0x1a0   : > { %2269 = vst.msk [vmem:[#allocation2 + $0xf8] sm:$0xff] %vm2237_vm3, %v10152_v41  ;;  %v10158_v1 = vadd.f32 %v2225_v29, %v1968_v2  ;;  %v2335_v26 = vsel %vm2237_vm3, %v10152_v41, 0.0 }
 0x1a1   : > { %v2332_v5 = vadd.f32 %v2331_v14, %v2330_v31 }
 0x1a2   : > { %2268 = vst.msk [vmem:[#allocation2 + $0xf0] sm:$0xff] %vm2237_vm3, %v10158_v1  ;;  %v2333_v34 = vsel %vm2237_vm3, %v10158_v1, 0.0 }
 0x1a3   : > { %v2334_v37 = vadd.f32 %v2333_v34, %v2332_v5 }
 0x1a5   : > { %v2336_v35 = vadd.f32 %v2335_v26, %v2334_v37 }
 0x1a7   : > { %v2337_v6 = vrot.slane %v2336_v35, 4 }
 0x1a9   : > { %v2338_v49 = vadd.f32 %v2337_v6, %v2336_v35 }
 0x1ab   : > { %v2339_v24 = vrot.slane %v2338_v49, 2 }
 0x1ad   : > { %v2340_v45 = vadd.f32 %v2339_v24, %v2338_v49 }
 0x1af   : > { %v2341_v50 = vrot.slane %v2340_v45, 1 }
 0x1b1   : > { %v2342_v21 = vadd.f32 %v2341_v50, %v2340_v45 }
 0x1b3   : > { %v2343_v43 = vmul.f32 0.00390625, %v2342_v21 }
 0x1b5   : > { %2345 = vst.msk [vmem:[#allocation3] sm:$0x1] %vm2344_vm4, %v2343_v43 }
 0x1bc   : > { %v10167_v15 = vld [vmem:[#allocation3] ss:$0 sm:$0xff] }
 0x1bd   : > { %v2353_v58 = vsub.f32 %v9898_v39, %v10167_v15  ;;  %v2354_v55 = vsub.f32 %v9891_v51, %v10167_v15  ;;  %v2355_v44 = vsub.f32 %v9916_v54, %v10167_v15  ;;  %v2356_v28 = vsub.f32 %v9907_v27, %v10167_v15 }
 0x1be   : > { %v2357_v56 = vsub.f32 %v9934_v13, %v10167_v15  ;;  %v2358_v51 = vsub.f32 %v9925_v38, %v10167_v15  ;;  %v2359_v27 = vsub.f32 %v9952_v18, %v10167_v15  ;;  %v2360_v33 = vsub.f32 %v9943_v12, %v10167_v15 }
 0x1bf   : > { %v2386_v52 = vsel %vm2237_vm3, %v2353_v58, 0.0  ;;  %v2387_v48 = vsel %vm2237_vm3, %v2354_v55, 0.0  ;;  %v2389_v0 = vsel %vm2237_vm3, %v2355_v44, 0.0  ;;  %v2391_v25 = vsel %vm2237_vm3, %v2356_v28, 0.0 }
 0x1c0   : > { %v2388_v36 = vadd.f32 %v2387_v48, %v2386_v52  ;;  %v2393_v47 = vsel %vm2237_vm3, %v2357_v56, 0.0  ;;  %v2395_v13 = vsel %vm2237_vm3, %v2358_v51, 0.0  ;;  %v2361_v59 = vsub.f32 %v9970_v32, %v10167_v15 }
 0x1c1   : > { %v2397_v38 = vsel %vm2237_vm3, %v2359_v27, 0.0  ;;  %v2362_v29 = vsub.f32 %v9961_v19, %v10167_v15  ;;  %v2399_v18 = vsel %vm2237_vm3, %v2360_v33, 0.0  ;;  %v2363_v14 = vsub.f32 %v9988_v46, %v10167_v15 }
 0x1c2   : > { %v2390_v39 = vadd.f32 %v2389_v0, %v2388_v36  ;;  %v2401_v12 = vsel %vm2237_vm3, %v2361_v59, 0.0  ;;  %v2459_v5 = vmul.f32 %v2353_v58, %v2353_v58  ;;  %v2460_v34 = vmul.f32 %v2354_v55, %v2354_v55 }
 0x1c3   : > { %v2364_v32 = vsub.f32 %v9979_v16, %v10167_v15  ;;  %v2403_v26 = vsel %vm2237_vm3, %v2362_v29, 0.0  ;;  %v2461_v35 = vmul.f32 %v2355_v44, %v2355_v44  ;;  %v2365_v19 = vsub.f32 %v10006_v20, %v10167_v15 }
 0x1c4   : > { %v2392_v54 = vadd.f32 %v2391_v25, %v2390_v39  ;;  %v2405_v49 = vsel %vm2237_vm3, %v2363_v14, 0.0  ;;  %v2462_v24 = vmul.f32 %v2356_v28, %v2356_v28  ;;  %v2491_v46 = vsel %vm2237_vm3, %v2459_v5, 0.0 }
 0x1c5   : > { %v2492_v45 = vsel %vm2237_vm3, %v2460_v34, 0.0  ;;  %v2366_v43 = vsub.f32 %v9997_v17, %v10167_v15  ;;  %v2407_v16 = vsel %vm2237_vm3, %v2364_v32, 0.0  ;;  %v2463_v58 = vmul.f32 %v2357_v56, %v2357_v56 }
 0x1c6   : > { %v2394_v10 = vadd.f32 %v2393_v47, %v2392_v54  ;;  %v2493_v21 = vadd.f32 %v2492_v45, %v2491_v46  ;;  %v2494_v55 = vsel %vm2237_vm3, %v2461_v35, 0.0  ;;  %v2367_v52 = vsub.f32 %v10024_v63, %v10167_v15 }
 0x1c7   : > { %v2409_v28 = vsel %vm2237_vm3, %v2365_v19, 0.0  ;;  %v2464_v48 = vmul.f32 %v2358_v51, %v2358_v51  ;;  %v2496_v36 = vsel %vm2237_vm3, %v2462_v24, 0.0  ;;  %v2368_v17 = vsub.f32 %v10015_v8, %v10167_v15 }
 0x1c8   : > { %v2396_v4 = vadd.f32 %v2395_v13, %v2394_v10  ;;  %v2495_v20 = vadd.f32 %v2494_v55, %v2493_v21  ;;  %v2411_v25 = vsel %vm2237_vm3, %v2366_v43, 0.0  ;;  %v2465_v56 = vmul.f32 %v2359_v27, %v2359_v27 }
 0x1c9   : > { %v2498_v54 = vsel %vm2237_vm3, %v2463_v58, 0.0  ;;  %v2369_v63 = vsub.f32 %v10042_v53, %v10167_v15  ;;  %v2413_v13 = vsel %vm2237_vm3, %v2367_v52, 0.0  ;;  %v2466_v51 = vmul.f32 %v2360_v33, %v2360_v33 }
 0x1ca   : > { %v2398_v2 = vadd.f32 %v2397_v38, %v2396_v4  ;;  %v2497_v39 = vadd.f32 %v2496_v36, %v2495_v20  ;;  %v2500_v4 = vsel %vm2237_vm3, %v2464_v48, 0.0  ;;  %v2370_v8 = vsub.f32 %v10033_v7, %v10167_v15 }
 0x1cb   : > { %v2467_v27 = vmul.f32 %v2361_v59, %v2361_v59  ;;  %v2371_v53 = vsub.f32 %v10060_v61, %v10167_v15  ;;  %v2417_v34 = vsel %vm2237_vm3, %v2369_v63, 0.0  ;;  %v2468_v33 = vmul.f32 %v2362_v29, %v2362_v29 }
 0x1cc   : > { %v2400_v31 = vadd.f32 %v2399_v18, %v2398_v2  ;;  %v2499_v10 = vadd.f32 %v2498_v54, %v2497_v39  ;;  %v2415_v18 = vsel %vm2237_vm3, %v2368_v17, 0.0  ;;  %v2372_v7 = vsub.f32 %v10051_v22, %v10167_v15 }
 0x1cd   : > { %v2469_v59 = vmul.f32 %v2363_v14, %v2363_v14  ;;  %v2373_v61 = vsub.f32 %v10078_v3, %v10167_v15  ;;  %v2421_v45 = vsel %vm2237_vm3, %v2371_v53, 0.0  ;;  %v2470_v29 = vmul.f32 %v2364_v32, %v2364_v32 }
 0x1ce   : > { %v2402_v37 = vadd.f32 %v2401_v12, %v2400_v31  ;;  %v2501_v2 = vadd.f32 %v2500_v4, %v2499_v10  ;;  %v2502_v31 = vsel %vm2237_vm3, %v2465_v56, 0.0  ;;  %v2374_v22 = vsub.f32 %v10069_v57, %v10167_v15 }
 0x1cf   : > { %v2423_v58 = vsel %vm2237_vm3, %v2372_v7, 0.0  ;;  %v2471_v14 = vmul.f32 %v2365_v19, %v2365_v19  ;;  %v2510_v55 = vsel %vm2237_vm3, %v2469_v59, 0.0  ;;  %v2375_v3 = vsub.f32 %v10096_v62, %v10167_v15 }
 0x1d0   : > { %v2404_v6 = vadd.f32 %v2403_v26, %v2402_v37  ;;  %v2503_v5 = vadd.f32 %v2502_v31, %v2501_v2  ;;  %v2504_v37 = vsel %vm2237_vm3, %v2466_v51, 0.0  ;;  %v2472_v32 = vmul.f32 %v2366_v43, %v2366_v43 }
 0x1d1   : > { %v2512_v48 = vsel %vm2237_vm3, %v2470_v29, 0.0  ;;  %v2376_v57 = vsub.f32 %v10087_v30, %v10167_v15  ;;  %v2427_v39 = vsel %vm2237_vm3, %v2374_v22, 0.0  ;;  %v2473_v19 = vmul.f32 %v2367_v52, %v2367_v52 }
 0x1d2   : > { %v2406_v50 = vadd.f32 %v2405_v49, %v2404_v6  ;;  %v2505_v35 = vadd.f32 %v2504_v37, %v2503_v5  ;;  %v2419_v6 = vsel %vm2237_vm3, %v2370_v8, 0.0  ;;  %v2506_v49 = vsel %vm2237_vm3, %v2467_v27, 0.0 }
 0x1d3   : > { %v2377_v62 = vsub.f32 %v10114_v60, %v10167_v15  ;;  %v2474_v43 = vmul.f32 %v2368_v17, %v2368_v17  ;;  %v2516_v10 = vsel %vm2237_vm3, %v2472_v32, 0.0  ;;  %v2378_v30 = vsub.f32 %v10105_v23, %v10167_v15 }
 0x1d4   : > { %v2408_v44 = vadd.f32 %v2407_v16, %v2406_v50  ;;  %v2507_v46 = vadd.f32 %v2506_v49, %v2505_v35  ;;  %v2508_v50 = vsel %vm2237_vm3, %v2468_v33, 0.0  ;;  %v2431_v4 = vsel %vm2237_vm3, %v2376_v57, 0.0 }
 0x1d5   : > { %v2475_v52 = vmul.f32 %v2369_v63, %v2369_v63  ;;  %v2379_v60 = vsub.f32 %v10132_v9, %v10167_v15  ;;  %v2433_v27 = vsel %vm2237_vm3, %v2377_v62, 0.0  ;;  %v2476_v17 = vmul.f32 %v2370_v8, %v2370_v8 }
 0x1d6   : > { %v2410_v0 = vadd.f32 %v2409_v28, %v2408_v44  ;;  %v2509_v16 = vadd.f32 %v2508_v50, %v2507_v46  ;;  %v2425_v28 = vsel %vm2237_vm3, %v2373_v61, 0.0  ;;  %v2520_v31 = vsel %vm2237_vm3, %v2474_v43, 0.0 }
 0x1d7   : > { %v2380_v23 = vsub.f32 %v10123_v11, %v10167_v15  ;;  %v2477_v63 = vmul.f32 %v2371_v53, %v2371_v53  ;;  %v2522_v33 = vsel %vm2237_vm3, %v2475_v52, 0.0  ;;  %v2381_v9 = vsub.f32 %v10146_v40, %v10167_v15 }
 0x1d8   : > { %v2412_v47 = vadd.f32 %v2411_v25, %v2410_v0  ;;  %v2511_v20 = vadd.f32 %v2510_v55, %v2509_v16  ;;  %v2514_v25 = vsel %vm2237_vm3, %v2471_v14, 0.0  ;;  %v2437_v35 = vsel %vm2237_vm3, %v2379_v60, 0.0 }
 0x1d9   : > { %v2478_v8 = vmul.f32 %v2372_v7, %v2372_v7  ;;  %v2382_v11 = vsub.f32 %v10139_v42, %v10167_v15  ;;  %v2479_v53 = vmul.f32 %v2373_v61, %v2373_v61  ;;  %v2526_v46 = vsel %vm2237_vm3, %v2477_v63, 0.0 }
 0x1da   : > { %v2414_v38 = vadd.f32 %v2413_v13, %v2412_v47  ;;  %v2513_v0 = vadd.f32 %v2512_v48, %v2511_v20  ;;  %v2429_v47 = vsel %vm2237_vm3, %v2375_v3, 0.0  ;;  %v2383_v40 = vsub.f32 %v10158_v1, %v10167_v15 }
 0x1db   : > { %v2441_v50 = vsel %vm2237_vm3, %v2381_v9, 0.0  ;;  %v2480_v7 = vmul.f32 %v2374_v22, %v2374_v22  ;;  %v2384_v42 = vsub.f32 %v10152_v41, %v10167_v15  ;;  %v2443_v14 = vsel %vm2237_vm3, %v2382_v11, 0.0 }
 0x1dc   : > { %v2416_v12 = vadd.f32 %v2415_v18, %v2414_v38  ;;  %v2515_v54 = vadd.f32 %v2514_v25, %v2513_v0  ;;  %v2518_v38 = vsel %vm2237_vm3, %v2473_v19, 0.0  ;;  %v2481_v61 = vmul.f32 %v2375_v3, %v2375_v3 }
 0x1dd   : > { %v2530_v55 = vsel %vm2237_vm3, %v2479_v53, 0.0  ;;  %v2482_v1 = vmul.f32 %v2376_v57, %v2376_v57  ;;  %v2532_v32 = vsel %vm2237_vm3, %v2480_v7, 0.0  ;;  %v2483_v0 = vmul.f32 %v2377_v62, %v2377_v62  ;;  %v2458_v53 = vld [vmem:[#allocation3 + $0x2] sm:$0x1] }
 0x1de   : > { %v2418_v26 = vadd.f32 %v2417_v34, %v2416_v12  ;;  %v2517_v51 = vadd.f32 %v2516_v10, %v2515_v54  ;;  %v2435_v34 = vsel %vm2237_vm3, %v2378_v30, 0.0  ;;  %v2484_v19 = vmul.f32 %v2378_v30, %v2378_v30 }
 0x1df   : > { %v2536_v3 = vsel %vm2237_vm3, %v2482_v1, 0.0  ;;  %v2485_v54 = vmul.f32 %v2379_v60, %v2379_v60  ;;  %v2486_v10 = vmul.f32 %v2380_v23, %v2380_v23  ;;  %v2487_v62 = vmul.f32 %v2381_v9, %v2381_v9  ;;  %v2385_v60 = vld [vmem:[#allocation3 + $0x1] sm:$0x1] }
 0x1e0   : > { %v2420_v24 = vadd.f32 %v2419_v6, %v2418_v26  ;;  %v2519_v18 = vadd.f32 %v2518_v38, %v2517_v51  ;;  %v2524_v6 = vsel %vm2237_vm3, %v2476_v17, 0.0  ;;  %v2488_v30 = vmul.f32 %v2382_v11, %v2382_v11 }
 0x1e1   : > { %v2542_v52 = vsel %vm2237_vm3, %v2485_v54, 0.0 }
 0x1e2   : > { %v2422_v21 = vadd.f32 %v2421_v45, %v2420_v24  ;;  %v2521_v5 = vadd.f32 %v2520_v31, %v2519_v18  ;;  %v2439_v24 = vsel %vm2237_vm3, %v2380_v23, 0.0  ;;  %v2544_v18 = vsel %vm2237_vm3, %v2486_v10, 0.0 }
 0x1e3   : > { %v2489_v31 = vmul.f32 %v2383_v40, %v2383_v40  ;;  %v2548_v63 = vsel %vm2237_vm3, %v2488_v30, 0.0 }
 0x1e4   : > { %v2424_v44 = vadd.f32 %v2423_v58, %v2422_v21  ;;  %v2523_v26 = vadd.f32 %v2522_v33, %v2521_v5  ;;  %v2528_v21 = vsel %vm2237_vm3, %v2478_v8, 0.0 }
 0x1e6   : > { %v2426_v36 = vadd.f32 %v2425_v28, %v2424_v44  ;;  %v2525_v49 = vadd.f32 %v2524_v6, %v2523_v26  ;;  %v2445_v28 = vsel %vm2237_vm3, %v2383_v40, 0.0  ;;  %v2550_v26 = vsel %vm2237_vm3, %v2489_v31, 0.0 }
 0x1e8   : > { %v2428_v56 = vadd.f32 %v2427_v39, %v2426_v36  ;;  %v2527_v29 = vadd.f32 %v2526_v46, %v2525_v49  ;;  %v2447_v36 = vsel %vm2237_vm3, %v2384_v42, 0.0  ;;  %v2534_v39 = vsel %vm2237_vm3, %v2481_v61, 0.0 }
 0x1ea   : > { %v2430_v13 = vadd.f32 %v2429_v47, %v2428_v56  ;;  %v2529_v58 = vadd.f32 %v2528_v21, %v2527_v29  ;;  %v2538_v47 = vsel %vm2237_vm3, %v2483_v0, 0.0 }
 0x1ec   : > { %v2432_v2 = vadd.f32 %v2431_v4, %v2430_v13  ;;  %v2531_v20 = vadd.f32 %v2530_v55, %v2529_v58  ;;  %v2540_v13 = vsel %vm2237_vm3, %v2484_v19, 0.0 }
 0x1ee   : > { %v2434_v12 = vadd.f32 %v2433_v27, %v2432_v2  ;;  %v2533_v48 = vadd.f32 %v2532_v32, %v2531_v20 }
 0x1f0   : > { %v2436_v37 = vadd.f32 %v2435_v34, %v2434_v12  ;;  %v2535_v15 = vadd.f32 %v2534_v39, %v2533_v48  ;;  %v2546_v12 = vsel %vm2237_vm3, %v2487_v62, 0.0  ;;  %v2490_v34 = vmul.f32 %v2384_v42, %v2384_v42 }
 0x1f2   : > { %v2438_v59 = vadd.f32 %v2437_v35, %v2436_v37  ;;  %v2537_v56 = vadd.f32 %v2536_v3, %v2535_v15  ;;  %v2552_v35 = vsel %vm2237_vm3, %v2490_v34, 0.0 }
 0x1f4   : > { %v2440_v45 = vadd.f32 %v2439_v24, %v2438_v59  ;;  %v2539_v43 = vadd.f32 %v2538_v47, %v2537_v56 }
 0x1f6   : > { %v2442_v16 = vadd.f32 %v2441_v50, %v2440_v45  ;;  %v2541_v4 = vadd.f32 %v2540_v13, %v2539_v43 }
 0x1f8   : > { %v2444_v44 = vadd.f32 %v2443_v14, %v2442_v16  ;;  %v2543_v2 = vadd.f32 %v2542_v52, %v2541_v4 }
 0x1fa   : > { %v2446_v22 = vadd.f32 %v2445_v28, %v2444_v44  ;;  %v2545_v17 = vadd.f32 %v2544_v18, %v2543_v2 }
 0x1fc   : > { %v2448_v41 = vadd.f32 %v2447_v36, %v2446_v22  ;;  %v2547_v23 = vadd.f32 %v2546_v12, %v2545_v17 }
 0x1fe   : > { %v2449_v25 = vrot.slane %v2448_v41, 4  ;;  %v2549_v37 = vadd.f32 %v2548_v63, %v2547_v23 }
 0x200   : > { %v2450_v57 = vadd.f32 %v2449_v25, %v2448_v41  ;;  %v2551_v9 = vadd.f32 %v2550_v26, %v2549_v37 }
 0x202   : > { %v2451_v51 = vrot.slane %v2450_v57, 2  ;;  %v2553_v8 = vadd.f32 %v2552_v35, %v2551_v9 }
 0x204   : > { %v2452_v38 = vadd.f32 %v2451_v51, %v2450_v57  ;;  %v2554_v6 = vrot.slane %v2553_v8, 4 }
 0x206   : > { %v2453_v27 = vrot.slane %v2452_v38, 1  ;;  %v2555_v59 = vadd.f32 %v2554_v6, %v2553_v8 }
 0x208   : > { %v2454_v5 = vadd.f32 %v2453_v27, %v2452_v38  ;;  %v2556_v49 = vrot.slane %v2555_v59, 2 }
 0x20a   : > { %v2455_v33 = vadd.f32 %v2454_v5, %v2385_v60  ;;  %v2557_v11 = vadd.f32 %v2556_v49, %v2555_v59 }
 0x20c   : > { %2457 = vst.msk [vmem:[#allocation3 + $0x1] sm:$0x1] %vm2344_vm4, %v2455_v33  ;;  %v2558_v24 = vrot.slane %v2557_v11, 1 }
 0x20e   : > { %v2559_v46 = vadd.f32 %v2558_v24, %v2557_v11 }
 0x210   : > { %v2560_v45 = vadd.f32 %v2559_v46, %v2458_v53 }
 0x212   : > { %2561 = vst.msk [vmem:[#allocation3 + $0x2] sm:$0x1] %vm2344_vm4, %v2560_v45 }
 0x213 PF: > { %p7270_p5 = scmp.ne.s32.totalorder %s8991_s24, 1 }
 0x215   : > { %2565 = sbr.rel (%p7270_p5) target bundleno = 1129 (0x469), region = 60 }
 0x21a   : > { %v2893_v29 = vld [vmem:[%s12727_s2 + $0x18] sm:$0xff]  ;;  %v2892_v40 = vld [vmem:[%s12727_s2 + $0x10] sm:$0xff]  ;;  %v2891_v50 = vld [vmem:[%s12727_s2 + $0x8] sm:$0xff]  ;;  %vm2583_vm5 = vcmask 253952   ;;  %vm2857_vm6 = vcmask 261120   ;;  %vm4883_vm7 = vcmask 254976  }
 0x21b   : > { %v10309_v7 = vand.u32 4294901760, %v2893_v29  ;;  %v10311_v21 = vand.u32 4294901760, %v2892_v40  ;;  %v10313_v16 = vand.u32 4294901760, %v2891_v50  ;;  %v2890_v58 = vld [vmem:[%s12727_s2] sm:$0xff]  ;;  %v2592_v27 = vld [vmem:[#allocation2 + $0x8] sm:$0xff]  ;;  %v2593_v17 = vld [vmem:[#allocation2 + $0x10] sm:$0xff] }
 0x21c   : > { %v2570_v42 = vld [vmem:[#allocation3 + $0x1] sm:$0x1]  ;;  %v10318_v14 = vand.u32 4294901760, %v2890_v58  ;;  %v2574_v55 = vld [vmem:[#allocation3 + $0x2] sm:$0x1]  ;;  %v2594_v60 = vld [vmem:[#allocation2 + $0x18] sm:$0xff] }
 0x21d   : > { %v2571_v61 = vmul.f32 0.00390625, %v2570_v42  ;;  %8211 = vmatprep.subr.mxu0 %v10309_v7  ;;  %v10322_v44 = vsub.f32 %v2893_v29, %v10309_v7  ;;  %v10325_v20 = vsub.f32 %v2892_v40, %v10311_v21  ;;  %v10328_v28 = vsub.f32 %v2891_v50, %v10313_v16  ;;  %v2572_v13 = vld [vmem:[#allocation3] sm:$0x1]  ;;  %v2596_v12 = vld [vmem:[#allocation2 + $0x28] sm:$0xff]  ;;  %v2597_v5 = vld [vmem:[#allocation2 + $0x30] sm:$0xff] }
 0x21e   : > { %v2575_v1 = vmul.f32 0.00390625, %v2574_v55  ;;  %8212 = vmatpush3.msra.mxu0 %v10309_v7  ;;  %v10332_v32 = vsub.f32 %v2890_v58, %v10318_v14  ;;  %v2579_v51 = vld [vmem:[%s12728_s3] sm:$0x1]  ;;  %v2598_v23 = vld [vmem:[#allocation2 + $0x38] sm:$0xff]  ;;  %v2600_v33 = vld [vmem:[#allocation2 + $0x48] sm:$0xff] }
 0x21f   : > { %v2576_v22 = vmul.f32 %v2571_v61, %v2571_v61  ;;  %v10335_v48 = vand.u32 4294901760, %v10322_v44  ;;  %8213 = vmatprep.subr.mxu0 %v10311_v21  ;;  %v10339_v36 = vand.u32 4294901760, %v10325_v20  ;;  %v10342_v0 = vand.u32 4294901760, %v10328_v28  ;;  %v2585_v38 = vld [vmem:[%s12729_s4] sm:$0x1]  ;;  %v2601_v37 = vld [vmem:[#allocation2 + $0x50] sm:$0xff] }
 0x220   : > { %8214 = vmatpush3.msra.mxu0 %v10311_v21  ;;  %v10346_v39 = vand.u32 4294901760, %v10332_v32  ;;  %v2573_v4 = vadd.f32 %v2572_v13, %v2571_v61  ;;  %v2591_v18 = vld [vmem:[#allocation2] sm:$0xff]  ;;  %v2602_v6 = vld [vmem:[#allocation2 + $0x58] sm:$0xff]  ;;  %v2604_v49 = vld [vmem:[#allocation2 + $0x68] sm:$0xff] }
 0x221   : > { %v2577_v41 = vsub.f32 %v2575_v1, %v2576_v22  ;;  %v3407_v15 = vsub.f32 %v10322_v44, %v10335_v48  ;;  %v3414_v19 = vsub.f32 %v10325_v20, %v10339_v36  ;;  %8215 = vmatprep.subr.mxu0 %v10313_v16  ;;  %v3421_v3 = vsub.f32 %v10328_v28, %v10342_v0  ;;  %v2595_v31 = vld [vmem:[#allocation2 + $0x20] sm:$0xff]  ;;  %v2605_v40 = vld [vmem:[#allocation2 + $0x70] sm:$0xff]  ;;  %v2606_v50 = vld [vmem:[#allocation2 + $0x78] sm:$0xff] }
 0x222   : > { %8216 = vmatpush3.msra.mxu0 %v10313_v16  ;;  %v3428_v47 = vsub.f32 %v10332_v32, %v10346_v39  ;;  %v2599_v34 = vld [vmem:[#allocation2 + $0x40] sm:$0xff] }
 0x223   : > { %v2578_v25 = vmax.f32 %v2577_v41, 0.0  ;;  %v3408_v56 = vand.u32 4294901760, %v3407_v15  ;;  %v3415_v54 = vand.u32 4294901760, %v3414_v19  ;;  %8217 = vmatprep.subr.mxu0 %v10318_v14  ;;  %v3422_v43 = vand.u32 4294901760, %v3421_v3  ;;  %v2603_v59 = vld [vmem:[#allocation2 + $0x60] sm:$0xff] }
 0x224   : > { %8218 = vmatpush3.msra.mxu0 %v10318_v14  ;;  %v3429_v10 = vand.u32 4294901760, %v3428_v47 }
 0x225   : > { %v2580_v57 = vadd.f32 1e-05, %v2578_v25  ;;  %8267 = vmatprep.subr.mxu1 %v3408_v56  ;;  %8323 = vmatprep.subr.mxu0 %v10322_v44 }
 0x226   : > { %8268 = vmatpush3.msra.mxu1 %v3408_v56 }
 0x227   : > { %8909 = vrsqrt.f32 %v2580_v57  ;;  %8269 = vmatprep.subr.mxu1 %v3415_v54 }
 0x228   : > { %8270 = vmatpush3.msra.mxu1 %v3415_v54 }
 0x229   : > { %8271 = vmatprep.subr.mxu1 %v3422_v43 }
 0x22a   : > { %8272 = vmatpush3.msra.mxu1 %v3422_v43 }
 0x22b   : > { %8273 = vmatprep.subr.mxu1 %v3429_v10 }
 0x22c   : > { %8274 = vmatpush3.msra.mxu1 %v3429_v10 }
 0x22d   : > { %8379 = vmatprep.subr.mxu1 %v10309_v7 }
 0x234   : > { %v8910_v62 = vpop.eup %8909 }
 0x235   : > { %v2582_v52 = vmul.f32 %v8910_v62, %v2579_v51 }
 0x237   : > { %2584 = vst.msk [vmem:[#allocation5] sm:$0x1] %vm2583_vm5, %v2582_v52  ;;  %v2586_v2 = vmul.f32 %v2582_v52, %v2573_v4 }
 0x239   : > { %v2587_v30 = vsub.f32 %v2585_v38, %v2586_v2 }
 0x23b   : > { %2588 = vst.msk [vmem:[#allocation5 + $0x1] sm:$0x1] %vm2583_vm5, %v2587_v30 }
 0x23e   : > { %v10370_v63 = vld [vmem:[#allocation5] ss:$0 sm:$0xff] }
 0x23f   : > { %v2628_v26 = vmul.f32 %v10370_v63, %v2591_v18  ;;  %v2629_v9 = vmul.f32 %v10370_v63, %v2592_v27  ;;  %v2630_v35 = vmul.f32 %v10370_v63, %v2593_v17  ;;  %v2631_v8 = vmul.f32 %v10370_v63, %v2594_v60 }
 0x240   : > { %v2632_v11 = vmul.f32 %v10370_v63, %v2595_v31  ;;  %v2633_v24 = vmul.f32 %v10370_v63, %v2596_v12  ;;  %v2634_v53 = vmul.f32 %v10370_v63, %v2597_v5  ;;  %v2635_v46 = vmul.f32 %v10370_v63, %v2598_v23 }
 0x241   : > { %v2636_v45 = vmul.f32 %v10370_v63, %v2599_v34  ;;  %v2637_v29 = vmul.f32 %v10370_v63, %v2600_v33  ;;  %v2638_v42 = vmul.f32 %v10370_v63, %v2601_v37  ;;  %v2639_v61 = vmul.f32 %v10370_v63, %v2602_v6 }
 0x242   : > { %v10382_v58 = vld [vmem:[#allocation5 + $0x1] ss:$0 sm:$0xff]  ;;  %v2640_v55 = vmul.f32 %v10370_v63, %v2603_v59  ;;  %v2641_v1 = vmul.f32 %v10370_v63, %v2604_v49  ;;  %v2642_v56 = vmul.f32 %v10370_v63, %v2605_v40  ;;  %v2643_v54 = vmul.f32 %v10370_v63, %v2606_v50 }
 0x243   : > { %v2665_v22 = vadd.f32 %v10382_v58, %v2628_v26  ;;  %v2666_v41 = vadd.f32 %v10382_v58, %v2629_v9  ;;  %v2667_v15 = vadd.f32 %v10382_v58, %v2630_v35  ;;  %v2668_v19 = vadd.f32 %v10382_v58, %v2631_v8  ;;  %v2607_v8 = vld [vmem:[#allocation2 + $0x80] sm:$0xff] }
 0x244   : > { %v2669_v3 = vadd.f32 %v10382_v58, %v2632_v11  ;;  %v2670_v25 = vadd.f32 %v10382_v58, %v2633_v24  ;;  %v2671_v43 = vadd.f32 %v10382_v58, %v2634_v53  ;;  %v2672_v10 = vadd.f32 %v10382_v58, %v2635_v46  ;;  %v2608_v11 = vld [vmem:[#allocation2 + $0x88] sm:$0xff] }
 0x245   : > { %v2729_v47 = vmul.f32 0.70710677, %v2665_v22  ;;  %v2730_v57 = vmul.f32 0.70710677, %v2666_v41  ;;  %v10398_v13 = vmul.f32 0.5, %v2665_v22  ;;  %v10400_v51 = vmul.f32 0.5, %v2666_v41 }
 0x246   : > { %v2731_v4 = vmul.f32 0.70710677, %v2667_v15  ;;  %v2732_v62 = vmul.f32 0.70710677, %v2668_v19  ;;  %v10402_v52 = vmul.f32 0.5, %v2667_v15  ;;  %v10404_v38 = vmul.f32 0.5, %v2668_v19 }
 0x247   : > { %8911 = verf.f32 %v2729_v47  ;;  %v2733_v2 = vmul.f32 0.70710677, %v2669_v3  ;;  %v10406_v30 = vmul.f32 0.5, %v2669_v3  ;;  %v10408_v18 = vmul.f32 0.5, %v2670_v25  ;;  %v2610_v22 = vld [vmem:[#allocation2 + $0x98] sm:$0xff]  ;;  %v2611_v19 = vld [vmem:[#allocation2 + $0xa0] sm:$0xff] }
 0x248   : > { %8913 = verf.f32 %v2730_v57  ;;  %v2734_v27 = vmul.f32 0.70710677, %v2670_v25  ;;  %v2735_v17 = vmul.f32 0.70710677, %v2671_v43  ;;  %v2736_v60 = vmul.f32 0.70710677, %v2672_v10 }
 0x249   : > { %8915 = verf.f32 %v2731_v4  ;;  %v2673_v31 = vadd.f32 %v10382_v58, %v2636_v45  ;;  %v2674_v12 = vadd.f32 %v10382_v58, %v2637_v29  ;;  %v2675_v5 = vadd.f32 %v10382_v58, %v2638_v42 }
 0x24a   : > { %8917 = verf.f32 %v2732_v62  ;;  %v2676_v23 = vadd.f32 %v10382_v58, %v2639_v61  ;;  %v10414_v34 = vmul.f32 0.5, %v2671_v43  ;;  %v2677_v37 = vadd.f32 %v10382_v58, %v2640_v55  ;;  %v2609_v55 = vld [vmem:[#allocation2 + $0x90] sm:$0xff] }
 0x24b   : > { %8919 = verf.f32 %v2733_v2  ;;  %v2737_v33 = vmul.f32 0.70710677, %v2673_v31  ;;  %v10417_v26 = vmul.f32 0.5, %v2672_v10  ;;  %v10419_v9 = vmul.f32 0.5, %v2673_v31 }
 0x24c   : > { %8921 = verf.f32 %v2734_v27  ;;  %v2738_v35 = vmul.f32 0.70710677, %v2674_v12  ;;  %v10421_v6 = vmul.f32 0.5, %v2674_v12  ;;  %v10423_v59 = vmul.f32 0.5, %v2675_v5 }
 0x24d   : > { %8923 = verf.f32 %v2735_v17  ;;  %v2739_v49 = vmul.f32 0.70710677, %v2675_v5  ;;  %v2740_v24 = vmul.f32 0.70710677, %v2676_v23  ;;  %v2741_v53 = vmul.f32 0.70710677, %v2677_v37 }
 0x24e   : > { %8925 = verf.f32 %v2736_v60  ;;  %v2678_v46 = vadd.f32 %v10382_v58, %v2641_v1  ;;  %v2679_v45 = vadd.f32 %v10382_v58, %v2642_v56  ;;  %v2680_v29 = vadd.f32 %v10382_v58, %v2643_v54 }
 0x24f   : > { %8927 = verf.f32 %v2737_v33  ;;  %v2644_v40 = vmul.f32 %v10370_v63, %v2607_v8  ;;  %v10429_v50 = vmul.f32 0.5, %v2676_v23  ;;  %v2645_v61 = vmul.f32 %v10370_v63, %v2608_v11 }
 0x250   : > { %8929 = verf.f32 %v2738_v35  ;;  %v2742_v42 = vmul.f32 0.70710677, %v2678_v46  ;;  %v10432_v41 = vmul.f32 0.5, %v2677_v37  ;;  %v10434_v15 = vmul.f32 0.5, %v2678_v46 }
 0x251   : > { %8931 = verf.f32 %v2739_v49  ;;  %v2743_v1 = vmul.f32 0.70710677, %v2679_v45  ;;  %v2744_v3 = vmul.f32 0.70710677, %v2680_v29  ;;  %v2681_v25 = vadd.f32 %v10382_v58, %v2644_v40 }
 0x252   : > { %8933 = verf.f32 %v2740_v24  ;;  %v2682_v56 = vadd.f32 %v10382_v58, %v2645_v61  ;;  %v10438_v54 = vmul.f32 0.5, %v2679_v45  ;;  %v2646_v47 = vmul.f32 %v10370_v63, %v2609_v55 }
 0x253   : > { %8935 = verf.f32 %v2741_v53  ;;  %v2647_v57 = vmul.f32 %v10370_v63, %v2610_v22  ;;  %v10442_v10 = vmul.f32 0.5, %v2680_v29  ;;  %v2745_v4 = vmul.f32 0.70710677, %v2681_v25 }
 0x254   : > { %v8912_v43 = vpop.eup %8911  ;;  %8937 = verf.f32 %v2742_v42  ;;  %v2648_v62 = vmul.f32 %v10370_v63, %v2611_v19  ;;  %v2746_v17 = vmul.f32 0.70710677, %v2682_v56  ;;  %v10446_v60 = vadd.f32 %v10382_v58, %v2646_v47 }
 0x255   : > { %v8914_v2 = vpop.eup %8913  ;;  %v2793_v27 = vadd.f32 1.0, %v8912_v43  ;;  %8939 = verf.f32 %v2743_v1  ;;  %v10448_v5 = vmul.f32 0.5, %v2681_v25  ;;  %v10450_v23 = vmul.f32 0.5, %v2682_v56 }
 0x256   : > { %v8916_v31 = vpop.eup %8915  ;;  %v2794_v12 = vadd.f32 1.0, %v8914_v2  ;;  %8941 = verf.f32 %v2744_v3  ;;  %v10454_v8 = vadd.f32 %v10382_v58, %v2647_v57  ;;  %v10458_v53 = vadd.f32 %v10382_v58, %v2648_v62 }
 0x257   : > { %v8918_v33 = vpop.eup %8917  ;;  %v2825_v37 = vmul.f32 %v2793_v27, %v10398_v13  ;;  %v2795_v35 = vadd.f32 1.0, %v8916_v31  ;;  %8943 = verf.f32 %v2745_v4  ;;  %v10464_v40 = vmul.f32 0.70710677, %v10446_v60 }
 0x258   : > { %v8920_v49 = vpop.eup %8919  ;;  %v2826_v11 = vmul.f32 %v2794_v12, %v10400_v51  ;;  %v2796_v24 = vadd.f32 1.0, %v8918_v33  ;;  %8945 = verf.f32 %v2746_v17 }
 0x259   : > { %v8922_v46 = vpop.eup %8921  ;;  %2858 = vst.msk [vmem:[#allocation2] sm:$0xff] %vm2857_vm6, %v2825_v37  ;;  %v2895_v45 = vsel %vm2857_vm6, %v2825_v37, 0  ;;  %v2827_v13 = vmul.f32 %v2795_v35, %v10402_v52  ;;  %v2797_v29 = vadd.f32 1.0, %v8920_v49  ;;  %8947 = verf.f32 %v10464_v40  ;;  %v2613_v40 = vld [vmem:[#allocation2 + $0xb0] sm:$0xff] }
 0x25a   : > { %v8924_v42 = vpop.eup %8923  ;;  %v10466_v61 = vand.u32 4294901760, %v2895_v45  ;;  %2859 = vst.msk [vmem:[#allocation2 + $0x8] sm:$0xff] %vm2857_vm6, %v2826_v11  ;;  %v2898_v51 = vsel %vm2857_vm6, %v2826_v11, 0  ;;  %v2828_v55 = vmul.f32 %v2796_v24, %v10404_v38  ;;  %v2798_v22 = vadd.f32 1.0, %v8922_v46 }
 0x25b   : > { %v8926_v1 = vpop.eup %8925  ;;  %v10471_v19 = vand.u32 4294901760, %v2898_v51  ;;  %2860 = vst.msk [vmem:[#allocation2 + $0x10] sm:$0xff] %vm2857_vm6, %v2827_v13  ;;  %v2901_v52 = vsel %vm2857_vm6, %v2827_v13, 0  ;;  %v2829_v3 = vmul.f32 %v2797_v29, %v10406_v30  ;;  %v2799_v25 = vadd.f32 1.0, %v8924_v42 }
 0x25c   : > { %v8928_v56 = vpop.eup %8927  ;;  %v10477_v47 = vsub.f32 %v2895_v45, %v10466_v61  ;;  %8275 = vmatprep.mubr.f32.mxu1 %v10466_v61  ;;  %v10480_v57 = vand.u32 4294901760, %v2901_v52  ;;  %2861 = vst.msk [vmem:[#allocation2 + $0x18] sm:$0xff] %vm2857_vm6, %v2828_v55  ;;  %v2904_v38 = vsel %vm2857_vm6, %v2828_v55, 0  ;;  %v2830_v43 = vmul.f32 %v2798_v22, %v10408_v18 }
 0x25d   : > { %v8930_v4 = vpop.eup %8929  ;;  %v10486_v62 = vsub.f32 %v2898_v51, %v10471_v19  ;;  %8276 = vmatmul.mubr.f32.vlgmr.msra.gmra.mxu1 %v10471_v19  ;;  %v10489_v30 = vand.u32 4294901760, %v2904_v38  ;;  %2862 = vst.msk [vmem:[#allocation2 + $0x20] sm:$0xff] %vm2857_vm6, %v2829_v3  ;;  %v2907_v2 = vsel %vm2857_vm6, %v2829_v3, 0  ;;  %v2831_v27 = vmul.f32 %v2799_v25, %v10414_v34 }
 0x25e   : > { %v10494_v17 = vpop.eup %8931  ;;  %v12784_v31 = vand.u32 4294901760, %v10477_v47  ;;  %8380 = vmatpush3.msra.mxu1 %v10309_v7  ;;  %v10499_v18 = vsub.f32 %v2901_v52, %v10480_v57  ;;  %8278 = vmatprep.mubr.f32.mxu1 %v10480_v57  ;;  %v10502_v12 = vand.u32 4294901760, %v2907_v2  ;;  %2863 = vst.msk [vmem:[#allocation2 + $0x28] sm:$0xff] %vm2857_vm6, %v2830_v43  ;;  %v2910_v33 = vsel %vm2857_vm6, %v2830_v43, 0 }
 0x25f   : > { %v8934_v37 = vpop.eup %8933  ;;  %v12783_v34 = vand.u32 4294901760, %v10486_v62  ;;  %v10508_v35 = vsub.f32 %v2904_v38, %v10489_v30  ;;  %v10510_v49 = vand.u32 4294901760, %v2910_v33  ;;  %2864 = vst.msk [vmem:[#allocation2 + $0x30] sm:$0xff] %vm2857_vm6, %v2831_v27  ;;  %v2913_v11 = vsel %vm2857_vm6, %v2831_v27, 0  ;;  %8381 = vmatprep.subr.mxu1 %v10311_v21 }
 0x260   : > { %13052 = vst [vmem:[#allocation47_spill] sm:$0xff] %v10502_v12  ;;  %v8936_v24 = vpop.eup %8935  ;;  %v3062_v46 = vsub.f32 %v10477_v47, %v12784_v31  ;;  %v12782_v45 = vand.u32 4294901760, %v10499_v18  ;;  %v10520_v13 = vsub.f32 %v2907_v2, %v10502_v12  ;;  %v10522_v29 = vand.u32 4294901760, %v2913_v11  ;;  %8382 = vmatpush3.msra.mxu1 %v10311_v21 }
 0x261   : > { %v10525_v42 = vpop.eup %8937  ;;  %v3072_v51 = vsub.f32 %v10486_v62, %v12783_v34  ;;  %v12787_v55 = vand.u32 4294901760, %v10508_v35  ;;  %8279 = vmatmul.mubr.f32.gmra.mxu1 %v10489_v30  ;;  %v10533_v22 = vsub.f32 %v2910_v33, %v10510_v49  ;;  %v2800_v52 = vadd.f32 1.0, %v8926_v1  ;;  %8383 = vmatprep.subr.mxu1 %v10313_v16 }
 0x262   : > { %v10536_v3 = vpop.eup %8939  ;;  %v3063_v25 = vand.u32 4294901760, %v3062_v46  ;;  %v3082_v38 = vsub.f32 %v10499_v18, %v12782_v45  ;;  %v12788_v43 = vand.u32 4294901760, %v10520_v13  ;;  %8281 = vmatprep.mubr.f32.mxu1 %v10502_v12  ;;  %v10544_v2 = vsub.f32 %v2913_v11, %v10522_v29  ;;  %8384 = vmatpush3.msra.mxu1 %v10313_v16 }
 0x263   : > { %v10547_v27 = vpop.eup %8941  ;;  %v3073_v1 = vand.u32 4294901760, %v3072_v51  ;;  %v3092_v33 = vsub.f32 %v10508_v35, %v12787_v55  ;;  %v2832_v45 = vmul.f32 %v2800_v52, %v10417_v26  ;;  %8385 = vmatprep.subr.mxu1 %v10318_v14  ;;  %v2801_v12 = vadd.f32 1.0, %v8928_v56 }
 0x264   : > { %v10555_v34 = vpop.eup %8943  ;;  %8219 = vmatprep.mubr.f32.mxu0 %v3063_v25  ;;  %v3083_v11 = vand.u32 4294901760, %v3082_v38  ;;  %v3102_v31 = vsub.f32 %v10520_v13, %v12788_v43  ;;  %v12789_v51 = vand.u32 4294901760, %v10544_v2  ;;  %8386 = vmatpush3.msra.mxu1 %v10318_v14  ;;  %v13053_v26 = vand.u32 4294901760, %v10533_v22 }
 0x265   : > { %v10562_v55 = vpop.eup %8945  ;;  %8220 = vmatmul.mubr.f32.vlgmr.msra.gmra.mxu0 %v3073_v1  ;;  %v3093_v46 = vand.u32 4294901760, %v3092_v33  ;;  %8282 = vmatmul.mubr.f32.gmra.mxu1 %v10510_v49  ;;  %2865 = vst.msk [vmem:[#allocation2 + $0x38] sm:$0xff] %vm2857_vm6, %v2832_v45  ;;  %v2916_v25 = vsel %vm2857_vm6, %v2832_v45, 0  ;;  %v2802_v38 = vadd.f32 1.0, %v8930_v4  ;;  %v2833_v43 = vmul.f32 %v2801_v12, %v10419_v9 }
 0x266   : > { %v3112_v52 = vsub.f32 %v10533_v22, %v13053_v26  ;;  %8324 = vmatpush3.msra.mxu0 %v10322_v44  ;;  %8222 = vmatprep.mubr.f32.mxu0 %v3083_v11  ;;  %v3103_v56 = vand.u32 4294901760, %v3102_v31  ;;  %v3122_v1 = vsub.f32 %v10544_v2, %v12789_v51  ;;  %v10574_v33 = vand.u32 4294901760, %v2916_v25 }
 0x267   : > { %8284 = vmatprep.mubr.f32.mxu1 %v10522_v29  ;;  %8325 = vmatprep.subr.mxu0 %v10325_v20  ;;  %v2834_v45 = vmul.f32 %v2802_v38, %v10421_v6  ;;  %v2803_v4 = vadd.f32 1.0, %v10494_v17  ;;  %v2804_v44 = vadd.f32 1.0, %v8934_v37  ;;  %2866 = vst.msk [vmem:[#allocation2 + $0x40] sm:$0xff] %vm2857_vm6, %v2833_v43  ;;  %v2919_v51 = vsel %vm2857_vm6, %v2833_v43, 0 }
 0x268   : > { %v3113_v26 = vand.u32 4294901760, %v3112_v52  ;;  %v3123_v11 = vand.u32 4294901760, %v3122_v1  ;;  %v10582_v31 = vsub.f32 %v2916_v25, %v10574_v33  ;;  %8326 = vmatpush3.msra.mxu0 %v10325_v20  ;;  %v2805_v9 = vadd.f32 1.0, %v8936_v24  ;;  %8491 = vmatprep.subr.mxu1 %v10309_v7 }
 0x269   : > { %8223 = vmatmul.mubr.f32.gmra.mxu0 %v3093_v46  ;;  %8285 = vmatmul.mubr.f32.gmra.mxu1 %v10574_v33  ;;  %v10589_v6 = vand.u32 4294901760, %v2919_v51  ;;  %2867 = vst.msk [vmem:[#allocation2 + $0x48] sm:$0xff] %vm2857_vm6, %v2834_v45  ;;  %v2922_v17 = vsel %vm2857_vm6, %v2834_v45, 0  ;;  %v2835_v12 = vmul.f32 %v2803_v4, %v10423_v59  ;;  %v2836_v37 = vmul.f32 %v2804_v44, %v10429_v50 }
 0x26a   : > { %8225 = vmatprep.mubr.f32.mxu0 %v3103_v56  ;;  %v12797_v43 = vand.u32 4294901760, %v10582_v31  ;;  %v10596_v20 = vand.u32 4294901760, %v2922_v17  ;;  %v2837_v24 = vmul.f32 %v2805_v9, %v10432_v41  ;;  %v2806_v46 = vadd.f32 1.0, %v10525_v42  ;;  %8327 = vmatprep.subr.mxu0 %v10328_v28 }
 0x26b   : > { %13054 = vst [vmem:[#allocation48_spill] sm:$0xff] %v10589_v6  ;;  %v10602_v52 = vsub.f32 %v2919_v51, %v10589_v6  ;;  %8287 = vmatprep.mubr.f32.mxu1 %v10589_v6  ;;  %2868 = vst.msk [vmem:[#allocation2 + $0x50] sm:$0xff] %vm2857_vm6, %v2835_v12  ;;  %v2925_v59 = vsel %vm2857_vm6, %v2835_v12, 0  ;;  %v2928_v50 = vsel %vm2857_vm6, %v2836_v37, 0  ;;  %v2807_v25 = vadd.f32 1.0, %v10536_v3  ;;  %8328 = vmatpush3.msra.mxu0 %v10328_v28 }
 0x26c   : > { %13055 = vst [vmem:[#allocation49_spill] sm:$0xff] %v10596_v20  ;;  %2869 = vst.msk [vmem:[#allocation2 + $0x58] sm:$0xff] %vm2857_vm6, %v2836_v37  ;;  %v3132_v41 = vsub.f32 %v10582_v31, %v12797_v43  ;;  %v10615_v42 = vsub.f32 %v2922_v17, %v10596_v20  ;;  %v10617_v51 = vand.u32 4294901760, %v2925_v59  ;;  %v10619_v38 = vand.u32 4294901760, %v2928_v50  ;;  %8329 = vmatprep.subr.mxu0 %v10332_v32 }
 0x26d   : > { %2870 = vst.msk [vmem:[#allocation2 + $0x60] sm:$0xff] %vm2857_vm6, %v2837_v24  ;;  %8226 = vmatmul.mubr.f32.gmra.mxu0 %v3113_v26  ;;  %v12796_v3 = vand.u32 4294901760, %v10602_v52  ;;  %8288 = vmatmul.mubr.f32.gmra.mxu1 %v10596_v20  ;;  %v2931_v28 = vsel %vm2857_vm6, %v2837_v24, 0  ;;  %v2838_v56 = vmul.f32 %v2806_v46, %v10434_v15  ;;  %v2839_v1 = vmul.f32 %v2807_v25, %v10438_v54 }
 0x26e   : > { %13056 = vst [vmem:[#allocation50_spill] sm:$0xff] %v10617_v51  ;;  %13057 = vst [vmem:[#allocation51_spill] sm:$0xff] %v10619_v38  ;;  %8228 = vmatprep.mubr.f32.mxu0 %v3123_v11  ;;  %v3133_v45 = vand.u32 4294901760, %v3132_v41  ;;  %v12791_v4 = vand.u32 4294901760, %v10615_v42  ;;  %v10630_v44 = vsub.f32 %v2925_v59, %v10617_v51  ;;  %8290 = vmatprep.mubr.f32.mxu1 %v10617_v51  ;;  %v10639_v17 = vand.u32 4294901760, %v2931_v28  ;;  %v8948_v51 = vpop.eup %8947 }
 0x26f   : > { %v10634_v26 = vsub.f32 %v2928_v50, %v10619_v38  ;;  %v3142_v9 = vsub.f32 %v10602_v52, %v12796_v3  ;;  %2871 = vst.msk [vmem:[#allocation2 + $0x68] sm:$0xff] %vm2857_vm6, %v2838_v56  ;;  %v2934_v15 = vsel %vm2857_vm6, %v2838_v56, 0  ;;  %2872 = vst.msk [vmem:[#allocation2 + $0x70] sm:$0xff] %vm2857_vm6, %v2839_v1  ;;  %v2937_v54 = vsel %vm2857_vm6, %v2839_v1, 0  ;;  %8330 = vmatpush3.msra.mxu0 %v10332_v32 }
 0x270   : > { %13058 = vst [vmem:[#allocation52_spill] sm:$0xff] %v10639_v17  ;;  %v3152_v11 = vsub.f32 %v10615_v42, %v12791_v4  ;;  %v12790_v12 = vand.u32 4294901760, %v10630_v44  ;;  %v10651_v24 = vand.u32 4294901760, %v2934_v15  ;;  %8435 = vmatprep.subr.mxu0 %v10335_v48  ;;  %v10656_v59 = vsub.f32 %v2931_v28, %v10639_v17 }
 0x271   : > { %v12792_v37 = vand.u32 4294901760, %v10634_v26  ;;  %8229 = vmatmul.mubr.f32.gmra.mxu0 %v3133_v45  ;;  %v3143_v46 = vand.u32 4294901760, %v3142_v9  ;;  %8291 = vmatmul.mubr.f32.gmra.mxu1 %v10619_v38  ;;  %v10658_v32 = vand.u32 4294901760, %v2937_v54  ;;  %v2808_v50 = vadd.f32 1.0, %v10547_v27 }
 0x272   : > { %13059 = vst [vmem:[#allocation53_spill] sm:$0xff] %v10651_v24  ;;  %v3153_v25 = vand.u32 4294901760, %v3152_v11  ;;  %v3162_v41 = vsub.f32 %v10630_v44, %v12790_v12  ;;  %8293 = vmatprep.mubr.f32.mxu1 %v10639_v17  ;;  %v10669_v1 = vsub.f32 %v2934_v15, %v10651_v24  ;;  %v12795_v28 = vand.u32 4294901760, %v10656_v59 }
 0x273   : > { %13060 = vst [vmem:[#allocation54_spill] sm:$0xff] %v10658_v32  ;;  %v3172_v56 = vsub.f32 %v10634_v26, %v12792_v37  ;;  %8231 = vmatprep.mubr.f32.mxu0 %v3143_v46  ;;  %v10673_v45 = vsub.f32 %v2937_v54, %v10658_v32  ;;  %v2840_v27 = vmul.f32 %v2808_v50, %v10442_v10  ;;  %v2809_v9 = vadd.f32 1.0, %v10555_v34 }
 0x274   : > { %v3163_v11 = vand.u32 4294901760, %v3162_v41  ;;  %v12794_v4 = vand.u32 4294901760, %v10669_v1  ;;  %v2810_v37 = vadd.f32 1.0, %v10562_v55  ;;  %v3182_v15 = vsub.f32 %v10656_v59, %v12795_v28 }
 0x275   : > { %v3173_v12 = vand.u32 4294901760, %v3172_v56  ;;  %8232 = vmatmul.mubr.f32.gmra.mxu0 %v3153_v25  ;;  %8294 = vmatmul.mubr.f32.gmra.mxu1 %v10651_v24  ;;  %v12793_v54 = vand.u32 4294901760, %v10673_v45  ;;  %2873 = vst.msk [vmem:[#allocation2 + $0x78] sm:$0xff] %vm2857_vm6, %v2840_v27  ;;  %v2940_v10 = vsel %vm2857_vm6, %v2840_v27, 0  ;;  %v2841_v34 = vmul.f32 %v2809_v9, %v10448_v5  ;;  %v2612_v27 = vld [vmem:[#allocation2 + $0xa8] sm:$0xff]  ;;  %v2621_v24 = vld [vmem:[#allocation2 + $0xf0] sm:$0xff] }
 0x276   : > { %8234 = vmatprep.mubr.f32.mxu0 %v3163_v11  ;;  %v3192_v55 = vsub.f32 %v10669_v1, %v12794_v4  ;;  %8296 = vmatprep.mubr.f32.mxu1 %v10658_v32  ;;  %v10691_v46 = vand.u32 4294901760, %v2940_v10  ;;  %v2842_v50 = vmul.f32 %v2810_v37, %v10450_v23  ;;  %v3183_v25 = vand.u32 4294901760, %v3182_v15  ;;  %v2614_v37 = vld [vmem:[#allocation2 + $0xb8] sm:$0xff]  ;;  %v2615_v15 = vld [vmem:[#allocation2 + $0xc0] sm:$0xff] }
 0x277   : > { %v3202_v41 = vsub.f32 %v10673_v45, %v12793_v54  ;;  %2874 = vst.msk [vmem:[#allocation2 + $0x80] sm:$0xff] %vm2857_vm6, %v2841_v34  ;;  %v2943_v5 = vsel %vm2857_vm6, %v2841_v34, 0  ;;  %v2748_v56 = vmul.f32 0.70710677, %v10454_v8  ;;  %v2649_v3 = vmul.f32 %v10370_v63, %v2612_v27 }
 0x278   : > { %13061 = vst [vmem:[#allocation55_spill] sm:$0xff] %v10691_v46  ;;  %v10702_v9 = vsub.f32 %v2940_v10, %v10691_v46  ;;  %v10704_v11 = vand.u32 4294901760, %v2943_v5  ;;  %2875 = vst.msk [vmem:[#allocation2 + $0x88] sm:$0xff] %vm2857_vm6, %v2842_v50  ;;  %v2946_v23 = vsel %vm2857_vm6, %v2842_v50, 0  ;;  %v3193_v54 = vand.u32 4294901760, %v3192_v55 }
 0x279   : > { %8235 = vmatmul.mubr.f32.gmra.mxu0 %v3173_v12  ;;  %v3203_v4 = vand.u32 4294901760, %v3202_v41  ;;  %8297 = vmatmul.mubr.f32.gmra.mxu1 %v10691_v46  ;;  %v10709_v34 = vand.u32 4294901760, %v2946_v23  ;;  %8949 = verf.f32 %v2748_v56  ;;  %v2749_v50 = vmul.f32 0.70710677, %v10458_v53  ;;  %v2618_v46 = vld [vmem:[#allocation2 + $0xd8] sm:$0xff] }
 0x27a   : > { %13062 = vst [vmem:[#allocation56_spill] sm:$0xff] %v10704_v11  ;;  %8237 = vmatprep.mubr.f32.mxu0 %v3183_v25  ;;  %v12798_v10 = vand.u32 4294901760, %v10702_v9  ;;  %v10713_v28 = vsub.f32 %v2943_v5, %v10704_v11  ;;  %8299 = vmatprep.mubr.f32.mxu1 %v10704_v11  ;;  %v2650_v55 = vmul.f32 %v10370_v63, %v2613_v40  ;;  %v2616_v11 = vld [vmem:[#allocation2 + $0xc8] sm:$0xff] }
 0x27b   : > { %13063 = vst [vmem:[#allocation57_spill] sm:$0xff] %v10709_v34  ;;  %v10719_v12 = vsub.f32 %v2946_v23, %v10709_v34  ;;  %v2651_v41 = vmul.f32 %v10370_v63, %v2614_v37  ;;  %v2652_v25 = vmul.f32 %v10370_v63, %v2615_v15  ;;  %8951 = verf.f32 %v2749_v50 }
 0x27c   : > { %v3212_v5 = vsub.f32 %v10702_v9, %v12798_v10  ;;  %v12809_v56 = vand.u32 4294901760, %v10713_v28  ;;  %v2686_v43 = vadd.f32 %v10382_v58, %v2649_v3  ;;  %v2687_v23 = vadd.f32 %v10382_v58, %v2650_v55  ;;  %v2617_v55 = vld [vmem:[#allocation2 + $0xd0] sm:$0xff] }
 0x27d   : > { %8238 = vmatmul.mubr.f32.gmra.mxu0 %v3193_v54  ;;  %v12814_v27 = vand.u32 4294901760, %v10719_v12  ;;  %8300 = vmatmul.mubr.f32.gmra.mxu1 %v10709_v34  ;;  %v2688_v40 = vadd.f32 %v10382_v58, %v2651_v41  ;;  %v2689_v37 = vadd.f32 %v10382_v58, %v2652_v25  ;;  %v2715_v54 = vmul.f32 0.5, %v10446_v60  ;;  %v2619_v41 = vld [vmem:[#allocation2 + $0xe0] sm:$0xff] }
 0x27e   : > { %8240 = vmatprep.mubr.f32.mxu0 %v3203_v4  ;;  %v3213_v15 = vand.u32 4294901760, %v3212_v5  ;;  %v3222_v10 = vsub.f32 %v10713_v28, %v12809_v56  ;;  %v2750_v50 = vmul.f32 0.70710677, %v2686_v43  ;;  %v2751_v34 = vmul.f32 0.70710677, %v2687_v23  ;;  %v2620_v5 = vld [vmem:[#allocation2 + $0xe8] sm:$0xff] }
 0x27f   : > { %v3232_v3 = vsub.f32 %v10719_v12, %v12814_v27  ;;  %v2716_v4 = vmul.f32 0.5, %v10454_v8  ;;  %v2752_v25 = vmul.f32 0.70710677, %v2688_v40  ;;  %v2753_v17 = vmul.f32 0.70710677, %v2689_v37 }
 0x280   : > { %v3223_v32 = vand.u32 4294901760, %v3222_v10  ;;  %8953 = verf.f32 %v2750_v50  ;;  %v2653_v38 = vmul.f32 %v10370_v63, %v2616_v11  ;;  %v2654_v60 = vmul.f32 %v10370_v63, %v2617_v55 }
 0x281   : > { %8241 = vmatmul.mubr.f32.gmra.mxu0 %v3213_v15  ;;  %v3233_v56 = vand.u32 4294901760, %v3232_v3  ;;  %8955 = verf.f32 %v2751_v34  ;;  %v2655_v27 = vmul.f32 %v10370_v63, %v2618_v46  ;;  %v2656_v10 = vmul.f32 %v10370_v63, %v2619_v41 }
 0x282   : > { %8243 = vmatprep.mubr.f32.mxu0 %v3223_v32  ;;  %8957 = verf.f32 %v2752_v25  ;;  %v2690_v8 = vadd.f32 %v10382_v58, %v2653_v38  ;;  %v2657_v50 = vmul.f32 %v10370_v63, %v2620_v5  ;;  %v2658_v15 = vmul.f32 %v10370_v63, %v2621_v24 }
 0x283   : > { %8959 = verf.f32 %v2753_v17  ;;  %v2811_v34 = vadd.f32 1.0, %v8948_v51  ;;  %v2691_v3 = vadd.f32 %v10382_v58, %v2654_v60  ;;  %v2692_v32 = vadd.f32 %v10382_v58, %v2655_v27 }
 0x284   : > { %v2693_v11 = vadd.f32 %v10382_v58, %v2656_v10  ;;  %v2717_v46 = vmul.f32 0.5, %v10458_v53  ;;  %v2718_v55 = vmul.f32 0.5, %v2686_v43  ;;  %v2754_v41 = vmul.f32 0.70710677, %v2690_v8  ;;  %v2622_v43 = vld [vmem:[#allocation2 + $0xf8] sm:$0xff] }
 0x285   : > { %8244 = vmatmul.mubr.f32.gmra.mxu0 %v3233_v56  ;;  %v2694_v17 = vadd.f32 %v10382_v58, %v2657_v50  ;;  %v2843_v38 = vmul.f32 %v2811_v34, %v2715_v54  ;;  %v2719_v20 = vmul.f32 0.5, %v2687_v23  ;;  %v2755_v5 = vmul.f32 0.70710677, %v2691_v3 }
 0x286   : > { %v8950_v25 = vpop.eup %8949  ;;  %v2695_v24 = vadd.f32 %v10382_v58, %v2658_v15  ;;  %v2720_v6 = vmul.f32 0.5, %v2688_v40  ;;  %8961 = verf.f32 %v2754_v41  ;;  %v2756_v60 = vmul.f32 0.70710677, %v2692_v32 }
 0x287   : > { %v2812_v51 = vadd.f32 1.0, %v8950_v25  ;;  %2876 = vst.msk [vmem:[#allocation2 + $0x90] sm:$0xff] %vm2857_vm6, %v2843_v38  ;;  %v2949_v56 = vsel %vm2857_vm6, %v2843_v38, 0  ;;  %v2721_v27 = vmul.f32 0.5, %v2689_v37  ;;  %8963 = verf.f32 %v2755_v5 }
 0x288   : > { %v2757_v53 = vmul.f32 0.70710677, %v2693_v11  ;;  %v8952_v10 = vpop.eup %8951  ;;  %v10757_v50 = vand.u32 4294901760, %v2949_v56  ;;  %8965 = verf.f32 %v2756_v60  ;;  %v2758_v23 = vmul.f32 0.70710677, %v2694_v17 }
 0x289   : > { %v2844_v54 = vmul.f32 %v2812_v51, %v2716_v4  ;;  %v2813_v34 = vadd.f32 1.0, %v8952_v10  ;;  %v10759_v15 = vmul.f32 0.5, %v2690_v8  ;;  %v2759_v40 = vmul.f32 0.70710677, %v2695_v24 }
 0x28a   : > { %13064 = vst [vmem:[#allocation58_spill] sm:$0xff] %v10757_v50  ;;  %8967 = verf.f32 %v2757_v53  ;;  %v10762_v41 = vsub.f32 %v2949_v56, %v10757_v50  ;;  %8302 = vmatprep.mubr.f32.mxu1 %v10757_v50  ;;  %v10767_v25 = vmul.f32 0.5, %v2691_v3  ;;  %v2659_v4 = vmul.f32 %v10370_v63, %v2622_v43 }
 0x28b   : > { %2877 = vst.msk [vmem:[#allocation2 + $0x98] sm:$0xff] %vm2857_vm6, %v2844_v54  ;;  %v2952_v37 = vsel %vm2857_vm6, %v2844_v54, 0  ;;  %v2845_v5 = vmul.f32 %v2813_v34, %v2717_v46  ;;  %v10772_v8 = vmul.f32 0.5, %v2692_v32  ;;  %v10774_v51 = vmul.f32 0.5, %v2693_v11 }
 0x28c   : > { %v10770_v38 = vand.u32 4294901760, %v2952_v37  ;;  %v12825_v56 = vand.u32 4294901760, %v10762_v41  ;;  %v10777_v53 = vmul.f32 0.5, %v2694_v17  ;;  %8969 = verf.f32 %v2758_v23 }
 0x28d   : > { %v8954_v60 = vpop.eup %8953  ;;  %v2696_v10 = vadd.f32 %v10382_v58, %v2659_v4  ;;  %2878 = vst.msk [vmem:[#allocation2 + $0xa0] sm:$0xff] %vm2857_vm6, %v2845_v5  ;;  %v2955_v63 = vsel %vm2857_vm6, %v2845_v5, 0  ;;  %8971 = verf.f32 %v2759_v40  ;;  %v10791_v43 = vmul.f32 0.5, %v2695_v24 }
 0x28e   : > { %13065 = vst [vmem:[#allocation59_spill] sm:$0xff] %v10770_v38  ;;  %v8956_v54 = vpop.eup %8955  ;;  %v10781_v3 = vsub.f32 %v2952_v37, %v10770_v38  ;;  %8303 = vmatmul.mubr.f32.gmra.mxu1 %v10770_v38  ;;  %v2814_v32 = vadd.f32 1.0, %v8954_v60  ;;  %v3242_v46 = vsub.f32 %v10762_v41, %v12825_v56  ;;  %v10789_v17 = vand.u32 4294901760, %v2955_v63 }
 0x28f   : > { %v8958_v11 = vpop.eup %8957  ;;  %v2815_v58 = vadd.f32 1.0, %v8956_v54  ;;  %v2760_v38 = vmul.f32 0.70710677, %v2696_v10 }
 0x290   : > { %13066 = vst [vmem:[#allocation60_spill] sm:$0xff] %v10789_v17  ;;  %v8960_v23 = vpop.eup %8959  ;;  %v12827_v34 = vand.u32 4294901760, %v10781_v3  ;;  %v2846_v37 = vmul.f32 %v2814_v32, %v2718_v55  ;;  %v2816_v4 = vadd.f32 1.0, %v8958_v11  ;;  %v3243_v50 = vand.u32 4294901760, %v3242_v46  ;;  %8305 = vmatprep.mubr.f32.mxu1 %v10789_v17 }
 0x291   : > { %v10795_v5 = vsub.f32 %v2955_v63, %v10789_v17  ;;  %v2847_v40 = vmul.f32 %v2815_v58, %v2719_v20  ;;  %v2817_v60 = vadd.f32 1.0, %v8960_v23  ;;  %8973 = verf.f32 %v2760_v38 }
 0x292   : > { %v3252_v54 = vsub.f32 %v10781_v3, %v12827_v34  ;;  %2879 = vst.msk [vmem:[#allocation2 + $0xa8] sm:$0xff] %vm2857_vm6, %v2846_v37  ;;  %v2958_v24 = vsel %vm2857_vm6, %v2846_v37, 0  ;;  %v2848_v56 = vmul.f32 %v2816_v4, %v2720_v6  ;;  %8246 = vmatprep.mubr.f32.mxu0 %v3243_v50  ;;  %v10812_v6 = vmul.f32 0.5, %v2696_v10 }
 0x293   : > { %v12826_v55 = vand.u32 4294901760, %v10795_v5  ;;  %v10804_v32 = vand.u32 4294901760, %v2958_v24  ;;  %2880 = vst.msk [vmem:[#allocation2 + $0xb0] sm:$0xff] %vm2857_vm6, %v2847_v40  ;;  %v2961_v20 = vsel %vm2857_vm6, %v2847_v40, 0  ;;  %v2849_v63 = vmul.f32 %v2817_v60, %v2721_v27  ;;  %v8962_v11 = vpop.eup %8961 }
 0x294   : > { %v3253_v46 = vand.u32 4294901760, %v3252_v54  ;;  %v10808_v58 = vand.u32 4294901760, %v2961_v20  ;;  %2881 = vst.msk [vmem:[#allocation2 + $0xb8] sm:$0xff] %vm2857_vm6, %v2848_v56  ;;  %v2964_v23 = vsel %vm2857_vm6, %v2848_v56, 0  ;;  %v8964_v50 = vpop.eup %8963  ;;  %v2818_v60 = vadd.f32 1.0, %v8962_v11 }
 0x295   : > { %13067 = vst [vmem:[#allocation61_spill] sm:$0xff] %v10804_v32  ;;  %v3262_v38 = vsub.f32 %v10795_v5, %v12826_v55  ;;  %v10818_v37 = vsub.f32 %v2958_v24, %v10804_v32  ;;  %8306 = vmatmul.mubr.f32.gmra.mxu1 %v10804_v32  ;;  %v10821_v27 = vand.u32 4294901760, %v2964_v23  ;;  %2882 = vst.msk [vmem:[#allocation2 + $0xc0] sm:$0xff] %vm2857_vm6, %v2849_v63  ;;  %v2967_v4 = vsel %vm2857_vm6, %v2849_v63, 0  ;;  %v8966_v40 = vpop.eup %8965 }
 0x296   : > { %13068 = vst [vmem:[#allocation62_spill] sm:$0xff] %v10808_v58  ;;  %8247 = vmatmul.mubr.f32.gmra.mxu0 %v3253_v46  ;;  %v10826_v56 = vsub.f32 %v2961_v20, %v10808_v58  ;;  %8308 = vmatprep.mubr.f32.mxu1 %v10808_v58  ;;  %v10829_v10 = vand.u32 4294901760, %v2967_v4  ;;  %v2819_v54 = vadd.f32 1.0, %v8964_v50  ;;  %v2820_v17 = vadd.f32 1.0, %v8966_v40 }
 0x297   : > { %13069 = vst [vmem:[#allocation63_spill] sm:$0xff] %v10821_v27  ;;  %v8968_v24 = vpop.eup %8967  ;;  %v3263_v55 = vand.u32 4294901760, %v3262_v38  ;;  %v12835_v34 = vand.u32 4294901760, %v10818_v37  ;;  %v10833_v32 = vsub.f32 %v2964_v23, %v10821_v27  ;;  %v2850_v20 = vmul.f32 %v2818_v60, %v10759_v15 }
 0x298   : > { %13070 = vst [vmem:[#allocation64_spill] sm:$0xff] %v10829_v10  ;;  %v12834_v63 = vand.u32 4294901760, %v10826_v56  ;;  %v10837_v46 = vsub.f32 %v2967_v4, %v10829_v10  ;;  %v2851_v58 = vmul.f32 %v2819_v54, %v10767_v25  ;;  %v2852_v23 = vmul.f32 %v2820_v17, %v10772_v8 }
 0x299   : > { %8249 = vmatprep.mubr.f32.mxu0 %v3263_v55  ;;  %v3272_v11 = vsub.f32 %v10818_v37, %v12835_v34  ;;  %v12838_v50 = vand.u32 4294901760, %v10833_v32  ;;  %8309 = vmatmul.mubr.f32.gmra.mxu1 %v10821_v27  ;;  %v2821_v38 = vadd.f32 1.0, %v8968_v24  ;;  %v8970_v40 = vpop.eup %8969  ;;  %2883 = vst.msk [vmem:[#allocation2 + $0xc8] sm:$0xff] %vm2857_vm6, %v2850_v20  ;;  %v2970_v25 = vsel %vm2857_vm6, %v2850_v20, 0 }
 0x29a   : > { %v3282_v4 = vsub.f32 %v10826_v56, %v12834_v63  ;;  %v12841_v15 = vand.u32 4294901760, %v10837_v46  ;;  %8311 = vmatprep.mubr.f32.mxu1 %v10829_v10  ;;  %2884 = vst.msk [vmem:[#allocation2 + $0xd0] sm:$0xff] %vm2857_vm6, %v2851_v58  ;;  %v2973_v55 = vsel %vm2857_vm6, %v2851_v58, 0  ;;  %v8972_v60 = vpop.eup %8971  ;;  %v10859_v54 = vand.u32 4294901760, %v2970_v25  ;;  %2885 = vst.msk [vmem:[#allocation2 + $0xd8] sm:$0xff] %vm2857_vm6, %v2852_v23 }
 0x29b   : > { %v3273_v8 = vand.u32 4294901760, %v3272_v11  ;;  %v3292_v17 = vsub.f32 %v10833_v32, %v12838_v50  ;;  %v10861_v24 = vand.u32 4294901760, %v2973_v55  ;;  %v2976_v34 = vsel %vm2857_vm6, %v2852_v23, 0 }
 0x29c   : > { %v3283_v63 = vand.u32 4294901760, %v3282_v4  ;;  %v3302_v20 = vsub.f32 %v10837_v46, %v12841_v15  ;;  %v2853_v58 = vmul.f32 %v2821_v38, %v10774_v51  ;;  %v10870_v10 = vsub.f32 %v2970_v25, %v10859_v54 }
 0x29d   : > { %13071 = vst [vmem:[#allocation65_spill] sm:$0xff] %v10861_v24  ;;  %8250 = vmatmul.mubr.f32.gmra.mxu0 %v3273_v8  ;;  %v3293_v11 = vand.u32 4294901760, %v3292_v17  ;;  %8312 = vmatmul.mubr.f32.gmra.mxu1 %v10859_v54  ;;  %v10874_v50 = vsub.f32 %v2973_v55, %v10861_v24  ;;  %v10876_v27 = vand.u32 4294901760, %v2976_v34  ;;  %v2822_v23 = vadd.f32 1.0, %v8970_v40 }
 0x29e   : > { %8252 = vmatprep.mubr.f32.mxu0 %v3283_v63  ;;  %v3303_v4 = vand.u32 4294901760, %v3302_v20  ;;  %8314 = vmatprep.mubr.f32.mxu1 %v10861_v24  ;;  %2886 = vst.msk [vmem:[#allocation2 + $0xe0] sm:$0xff] %vm2857_vm6, %v2853_v58  ;;  %v2979_v51 = vsel %vm2857_vm6, %v2853_v58, 0  ;;  %v2823_v38 = vadd.f32 1.0, %v8972_v60  ;;  %v8974_v8 = vpop.eup %8973  ;;  %v12847_v25 = vand.u32 4294901760, %v10870_v10 }
 0x29f   : > { %v12844_v17 = vand.u32 4294901760, %v10874_v50  ;;  %v10884_v55 = vsub.f32 %v2976_v34, %v10876_v27  ;;  %v10886_v15 = vand.u32 4294901760, %v2979_v51  ;;  %v2854_v63 = vmul.f32 %v2822_v23, %v10777_v53 }
 0x2a0   : > { %v2855_v20 = vmul.f32 %v2823_v38, %v10791_v43  ;;  %v2824_v24 = vadd.f32 1.0, %v8974_v8  ;;  %v3312_v40 = vsub.f32 %v10870_v10, %v12847_v25  ;;  %v13073_v25 = vand.u32 4294901760, %v10486_v62 }
 0x2a1   : > { %8253 = vmatmul.mubr.f32.gmra.mxu0 %v3293_v11  ;;  %v3322_v60 = vsub.f32 %v10874_v50, %v12844_v17  ;;  %v12845_v58 = vand.u32 4294901760, %v10884_v55  ;;  %8315 = vmatmul.mubr.f32.gmra.mxu1 %v10876_v27  ;;  %v10899_v34 = vsub.f32 %v2979_v51, %v10886_v15  ;;  %2887 = vst.msk [vmem:[#allocation2 + $0xe8] sm:$0xff] %vm2857_vm6, %v2854_v63  ;;  %v2982_v53 = vsel %vm2857_vm6, %v2854_v63, 0 }
 0x2a2   : > { %8255 = vmatprep.mubr.f32.mxu0 %v3303_v4  ;;  %8317 = vmatprep.mubr.f32.mxu1 %v10886_v15  ;;  %2888 = vst.msk [vmem:[#allocation2 + $0xf0] sm:$0xff] %vm2857_vm6, %v2855_v20  ;;  %v2985_v43 = vsel %vm2857_vm6, %v2855_v20, 0  ;;  %v2856_v11 = vmul.f32 %v2824_v24, %v10812_v6  ;;  %v3313_v23 = vand.u32 4294901760, %v3312_v40  ;;  %v10911_v8 = vand.u32 4294901760, %v2982_v53 }
 0x2a3   : > { %v3323_v38 = vand.u32 4294901760, %v3322_v60  ;;  %v3332_v51 = vsub.f32 %v10884_v55, %v12845_v58  ;;  %v12846_v4 = vand.u32 4294901760, %v10899_v34  ;;  %v10913_v17 = vand.u32 4294901760, %v2985_v43 }
 0x2a4   : > { %2889 = vst.msk [vmem:[#allocation2 + $0xf8] sm:$0xff] %vm2857_vm6, %v2856_v11  ;;  %v2988_v63 = vsel %vm2857_vm6, %v2856_v11, 0  ;;  %v10923_v40 = vsub.f32 %v2982_v53, %v10911_v8 }
 0x2a5   : > { %8256 = vmatmul.mubr.f32.gmra.mxu0 %v3313_v23  ;;  %v3333_v20 = vand.u32 4294901760, %v3332_v51  ;;  %v3342_v6 = vsub.f32 %v10899_v34, %v12846_v4  ;;  %v10920_v24 = vand.u32 4294901760, %v2988_v63  ;;  %8318 = vmatmul.mubr.f32.gmra.mxu1 %v10911_v8  ;;  %v10927_v60 = vsub.f32 %v2985_v43, %v10913_v17 }
 0x2a6   : > { %8258 = vmatprep.mubr.f32.mxu0 %v3323_v38  ;;  %8320 = vmatprep.mubr.f32.mxu1 %v10913_v17  ;;  %v3351_v23 = vand.u32 4294901760, %v10923_v40 }
 0x2a7   : > { %v3343_v58 = vand.u32 4294901760, %v3342_v6  ;;  %v10931_v11 = vsub.f32 %v2988_v63, %v10920_v24  ;;  %v12848_v51 = vand.u32 4294901760, %v10927_v60  ;;  %v13072_v6 = vand.u32 4294901760, %v10477_v47 }
 0x2a8   : > { %v3352_v53 = vsub.f32 %v10923_v40, %v3351_v23 }
 0x2a9   : > { %8259 = vmatmul.mubr.f32.gmra.mxu0 %v3333_v20  ;;  %v3371_v38 = vand.u32 4294901760, %v10931_v11  ;;  %v3362_v43 = vsub.f32 %v10927_v60, %v12848_v51  ;;  %8321 = vmatmul.mubr.f32.gmra.mxu1 %v10920_v24  ;;  %v13074_v51 = vand.u32 4294901760, %v10499_v18 }
 0x2aa   : > { %8261 = vmatprep.mubr.f32.mxu0 %v3343_v58  ;;  %8387 = vmatprep.mubr.f32.mxu1 %v13072_v6  ;;  %v3353_v20 = vand.u32 4294901760, %v3352_v53  ;;  %v13075_v6 = vand.u32 4294901760, %v10508_v35  ;;  %v13076_v53 = vand.u32 4294901760, %v10520_v13 }
 0x2ab   : > { %v3372_v63 = vsub.f32 %v10931_v11, %v3371_v38  ;;  %v3363_v4 = vand.u32 4294901760, %v3362_v43 }
 0x2ad   : > { %8262 = vmatmul.mubr.f32.gmra.mxu0 %v3353_v20  ;;  %v3373_v58 = vand.u32 4294901760, %v3372_v63  ;;  %8388 = vmatmul.mubr.f32.vlgmr.msra.gmra.mxu1 %v13073_v25  ;;  %v13119_v25 = vld [vmem:[#allocation64_spill] sm:$0xff] }
 0x2ae   : > { %8264 = vmatprep.mubr.f32.mxu0 %v3363_v4  ;;  %8492 = vmatpush3.msra.mxu1 %v10309_v7  ;;  %v13077_v7 = vand.u32 4294901760, %v10533_v22 }
 0x2af   : > { %8390 = vmatprep.mubr.f32.mxu1 %v13074_v51  ;;  %8493 = vmatprep.subr.mxu1 %v10311_v21 }
 0x2b0   : > { %8494 = vmatpush3.msra.mxu1 %v10311_v21  ;;  %v13078_v21 = vand.u32 4294901760, %v10544_v2 }
 0x2b1   : > { %8265 = vmatmul.mubr.f32.gmra.mxu0 %v3373_v58  ;;  %8391 = vmatmul.mubr.f32.gmra.mxu1 %v13075_v6 }
 0x2b2   : > { %8331 = vmatprep.mubr.f32.mxu0 %v10477_v47  ;;  %8393 = vmatprep.mubr.f32.mxu1 %v13076_v53  ;;  %v13082_v47 = vand.u32 4294901760, %v10630_v44 }
 0x2b3   : > { %8495 = vmatprep.subr.mxu1 %v10313_v16 }
 0x2b4   : > { %8496 = vmatpush3.msra.mxu1 %v10313_v16  ;;  %v13079_v16 = vand.u32 4294901760, %v10582_v31 }
 0x2b5   : > { %8332 = vmatmul.mubr.f32.vlgmr.msra.gmra.mxu0 %v10486_v62  ;;  %8394 = vmatmul.mubr.f32.gmra.mxu1 %v13077_v7  ;;  %v13085_v62 = vand.u32 4294901760, %v10669_v1 }
 0x2b6   : > { %8436 = vmatpush3.msra.mxu0 %v10335_v48  ;;  %8334 = vmatprep.mubr.f32.mxu0 %v10499_v18  ;;  %v13080_v48 = vand.u32 4294901760, %v10602_v52  ;;  %v13086_v18 = vand.u32 4294901760, %v10673_v45 }
 0x2b7   : > { %8396 = vmatprep.mubr.f32.mxu1 %v13078_v21  ;;  %8437 = vmatprep.subr.mxu0 %v10339_v36 }
 0x2b8   : > { %8438 = vmatpush3.msra.mxu0 %v10339_v36  ;;  %8497 = vmatprep.subr.mxu1 %v10318_v14  ;;  %v13081_v36 = vand.u32 4294901760, %v10615_v42 }
 0x2b9   : > { %8335 = vmatmul.mubr.f32.gmra.mxu0 %v10508_v35  ;;  %8397 = vmatmul.mubr.f32.gmra.mxu1 %v13079_v16  ;;  %v13088_v35 = vand.u32 4294901760, %v10713_v28 }
 0x2ba   : > { %8337 = vmatprep.mubr.f32.mxu0 %v10520_v13  ;;  %8399 = vmatprep.mubr.f32.mxu1 %v13080_v48  ;;  %v13089_v13 = vand.u32 4294901760, %v10719_v12 }
 0x2bb   : > { %8439 = vmatprep.subr.mxu0 %v10342_v0  ;;  %8498 = vmatpush3.msra.mxu1 %v10318_v14  ;;  %v13083_v14 = vand.u32 4294901760, %v10634_v26 }
 0x2bc   : > { %8440 = vmatpush3.msra.mxu0 %v10342_v0  ;;  %v13084_v0 = vand.u32 4294901760, %v10656_v59 }
 0x2bd   : > { %8338 = vmatmul.mubr.f32.gmra.mxu0 %v10533_v22  ;;  %8400 = vmatmul.mubr.f32.gmra.mxu1 %v13081_v36  ;;  %v13090_v22 = vand.u32 4294901760, %v10762_v41 }
 0x2be   : > { %8340 = vmatprep.mubr.f32.mxu0 %v10544_v2  ;;  %8402 = vmatprep.mubr.f32.mxu1 %v13082_v47  ;;  %v13091_v2 = vand.u32 4294901760, %v10781_v3 }
 0x2bf   : > { %8441 = vmatprep.subr.mxu0 %v10346_v39 }
 0x2c0   : > { %8442 = vmatpush3.msra.mxu0 %v10346_v39  ;;  %v13087_v39 = vand.u32 4294901760, %v10702_v9 }
 0x2c1   : > { %8341 = vmatmul.mubr.f32.gmra.mxu0 %v10582_v31  ;;  %8403 = vmatmul.mubr.f32.gmra.mxu1 %v13083_v14  ;;  %v13092_v31 = vand.u32 4294901760, %v10795_v5 }
 0x2c2   : > { %8343 = vmatprep.mubr.f32.mxu0 %v10602_v52  ;;  %8405 = vmatprep.mubr.f32.mxu1 %v13084_v0  ;;  %v13093_v52 = vand.u32 4294901760, %v10818_v37 }
 0x2c5   : > { %8344 = vmatmul.mubr.f32.gmra.mxu0 %v10615_v42  ;;  %8406 = vmatmul.mubr.f32.gmra.mxu1 %v13085_v62  ;;  %v13094_v42 = vand.u32 4294901760, %v10826_v56 }
 0x2c6   : > { %8346 = vmatprep.mubr.f32.mxu0 %v10630_v44  ;;  %8408 = vmatprep.mubr.f32.mxu1 %v13086_v18  ;;  %v13095_v44 = vand.u32 4294901760, %v10833_v32 }
 0x2c9   : > { %8347 = vmatmul.mubr.f32.gmra.mxu0 %v10634_v26  ;;  %8409 = vmatmul.mubr.f32.gmra.mxu1 %v13087_v39  ;;  %v13096_v26 = vand.u32 4294901760, %v10837_v46 }
 0x2ca   : > { %8349 = vmatprep.mubr.f32.mxu0 %v10656_v59  ;;  %8411 = vmatprep.mubr.f32.mxu1 %v13088_v35  ;;  %v13097_v59 = vand.u32 4294901760, %v10870_v10 }
 0x2cd   : > { %8350 = vmatmul.mubr.f32.gmra.mxu0 %v10669_v1  ;;  %8412 = vmatmul.mubr.f32.gmra.mxu1 %v13089_v13  ;;  %v13098_v1 = vand.u32 4294901760, %v10874_v50 }
 0x2ce   : > { %8352 = vmatprep.mubr.f32.mxu0 %v10673_v45  ;;  %8414 = vmatprep.mubr.f32.mxu1 %v13090_v22  ;;  %v13100_v45 = vand.u32 4294901760, %v10899_v34 }
 0x2d1   : > { %8353 = vmatmul.mubr.f32.gmra.mxu0 %v10702_v9  ;;  %8415 = vmatmul.mubr.f32.gmra.mxu1 %v13091_v2  ;;  %v13101_v9 = vand.u32 4294901760, %v10927_v60 }
 0x2d2   : > { %8355 = vmatprep.mubr.f32.mxu0 %v10713_v28  ;;  %8417 = vmatprep.mubr.f32.mxu1 %v13092_v31  ;;  %v13099_v28 = vand.u32 4294901760, %v10884_v55 }
 0x2d5   : > { %8356 = vmatmul.mubr.f32.gmra.mxu0 %v10719_v12  ;;  %8418 = vmatmul.mubr.f32.gmra.mxu1 %v13093_v52  ;;  %v13102_v12 = vld [vmem:[#allocation47_spill] sm:$0xff] }
 0x2d6   : > { %8358 = vmatprep.mubr.f32.mxu0 %v10762_v41  ;;  %8420 = vmatprep.mubr.f32.mxu1 %v13094_v42  ;;  %v13103_v41 = vld [vmem:[#allocation48_spill] sm:$0xff] }
 0x2d9   : > { %8359 = vmatmul.mubr.f32.gmra.mxu0 %v10781_v3  ;;  %8421 = vmatmul.mubr.f32.gmra.mxu1 %v13095_v44  ;;  %v13108_v3 = vld [vmem:[#allocation53_spill] sm:$0xff] }
 0x2da   : > { %8361 = vmatprep.mubr.f32.mxu0 %v10795_v5  ;;  %8423 = vmatprep.mubr.f32.mxu1 %v13096_v26  ;;  %v13112_v5 = vld [vmem:[#allocation57_spill] sm:$0xff] }
 0x2dd   : > { %8362 = vmatmul.mubr.f32.gmra.mxu0 %v10818_v37  ;;  %8424 = vmatmul.mubr.f32.gmra.mxu1 %v13097_v59  ;;  %v13114_v37 = vld [vmem:[#allocation59_spill] sm:$0xff] }
 0x2de   : > { %8364 = vmatprep.mubr.f32.mxu0 %v10826_v56  ;;  %8426 = vmatprep.mubr.f32.mxu1 %v13098_v1  ;;  %v13115_v56 = vld [vmem:[#allocation60_spill] sm:$0xff] }
 0x2e1   : > { %8365 = vmatmul.mubr.f32.gmra.mxu0 %v10833_v32  ;;  %8427 = vmatmul.mubr.f32.gmra.mxu1 %v13099_v28  ;;  %v13113_v32 = vld [vmem:[#allocation58_spill] sm:$0xff] }
 0x2e2   : > { %8367 = vmatprep.mubr.f32.mxu0 %v10837_v46  ;;  %8429 = vmatprep.mubr.f32.mxu1 %v13100_v45  ;;  %v13117_v46 = vld [vmem:[#allocation62_spill] sm:$0xff] }
 0x2e5   : > { %8368 = vmatmul.mubr.f32.gmra.mxu0 %v10870_v10  ;;  %8430 = vmatmul.mubr.f32.gmra.mxu1 %v3351_v23  ;;  %v13116_v10 = vld [vmem:[#allocation61_spill] sm:$0xff] }
 0x2e6   : > { %8370 = vmatprep.mubr.f32.mxu0 %v10874_v50  ;;  %8432 = vmatprep.mubr.f32.mxu1 %v13101_v9  ;;  %v13118_v50 = vld [vmem:[#allocation63_spill] sm:$0xff] }
 0x2e9   : > { %8371 = vmatmul.mubr.f32.gmra.mxu0 %v10884_v55  ;;  %8433 = vmatmul.mubr.f32.gmra.mxu1 %v3371_v38 }
 0x2ea   : > { %8373 = vmatprep.mubr.f32.mxu0 %v10899_v34  ;;  %8499 = vmatprep.mubr.f32.mxu1 %v10466_v61  ;;  %v13120_v34 = vld [vmem:[#allocation65_spill] sm:$0xff] }
 0x2ed   : > { %8374 = vmatmul.mubr.f32.gmra.mxu0 %v10923_v40  ;;  %8500 = vmatmul.mubr.f32.vlgmr.msra.gmra.mxu1 %v10471_v19 }
 0x2ee   : > { %8376 = vmatprep.mubr.f32.mxu0 %v10927_v60  ;;  %8502 = vmatprep.mubr.f32.mxu1 %v10480_v57 }
 0x2f1   : > { %8377 = vmatmul.mubr.f32.gmra.mxu0 %v10931_v11  ;;  %8503 = vmatmul.mubr.f32.gmra.mxu1 %v10489_v30 }
 0x2f2   : > { %8443 = vmatprep.mubr.f32.mxu0 %v10466_v61  ;;  %8505 = vmatprep.mubr.f32.mxu1 %v13102_v12  ;;  %v13104_v61 = vld [vmem:[#allocation49_spill] sm:$0xff] }
 0x2f5   : > { %8444 = vmatmul.mubr.f32.vlgmr.msra.gmra.mxu0 %v10471_v19  ;;  %8506 = vmatmul.mubr.f32.gmra.mxu1 %v10510_v49  ;;  %v13105_v19 = vld [vmem:[#allocation50_spill] sm:$0xff] }
 0x2f6   : > { %8446 = vmatprep.mubr.f32.mxu0 %v10480_v57  ;;  %8508 = vmatprep.mubr.f32.mxu1 %v10522_v29  ;;  %v13106_v57 = vld [vmem:[#allocation51_spill] sm:$0xff] }
 0x2f9   : > { %8447 = vmatmul.mubr.f32.gmra.mxu0 %v10489_v30  ;;  %8509 = vmatmul.mubr.f32.gmra.mxu1 %v10574_v33  ;;  %v13107_v30 = vld [vmem:[#allocation52_spill] sm:$0xff] }
 0x2fa   : > { %8449 = vmatprep.mubr.f32.mxu0 %v13102_v12  ;;  %8511 = vmatprep.mubr.f32.mxu1 %v13103_v41 }
 0x2fd   : > { %8450 = vmatmul.mubr.f32.gmra.mxu0 %v10510_v49  ;;  %8512 = vmatmul.mubr.f32.gmra.mxu1 %v13104_v61  ;;  %v13109_v49 = vld [vmem:[#allocation54_spill] sm:$0xff] }
 0x2fe   : > { %8452 = vmatprep.mubr.f32.mxu0 %v10522_v29  ;;  %8514 = vmatprep.mubr.f32.mxu1 %v13105_v19  ;;  %v13110_v29 = vld [vmem:[#allocation55_spill] sm:$0xff] }
 0x301   : > { %8453 = vmatmul.mubr.f32.gmra.mxu0 %v10574_v33  ;;  %8515 = vmatmul.mubr.f32.gmra.mxu1 %v13106_v57  ;;  %v13111_v33 = vld [vmem:[#allocation56_spill] sm:$0xff] }
 0x302   : > { %8455 = vmatprep.mubr.f32.mxu0 %v13103_v41  ;;  %8517 = vmatprep.mubr.f32.mxu1 %v13107_v30 }
 0x305   : > { %8456 = vmatmul.mubr.f32.gmra.mxu0 %v13104_v61  ;;  %8518 = vmatmul.mubr.f32.gmra.mxu1 %v13108_v3 }
 0x306   : > { %8458 = vmatprep.mubr.f32.mxu0 %v13105_v19  ;;  %8520 = vmatprep.mubr.f32.mxu1 %v13109_v49 }
 0x309   : > { %8459 = vmatmul.mubr.f32.gmra.mxu0 %v13106_v57  ;;  %8521 = vmatmul.mubr.f32.gmra.mxu1 %v13110_v29 }
 0x30a   : > { %8461 = vmatprep.mubr.f32.mxu0 %v13107_v30  ;;  %8523 = vmatprep.mubr.f32.mxu1 %v13111_v33 }
 0x30d   : > { %8462 = vmatmul.mubr.f32.gmra.mxu0 %v13108_v3  ;;  %8524 = vmatmul.mubr.f32.gmra.mxu1 %v13112_v5 }
 0x30e   : > { %8464 = vmatprep.mubr.f32.mxu0 %v13109_v49  ;;  %8526 = vmatprep.mubr.f32.mxu1 %v13113_v32 }
 0x311   : > { %8465 = vmatmul.mubr.f32.gmra.mxu0 %v13110_v29  ;;  %8527 = vmatmul.mubr.f32.gmra.mxu1 %v13114_v37 }
 0x312   : > { %8467 = vmatprep.mubr.f32.mxu0 %v13111_v33  ;;  %8529 = vmatprep.mubr.f32.mxu1 %v13115_v56 }
 0x315   : > { %8468 = vmatmul.mubr.f32.gmra.mxu0 %v13112_v5  ;;  %8530 = vmatmul.mubr.f32.gmra.mxu1 %v13116_v10 }
 0x316   : > { %8470 = vmatprep.mubr.f32.mxu0 %v13113_v32  ;;  %8532 = vmatprep.mubr.f32.mxu1 %v13117_v46 }
 0x319   : > { %8471 = vmatmul.mubr.f32.gmra.mxu0 %v13114_v37  ;;  %8533 = vmatmul.mubr.f32.gmra.mxu1 %v13118_v50 }
 0x31a   : > { %8473 = vmatprep.mubr.f32.mxu0 %v13115_v56  ;;  %8535 = vmatprep.mubr.f32.mxu1 %v13119_v25 }
 0x31d   : > { %v8277_v55 = vpop.f32.mrf.mxu1  ;;  %8474 = vmatmul.mubr.f32.gmra.mxu0 %v13116_v10  ;;  %8536 = vmatmul.mubr.f32.gmra.mxu1 %v10859_v54 }
 0x31e   : > { %8476 = vmatprep.mubr.f32.mxu0 %v13117_v46  ;;  %8538 = vmatprep.mubr.f32.mxu1 %v13120_v34 }
 0x31f   : > { %v3466_v4 = vpop.f32.mrf.mxu1 }
 0x321   : > { %v8280_v40 = vpop.f32.mrf.mxu1  ;;  %8477 = vmatmul.mubr.f32.gmra.mxu0 %v13118_v50  ;;  %8539 = vmatmul.mubr.f32.gmra.mxu1 %v10876_v27 }
 0x322   : > { %8479 = vmatprep.mubr.f32.mxu0 %v13119_v25  ;;  %8541 = vmatprep.mubr.f32.mxu1 %v10886_v15 }
 0x323   : > { %v3478_v60 = vpop.f32.mrf.mxu1 }
 0x325   : > { %v8221_v11 = vpop.f32.mrf.mxu0  ;;  %v8283_v23 = vpop.f32.mrf.mxu1  ;;  %8480 = vmatmul.mubr.f32.gmra.mxu0 %v10859_v54  ;;  %8542 = vmatmul.mubr.f32.gmra.mxu1 %v10911_v8 }
 0x326   : > { %v11112_v51 = vadd.f32 %v8277_v55, %v8221_v11  ;;  %8482 = vmatprep.mubr.f32.mxu0 %v13120_v34  ;;  %8544 = vmatprep.mubr.f32.mxu1 %v10913_v17 }
 0x327   : > { %v3065_v38 = vpop.f32.mrf.mxu0  ;;  %v3490_v43 = vpop.f32.mrf.mxu1 }
 0x328   : > { %v11116_v63 = vadd.f32 %v3466_v4, %v3065_v38 }
 0x329   : > { %v8224_v20 = vpop.f32.mrf.mxu0  ;;  %v8286_v58 = vpop.f32.mrf.mxu1  ;;  %8483 = vmatmul.mubr.f32.gmra.mxu0 %v10876_v27  ;;  %8545 = vmatmul.mubr.f32.gmra.mxu1 %v10920_v24 }
 0x32a   : > { %v11120_v6 = vadd.f32 %v8280_v40, %v8224_v20  ;;  %8485 = vmatprep.mubr.f32.mxu0 %v10886_v15 }
 0x32b   : > { %v3085_v54 = vpop.f32.mrf.mxu0  ;;  %v3502_v53 = vpop.f32.mrf.mxu1 }
 0x32c   : > { %v11123_v7 = vadd.f32 %v3478_v60, %v3085_v54 }
 0x32d   : > { %v8227_v21 = vpop.f32.mrf.mxu0  ;;  %v8289_v16 = vpop.f32.mrf.mxu1  ;;  %8486 = vmatmul.mubr.f32.gmra.mxu0 %v10911_v8 }
 0x32e   : > { %v11126_v48 = vadd.f32 %v8283_v23, %v8227_v21  ;;  %8488 = vmatprep.mubr.f32.mxu0 %v10913_v17 }
 0x32f   : > { %v3105_v36 = vpop.f32.mrf.mxu0  ;;  %v3514_v27 = vpop.f32.mrf.mxu1 }
 0x330   : > { %v11129_v47 = vadd.f32 %v3490_v43, %v3105_v36 }
 0x331   : > { %v8230_v14 = vpop.f32.mrf.mxu0  ;;  %v8292_v0 = vpop.f32.mrf.mxu1  ;;  %8489 = vmatmul.mubr.f32.gmra.mxu0 %v10920_v24 }
 0x332   : > { %v11132_v15 = vadd.f32 %v8286_v58, %v8230_v14 }
 0x333   : > { %v3125_v62 = vpop.f32.mrf.mxu0  ;;  %v3526_v18 = vpop.f32.mrf.mxu1 }
 0x334   : > { %v11134_v39 = vadd.f32 %v3502_v53, %v3125_v62 }
 0x335   : > { %v8233_v35 = vpop.f32.mrf.mxu0  ;;  %v8295_v8 = vpop.f32.mrf.mxu1 }
 0x336   : > { %v11136_v13 = vadd.f32 %v8289_v16, %v8233_v35 }
 0x337   : > { %v3145_v22 = vpop.f32.mrf.mxu0  ;;  %v3538_v17 = vpop.f32.mrf.mxu1 }
 0x338   : > { %v11138_v2 = vadd.f32 %v3514_v27, %v3145_v22 }
 0x339   : > { %v8236_v31 = vpop.f32.mrf.mxu0  ;;  %v8298_v52 = vpop.f32.mrf.mxu1 }
 0x33a   : > { %v11140_v42 = vadd.f32 %v8292_v0, %v8236_v31 }
 0x33b   : > { %v3165_v44 = vpop.f32.mrf.mxu0  ;;  %v3550_v59 = vpop.f32.mrf.mxu1 }
 0x33c   : > { %v11142_v24 = vadd.f32 %v3526_v18, %v3165_v44 }
 0x33d   : > { %v8239_v26 = vpop.f32.mrf.mxu0  ;;  %v8301_v12 = vpop.f32.mrf.mxu1 }
 0x33e   : > { %v11144_v1 = vadd.f32 %v8295_v8, %v8239_v26 }
 0x33f   : > { %v3185_v28 = vpop.f32.mrf.mxu0  ;;  %v3562_v30 = vpop.f32.mrf.mxu1 }
 0x340   : > { %v11146_v45 = vadd.f32 %v3538_v17, %v3185_v28 }
 0x341   : > { %v8242_v9 = vpop.f32.mrf.mxu0 }
 0x342   : > { %v11148_v41 = vadd.f32 %v8298_v52, %v8242_v9 }
 0x343   : > { %v3205_v61 = vpop.f32.mrf.mxu0 }
 0x344   : > { %v11150_v19 = vadd.f32 %v3550_v59, %v3205_v61 }
 0x345   : > { %v8245_v57 = vpop.f32.mrf.mxu0 }
 0x346   : > { %v11152_v3 = vadd.f32 %v8301_v12, %v8245_v57 }
 0x347   : > { %v3225_v49 = vpop.f32.mrf.mxu0 }
 0x348   : > { %v11154_v29 = vadd.f32 %v3562_v30, %v3225_v49 }
 0x34e   : > { %v8304_v33 = vpop.f32.mrf.mxu1 }
 0x350   : > { %v3574_v5 = vpop.f32.mrf.mxu1 }
 0x355   : > { %v8307_v32 = vpop.f32.mrf.mxu1 }
 0x356   : > { %v8248_v37 = vpop.f32.mrf.mxu0 }
 0x357   : > { %v11156_v56 = vadd.f32 %v8304_v33, %v8248_v37  ;;  %v3586_v10 = vpop.f32.mrf.mxu1 }
 0x358   : > { %v3245_v46 = vpop.f32.mrf.mxu0 }
 0x359   : > { %v11158_v50 = vadd.f32 %v3574_v5, %v3245_v46  ;;  %v8310_v25 = vpop.f32.mrf.mxu1 }
 0x35b   : > { %v3598_v55 = vpop.f32.mrf.mxu1 }
 0x35d   : > { %v8251_v34 = vpop.f32.mrf.mxu0  ;;  %v8313_v4 = vpop.f32.mrf.mxu1 }
 0x35e   : > { %v11160_v40 = vadd.f32 %v8307_v32, %v8251_v34 }
 0x35f   : > { %v3265_v60 = vpop.f32.mrf.mxu0  ;;  %v3610_v11 = vpop.f32.mrf.mxu1 }
 0x360   : > { %v11162_v23 = vadd.f32 %v3586_v10, %v3265_v60 }
 0x361   : > { %v8254_v38 = vpop.f32.mrf.mxu0  ;;  %v8316_v43 = vpop.f32.mrf.mxu1 }
 0x362   : > { %v11164_v20 = vadd.f32 %v8310_v25, %v8254_v38 }
 0x363   : > { %v3285_v58 = vpop.f32.mrf.mxu0  ;;  %v3622_v54 = vpop.f32.mrf.mxu1 }
 0x364   : > { %v11166_v53 = vadd.f32 %v3598_v55, %v3285_v58 }
 0x365   : > { %v8257_v21 = vpop.f32.mrf.mxu0  ;;  %v8319_v36 = vpop.f32.mrf.mxu1 }
 0x366   : > { %13121 = vst [vmem:[#allocation47_spill] sm:$0xff] %v11166_v53  ;;  %v11168_v16 = vadd.f32 %v8313_v4, %v8257_v21 }
 0x367   : > { %v3305_v27 = vpop.f32.mrf.mxu0  ;;  %v3634_v0 = vpop.f32.mrf.mxu1 }
 0x368   : > { %v11170_v14 = vadd.f32 %v3610_v11, %v3305_v27 }
 0x369   : > { %v8260_v62 = vpop.f32.mrf.mxu0  ;;  %v8322_v35 = vpop.f32.mrf.mxu1 }
 0x36a   : > { %13122 = vst [vmem:[#allocation48_spill] sm:$0xff] %v11170_v14  ;;  %v11172_v18 = vadd.f32 %v8316_v43, %v8260_v62 }
 0x36b   : > { %v3325_v8 = vpop.f32.mrf.mxu0  ;;  %v3646_v17 = vpop.f32.mrf.mxu1 }
 0x36c   : > { %v11174_v22 = vadd.f32 %v3622_v54, %v3325_v8 }
 0x36d   : > { %v8263_v31 = vpop.f32.mrf.mxu0  ;;  %v8389_v52 = vpop.f32.mrf.mxu1 }
 0x36e   : > { %13123 = vst [vmem:[#allocation49_spill] sm:$0xff] %v11174_v22  ;;  %v11176_v44 = vadd.f32 %v8319_v36, %v8263_v31 }
 0x36f   : > { %v3345_v26 = vpop.f32.mrf.mxu0  ;;  %v11178_v59 = vpop.f32.mrf.mxu1 }
 0x370   : > { %v11180_v28 = vadd.f32 %v3634_v0, %v3345_v26 }
 0x371   : > { %v8266_v9 = vpop.f32.mrf.mxu0  ;;  %v8392_v12 = vpop.f32.mrf.mxu1 }
 0x372   : > { %13124 = vst [vmem:[#allocation50_spill] sm:$0xff] %v11180_v28  ;;  %v11182_v61 = vadd.f32 %v8322_v35, %v8266_v9 }
 0x373   : > { %v3365_v57 = vpop.f32.mrf.mxu0  ;;  %v11184_v30 = vpop.f32.mrf.mxu1 }
 0x374   : > { %v11186_v49 = vadd.f32 %v3646_v17, %v3365_v57 }
 0x375   : > { %v8333_v33 = vpop.f32.mrf.mxu0  ;;  %v8395_v5 = vpop.f32.mrf.mxu1 }
 0x376   : > { %13125 = vst [vmem:[#allocation51_spill] sm:$0xff] %v11186_v49  ;;  %v3740_v32 = vadd.f32 %v8333_v33, %v11112_v51 }
 0x377   : > { %v11189_v37 = vpop.f32.mrf.mxu0  ;;  %v11191_v10 = vpop.f32.mrf.mxu1 }
 0x378   : > { %v11193_v46 = vadd.f32 %v8389_v52, %v3740_v32  ;;  %v9002_v32 = vmov 0.0  }
 0x379   : > { %v8336_v25 = vpop.f32.mrf.mxu0  ;;  %v8398_v55 = vpop.f32.mrf.mxu1  ;;  %4884 = vst.msk [vmem:[#allocation4 + $0x1] sm:$0x3] %vm4883_vm7, %v9002_v32 }
 0x37a   : > { %v3754_v34 = vadd.f32 %v8336_v25, %v11120_v6 }
 0x37b   : > { %v11196_v4 = vpop.f32.mrf.mxu0  ;;  %v11198_v60 = vpop.f32.mrf.mxu1 }
 0x37c   : > { %v11200_v11 = vadd.f32 %v8392_v12, %v3754_v34 }
 0x37d   : > { %v8339_v38 = vpop.f32.mrf.mxu0  ;;  %v8401_v43 = vpop.f32.mrf.mxu1 }
 0x37e   : > { %v3768_v51 = vadd.f32 %v8339_v38, %v11126_v48 }
 0x37f   : > { %v11203_v58 = vpop.f32.mrf.mxu0  ;;  %v11205_v54 = vpop.f32.mrf.mxu1 }
 0x380   : > { %v11207_v21 = vadd.f32 %v8395_v5, %v3768_v51 }
 0x381   : > { %v8342_v36 = vpop.f32.mrf.mxu0  ;;  %v8404_v27 = vpop.f32.mrf.mxu1 }
 0x382   : > { %v3782_v6 = vadd.f32 %v8342_v36, %v11132_v15 }
 0x383   : > { %v11210_v0 = vpop.f32.mrf.mxu0  ;;  %v11212_v62 = vpop.f32.mrf.mxu1 }
 0x384   : > { %v11214_v35 = vadd.f32 %v8398_v55, %v3782_v6 }
 0x385   : > { %v8345_v8 = vpop.f32.mrf.mxu0  ;;  %v8407_v17 = vpop.f32.mrf.mxu1 }
 0x386   : > { %v3796_v48 = vadd.f32 %v8345_v8, %v11136_v13 }
 0x387   : > { %v11217_v31 = vpop.f32.mrf.mxu0  ;;  %v11219_v52 = vpop.f32.mrf.mxu1 }
 0x388   : > { %v11221_v26 = vadd.f32 %v8401_v43, %v3796_v48 }
 0x389   : > { %v8348_v9 = vpop.f32.mrf.mxu0  ;;  %v8410_v12 = vpop.f32.mrf.mxu1 }
 0x38a   : > { %v3810_v15 = vadd.f32 %v8348_v9, %v11140_v42 }
 0x38b   : > { %v11224_v57 = vpop.f32.mrf.mxu0  ;;  %v11226_v33 = vpop.f32.mrf.mxu1 }
 0x38c   : > { %v11228_v5 = vadd.f32 %v8404_v27, %v3810_v15 }
 0x38d   : > { %v8351_v13 = vpop.f32.mrf.mxu0  ;;  %v8413_v25 = vpop.f32.mrf.mxu1 }
 0x38e   : > { %v3824_v55 = vadd.f32 %v8351_v13, %v11144_v1 }
 0x38f   : > { %v11231_v34 = vpop.f32.mrf.mxu0  ;;  %v11233_v38 = vpop.f32.mrf.mxu1 }
 0x390   : > { %v11235_v43 = vadd.f32 %v8407_v17, %v3824_v55 }
 0x391   : > { %v8354_v42 = vpop.f32.mrf.mxu0  ;;  %v8416_v51 = vpop.f32.mrf.mxu1 }
 0x392   : > { %v3838_v36 = vadd.f32 %v8354_v42, %v11148_v41 }
 0x393   : > { %v11238_v6 = vpop.f32.mrf.mxu0  ;;  %v11240_v27 = vpop.f32.mrf.mxu1 }
 0x394   : > { %v11242_v8 = vadd.f32 %v8410_v12, %v3838_v36 }
 0x395   : > { %v8357_v48 = vpop.f32.mrf.mxu0  ;;  %v8419_v9 = vpop.f32.mrf.mxu1 }
 0x396   : > { %v3852_v1 = vadd.f32 %v8357_v48, %v11152_v3 }
 0x397   : > { %v11245_v15 = vpop.f32.mrf.mxu0  ;;  %v11247_v32 = vpop.f32.mrf.mxu1 }
 0x398   : > { %13126 = vst [vmem:[#allocation52_spill] sm:$0xff] %v11247_v32  ;;  %v11249_v17 = vadd.f32 %v8413_v25, %v3852_v1 }
 0x399   : > { %v8360_v13 = vpop.f32.mrf.mxu0  ;;  %v8422_v55 = vpop.f32.mrf.mxu1 }
 0x39a   : > { %v3866_v41 = vadd.f32 %v8360_v13, %v11156_v56 }
 0x39b   : > { %v11252_v42 = vpop.f32.mrf.mxu0  ;;  %v11254_v49 = vpop.f32.mrf.mxu1 }
 0x39c   : > { %13127 = vst [vmem:[#allocation53_spill] sm:$0xff] %v11254_v49  ;;  %v11256_v12 = vadd.f32 %v8416_v51, %v3866_v41 }
 0x39d   : > { %v8363_v36 = vpop.f32.mrf.mxu0  ;;  %v8425_v28 = vpop.f32.mrf.mxu1 }
 0x39e   : > { %v3880_v3 = vadd.f32 %v8363_v36, %v11160_v40 }
 0x39f   : > { %v11259_v48 = vpop.f32.mrf.mxu0  ;;  %v11261_v22 = vpop.f32.mrf.mxu1 }
 0x3a0   : > { %13128 = vst [vmem:[#allocation54_spill] sm:$0xff] %v11261_v22  ;;  %v11263_v25 = vadd.f32 %v8419_v9, %v3880_v3 }
 0x3a1   : > { %v8366_v1 = vpop.f32.mrf.mxu0  ;;  %v8428_v14 = vpop.f32.mrf.mxu1 }
 0x3a2   : > { %13129 = vst [vmem:[#allocation55_spill] sm:$0xff] %v11263_v25  ;;  %v3894_v56 = vadd.f32 %v8366_v1, %v11164_v20 }
 0x3a3   : > { %v11266_v13 = vpop.f32.mrf.mxu0  ;;  %v11268_v53 = vpop.f32.mrf.mxu1 }
 0x3a4   : > { %13130 = vst [vmem:[#allocation56_spill] sm:$0xff] %v11268_v53  ;;  %v11270_v51 = vadd.f32 %v8422_v55, %v3894_v56 }
 0x3a5   : > { %v8369_v41 = vpop.f32.mrf.mxu0  ;;  %v8431_v49 = vpop.f32.mrf.mxu1 }
 0x3a6   : > { %13131 = vst [vmem:[#allocation57_spill] sm:$0xff] %v11270_v51  ;;  %v3908_v40 = vadd.f32 %v8369_v41, %v11168_v16 }
 0x3a7   : > { %v11273_v36 = vpop.f32.mrf.mxu0  ;;  %v11275_v32 = vpop.f32.mrf.mxu1 }
 0x3a8   : > { %13132 = vst [vmem:[#allocation58_spill] sm:$0xff] %v11275_v32  ;;  %v11277_v9 = vadd.f32 %v8425_v28, %v3908_v40 }
 0x3a9   : > { %v8372_v3 = vpop.f32.mrf.mxu0  ;;  %v8434_v22 = vpop.f32.mrf.mxu1 }
 0x3aa   : > { %13133 = vst [vmem:[#allocation59_spill] sm:$0xff] %v11277_v9  ;;  %v3922_v20 = vadd.f32 %v8372_v3, %v11172_v18  ;;  %v3733_v18 = vadd.f32 %v11189_v37, %v11116_v63  ;;  %v3761_v63 = vadd.f32 %v11203_v58, %v11129_v47  ;;  %v3775_v47 = vadd.f32 %v11210_v0, %v11134_v39 }
 0x3ab   : > { %v11280_v1 = vpop.f32.mrf.mxu0  ;;  %v11282_v25 = vpop.f32.mrf.mxu1  ;;  %v3789_v0 = vadd.f32 %v11217_v31, %v11138_v2  ;;  %v3803_v31 = vadd.f32 %v11224_v57, %v11142_v24  ;;  %v3817_v57 = vadd.f32 %v11231_v34, %v11146_v45  ;;  %v3831_v34 = vadd.f32 %v11238_v6, %v11150_v19 }
 0x3ac   : > { %13134 = vst [vmem:[#allocation60_spill] sm:$0xff] %v11282_v25  ;;  %v11284_v55 = vadd.f32 %v8428_v14, %v3922_v20  ;;  %v4075_v39 = vadd.f32 %v11198_v60, %v3775_v47  ;;  %v3845_v6 = vadd.f32 %v11245_v15, %v11154_v29  ;;  %v3859_v15 = vadd.f32 %v11252_v42, %v11158_v50 }
 0x3ad   : > { %v8375_v56 = vpop.f32.mrf.mxu0  ;;  %v8501_v53 = vpop.f32.mrf.mxu1  ;;  %v4091_v2 = vadd.f32 %v11205_v54, %v3789_v0  ;;  %v4107_v24 = vadd.f32 %v11212_v62, %v3803_v31  ;;  %v4123_v45 = vadd.f32 %v11219_v52, %v3817_v57  ;;  %v4139_v19 = vadd.f32 %v11226_v33, %v3831_v34 }
 0x3ae   : > { %13135 = vst [vmem:[#allocation61_spill] sm:$0xff] %v11284_v55  ;;  %v3936_v16 = vadd.f32 %v8375_v56, %v11176_v44  ;;  %v4027_v44 = vadd.f32 %v11178_v59, %v3733_v18  ;;  %v4155_v29 = vadd.f32 %v11233_v38, %v3845_v6  ;;  %v4171_v50 = vadd.f32 %v11240_v27, %v3859_v15 }
 0x3af   : > { %v11287_v41 = vpop.f32.mrf.mxu0  ;;  %v4618_v51 = vpop.f32.mrf.mxu1  ;;  %v3873_v42 = vadd.f32 %v11259_v48, %v11162_v23  ;;  %v13138_v23 = vld [vmem:[#allocation52_spill] sm:$0xff] }
 0x3b0   : > { %13136 = vst [vmem:[#allocation62_spill] sm:$0xff] %v11287_v41  ;;  %v11289_v32 = vadd.f32 %v8431_v49, %v3936_v16  ;;  %v3747_v49 = vadd.f32 %v11196_v4, %v11123_v7 }
 0x3b1   : > { %v8378_v28 = vpop.f32.mrf.mxu0  ;;  %v8504_v40 = vpop.f32.mrf.mxu1  ;;  %v4187_v48 = vadd.f32 %v13138_v23, %v3873_v42 }
 0x3b2   : > { %13137 = vst [vmem:[#allocation63_spill] sm:$0xff] %v11289_v32  ;;  %v3950_v3 = vadd.f32 %v8378_v28, %v11182_v61 }
 0x3b3   : > { %v11294_v9 = vpop.f32.mrf.mxu0  ;;  %v4630_v14 = vpop.f32.mrf.mxu1 }
 0x3b4   : > { %v11296_v20 = vadd.f32 %v8434_v22, %v3950_v3  ;;  %v4043_v22 = vadd.f32 %v11184_v30, %v3747_v49 }
 0x3b5   : > { %v8445_v25 = vpop.f32.mrf.mxu0  ;;  %v8507_v55 = vpop.f32.mrf.mxu1 }
 0x3b6   : > { %v4364_v56 = vadd.f32 %v8445_v25, %v11193_v46  ;;  %v4059_v25 = vadd.f32 %v11191_v10, %v3761_v63 }
 0x3b7   : > { %v4357_v16 = vpop.f32.mrf.mxu0  ;;  %v4642_v32 = vpop.f32.mrf.mxu1 }
 0x3b8   : > { %v4358_v41 = vadd.f32 %v4357_v16, %v4027_v44  ;;  %v11305_v28 = vadd.f32 %v8501_v53, %v4364_v56 }
 0x3b9   : > { %v8448_v61 = vpop.f32.mrf.mxu0  ;;  %v8510_v37 = vpop.f32.mrf.mxu1 }
 0x3ba   : > { %v11307_v3 = vadd.f32 %v4618_v51, %v4358_v41  ;;  %v4376_v59 = vadd.f32 %v8448_v61, %v11200_v11  ;;  %v4812_v53 = vsel %vm2857_vm6, %v11305_v28, 0.0 }
 0x3bb   : > { %v4369_v18 = vpop.f32.mrf.mxu0  ;;  %v4654_v7 = vpop.f32.mrf.mxu1 }
 0x3bc   : > { %v4811_v46 = vsel %vm2857_vm6, %v11307_v3, 0.0  ;;  %v4370_v4 = vadd.f32 %v4369_v18, %v4043_v22  ;;  %v11317_v30 = vadd.f32 %v8504_v40, %v4376_v59 }
 0x3bd   : > { %v8451_v58 = vpop.f32.mrf.mxu0  ;;  %v8513_v44 = vpop.f32.mrf.mxu1  ;;  %v4813_v41 = vadd.f32 %v4812_v53, %v4811_v46 }
 0x3be   : > { %v11319_v51 = vadd.f32 %v4630_v14, %v4370_v4  ;;  %v4388_v11 = vadd.f32 %v8451_v58, %v11207_v21  ;;  %v4816_v14 = vsel %vm2857_vm6, %v11317_v30, 0.0 }
 0x3bf   : > { %v4381_v49 = vpop.f32.mrf.mxu0  ;;  %v4666_v56 = vpop.f32.mrf.mxu1 }
 0x3c0   : > { %v4814_v10 = vsel %vm2857_vm6, %v11319_v51, 0.0  ;;  %v4382_v16 = vadd.f32 %v4381_v49, %v4059_v25  ;;  %v11329_v22 = vadd.f32 %v8507_v55, %v4388_v11 }
 0x3c1   : > { %v4815_v63 = vadd.f32 %v4814_v10, %v4813_v41  ;;  %v8454_v61 = vpop.f32.mrf.mxu0  ;;  %v8516_v40 = vpop.f32.mrf.mxu1 }
 0x3c2   : > { %v11331_v21 = vadd.f32 %v4642_v32, %v4382_v16  ;;  %v4400_v59 = vadd.f32 %v8454_v61, %v11214_v35  ;;  %v4820_v32 = vsel %vm2857_vm6, %v11329_v22, 0.0 }
 0x3c3   : > { %v4817_v18 = vadd.f32 %v4816_v14, %v4815_v63  ;;  %v4393_v46 = vpop.f32.mrf.mxu0  ;;  %v4678_v4 = vpop.f32.mrf.mxu1 }
 0x3c4   : > { %v4818_v60 = vsel %vm2857_vm6, %v11331_v21, 0.0  ;;  %v4394_v25 = vadd.f32 %v4393_v46, %v4075_v39  ;;  %v11341_v53 = vadd.f32 %v8510_v37, %v4400_v59 }
 0x3c5   : > { %v4819_v47 = vadd.f32 %v4818_v60, %v4817_v18  ;;  %v8457_v58 = vpop.f32.mrf.mxu0  ;;  %v8519_v55 = vpop.f32.mrf.mxu1 }
 0x3c6   : > { %v11343_v35 = vadd.f32 %v4654_v7, %v4394_v25  ;;  %v4412_v11 = vadd.f32 %v8457_v58, %v11221_v26  ;;  %v4824_v7 = vsel %vm2857_vm6, %v11341_v53, 0.0 }
 0x3c7   : > { %v4821_v41 = vadd.f32 %v4820_v32, %v4819_v47  ;;  %v4405_v49 = vpop.f32.mrf.mxu0  ;;  %v4690_v10 = vpop.f32.mrf.mxu1 }
 0x3c8   : > { %v4822_v54 = vsel %vm2857_vm6, %v11343_v35, 0.0  ;;  %v4406_v16 = vadd.f32 %v4405_v49, %v4091_v2  ;;  %v11353_v63 = vadd.f32 %v8513_v44, %v4412_v11 }
 0x3c9   : > { %v4823_v39 = vadd.f32 %v4822_v54, %v4821_v41  ;;  %v8460_v0 = vpop.f32.mrf.mxu0  ;;  %v8522_v37 = vpop.f32.mrf.mxu1 }
 0x3ca   : > { %v11355_v26 = vadd.f32 %v4666_v56, %v4406_v16  ;;  %v4424_v61 = vadd.f32 %v8460_v0, %v11228_v5  ;;  %v4828_v56 = vsel %vm2857_vm6, %v11353_v63, 0.0 }
 0x3cb   : > { %v4825_v14 = vadd.f32 %v4824_v7, %v4823_v39  ;;  %v4417_v59 = vpop.f32.mrf.mxu0  ;;  %v4702_v18 = vpop.f32.mrf.mxu1 }
 0x3cc   : > { %v4826_v62 = vsel %vm2857_vm6, %v11355_v26, 0.0  ;;  %v4418_v46 = vadd.f32 %v4417_v59, %v4107_v24  ;;  %v11365_v2 = vadd.f32 %v8516_v40, %v4424_v61 }
 0x3cd   : > { %v4827_v60 = vadd.f32 %v4826_v62, %v4825_v14  ;;  %v8463_v25 = vpop.f32.mrf.mxu0  ;;  %v8525_v44 = vpop.f32.mrf.mxu1 }
 0x3ce   : > { %v11367_v5 = vadd.f32 %v4678_v4, %v4418_v46  ;;  %v4436_v31 = vadd.f32 %v8463_v25, %v11235_v43  ;;  %v4832_v4 = vsel %vm2857_vm6, %v11365_v2, 0.0 }
 0x3cf   : > { %v4829_v47 = vadd.f32 %v4828_v56, %v4827_v60  ;;  %v4429_v58 = vpop.f32.mrf.mxu0  ;;  %v4714_v32 = vpop.f32.mrf.mxu1 }
 0x3d0   : > { %v4830_v52 = vsel %vm2857_vm6, %v11367_v5, 0.0  ;;  %v4430_v11 = vadd.f32 %v4429_v58, %v4123_v45  ;;  %v11377_v54 = vadd.f32 %v8519_v55, %v4436_v31 }
 0x3d1   : > { %v4831_v41 = vadd.f32 %v4830_v52, %v4829_v47  ;;  %v8466_v49 = vpop.f32.mrf.mxu0  ;;  %v8528_v40 = vpop.f32.mrf.mxu1 }
 0x3d2   : > { %v11379_v43 = vadd.f32 %v4690_v10, %v4430_v11  ;;  %v4448_v16 = vadd.f32 %v8466_v49, %v11242_v8  ;;  %v4836_v10 = vsel %vm2857_vm6, %v11377_v54, 0.0 }
 0x3d3   : > { %v4833_v24 = vadd.f32 %v4832_v4, %v4831_v41  ;;  %v4441_v57 = vpop.f32.mrf.mxu0  ;;  %v4726_v39 = vpop.f32.mrf.mxu1 }
 0x3d4   : > { %v4834_v33 = vsel %vm2857_vm6, %v11379_v43, 0.0  ;;  %v4442_v0 = vadd.f32 %v4441_v57, %v4139_v19  ;;  %v11389_v14 = vadd.f32 %v8522_v37, %v4448_v16  ;;  %v13139_v19 = vld [vmem:[#allocation47_spill] sm:$0xff] }
 0x3d5   : > { %v4835_v7 = vadd.f32 %v4834_v33, %v4833_v24  ;;  %v8469_v61 = vpop.f32.mrf.mxu0  ;;  %v8531_v55 = vpop.f32.mrf.mxu1  ;;  %v3887_v6 = vadd.f32 %v11266_v13, %v13139_v19  ;;  %v13140_v16 = vld [vmem:[#allocation55_spill] sm:$0xff]  ;;  %v13141_v13 = vld [vmem:[#allocation53_spill] sm:$0xff] }
 0x3d6   : > { %v11391_v8 = vadd.f32 %v4702_v18, %v4442_v0  ;;  %v4460_v59 = vadd.f32 %v8469_v61, %v11249_v17  ;;  %v4840_v18 = vsel %vm2857_vm6, %v11389_v14, 0.0  ;;  %v13142_v61 = vld [vmem:[#allocation48_spill] sm:$0xff]  ;;  %v13146_v19 = vld [vmem:[#allocation59_spill] sm:$0xff] }
 0x3d7   : > { %v4837_v62 = vadd.f32 %v4836_v10, %v4835_v7  ;;  %v4453_v46 = vpop.f32.mrf.mxu0  ;;  %v4738_v45 = vpop.f32.mrf.mxu1  ;;  %v4203_v7 = vadd.f32 %v13141_v13, %v3887_v6  ;;  %v3901_v10 = vadd.f32 %v11273_v36, %v13142_v61 }
 0x3d8   : > { %v4838_v38 = vsel %vm2857_vm6, %v11391_v8, 0.0  ;;  %v4454_v34 = vadd.f32 %v4453_v46, %v4155_v29  ;;  %v11401_v56 = vadd.f32 %v8525_v44, %v4460_v59 }
 0x3d9   : > { %v4839_v60 = vadd.f32 %v4838_v38, %v4837_v62  ;;  %v8472_v25 = vpop.f32.mrf.mxu0  ;;  %v8534_v37 = vpop.f32.mrf.mxu1 }
 0x3da   : > { %v11403_v17 = vadd.f32 %v4714_v32, %v4454_v34  ;;  %v4472_v31 = vadd.f32 %v8472_v25, %v11256_v12  ;;  %v4844_v32 = vsel %vm2857_vm6, %v11401_v56, 0.0  ;;  %v13143_v34 = vld [vmem:[#allocation57_spill] sm:$0xff] }
 0x3db   : > { %v4841_v47 = vadd.f32 %v4840_v18, %v4839_v60  ;;  %v4465_v58 = vpop.f32.mrf.mxu0  ;;  %v4750_v52 = vpop.f32.mrf.mxu1 }
 0x3dc   : > { %v4842_v27 = vsel %vm2857_vm6, %v11403_v17, 0.0  ;;  %v4466_v11 = vadd.f32 %v4465_v58, %v4171_v50  ;;  %v11413_v4 = vadd.f32 %v8528_v40, %v4472_v31  ;;  %v13144_v31 = vld [vmem:[#allocation54_spill] sm:$0xff] }
 0x3dd   : > { %v4843_v41 = vadd.f32 %v4842_v27, %v4841_v47  ;;  %v8475_v49 = vpop.f32.mrf.mxu0  ;;  %v8537_v44 = vpop.f32.mrf.mxu1  ;;  %v4219_v36 = vadd.f32 %v13144_v31, %v3901_v10  ;;  %v13145_v47 = vld [vmem:[#allocation49_spill] sm:$0xff] }
 0x3de   : > { %v11415_v12 = vadd.f32 %v4726_v39, %v4466_v11  ;;  %v4484_v24 = vadd.f32 %v8475_v49, %v13140_v16  ;;  %v4848_v39 = vsel %vm2857_vm6, %v11413_v4, 0.0  ;;  %v3915_v58 = vadd.f32 %v11280_v1, %v13145_v47  ;;  %v13150_v10 = vld [vmem:[#allocation61_spill] sm:$0xff] }
 0x3df   : > { %v4845_v57 = vadd.f32 %v4844_v32, %v4843_v41  ;;  %v4477_v33 = vpop.f32.mrf.mxu0  ;;  %v4762_v0 = vpop.f32.mrf.mxu1 }
 0x3e0   : > { %v4846_v29 = vsel %vm2857_vm6, %v11415_v12, 0.0  ;;  %v4478_v15 = vadd.f32 %v4477_v33, %v4187_v48  ;;  %v11425_v46 = vadd.f32 %v8531_v55, %v4484_v24  ;;  %v13147_v24 = vld [vmem:[#allocation56_spill] sm:$0xff]  ;;  %v13149_v33 = vld [vmem:[#allocation62_spill] sm:$0xff] }
 0x3e1   : > { %v4847_v59 = vadd.f32 %v4846_v29, %v4845_v57  ;;  %v8478_v62 = vpop.f32.mrf.mxu0  ;;  %v8540_v40 = vpop.f32.mrf.mxu1  ;;  %v4235_v1 = vadd.f32 %v13147_v24, %v3915_v58  ;;  %v13148_v57 = vld [vmem:[#allocation50_spill] sm:$0xff] }
 0x3e2   : > { %v11427_v38 = vadd.f32 %v4738_v45, %v4478_v15  ;;  %v4496_v50 = vadd.f32 %v8478_v62, %v13143_v34  ;;  %v4852_v55 = vsel %vm2857_vm6, %v11425_v46, 0.0  ;;  %v3929_v29 = vadd.f32 %v13149_v33, %v13148_v57 }
 0x3e3   : > { %v4849_v42 = vadd.f32 %v4848_v39, %v4847_v59  ;;  %v4489_v60 = vpop.f32.mrf.mxu0  ;;  %v4774_v23 = vpop.f32.mrf.mxu1 }
 0x3e4   : > { %v4850_v25 = vsel %vm2857_vm6, %v11427_v38, 0.0  ;;  %v4490_v18 = vadd.f32 %v4489_v60, %v4203_v7  ;;  %v11437_v45 = vadd.f32 %v8534_v37, %v4496_v50 }
 0x3e5   : > { %v4851_v27 = vadd.f32 %v4850_v25, %v4849_v42  ;;  %v8481_v11 = vpop.f32.mrf.mxu0  ;;  %v8543_v7 = vpop.f32.mrf.mxu1  ;;  %v13151_v42 = vld [vmem:[#allocation58_spill] sm:$0xff]  ;;  %v13152_v25 = vld [vmem:[#allocation51_spill] sm:$0xff] }
 0x3e6   : > { %v11439_v48 = vadd.f32 %v4750_v52, %v4490_v18  ;;  %v4508_v6 = vadd.f32 %v8481_v11, %v13146_v19  ;;  %v4856_v37 = vsel %vm2857_vm6, %v11437_v45, 0.0  ;;  %v4251_v60 = vadd.f32 %v13151_v42, %v3929_v29 }
 0x3e7   : > { %v4853_v41 = vadd.f32 %v4852_v55, %v4851_v27  ;;  %v4501_v49 = vpop.f32.mrf.mxu0  ;;  %v3943_v18 = vadd.f32 %v11294_v9, %v13152_v25  ;;  %v4786_v47 = vpop.f32.mrf.mxu1  ;;  %v13153_v27 = vld [vmem:[#allocation63_spill] sm:$0xff] }
 0x3e8   : > { %v4854_v32 = vsel %vm2857_vm6, %v11439_v48, 0.0  ;;  %v4502_v16 = vadd.f32 %v4501_v49, %v4219_v36  ;;  %v11449_v52 = vadd.f32 %v8537_v44, %v4508_v6  ;;  %v13154_v49 = vld [vmem:[#allocation60_spill] sm:$0xff] }
 0x3e9   : > { %v4855_v15 = vadd.f32 %v4854_v32, %v4853_v41  ;;  %v8484_v13 = vpop.f32.mrf.mxu0  ;;  %v4267_v9 = vadd.f32 %v13154_v49, %v3943_v18  ;;  %v8546_v24 = vpop.f32.mrf.mxu1 }
 0x3ea   : > { %v11451_v61 = vadd.f32 %v4762_v0, %v4502_v16  ;;  %v4520_v59 = vadd.f32 %v8484_v13, %v13150_v10  ;;  %v4860_v44 = vsel %vm2857_vm6, %v11449_v52, 0.0 }
 0x3eb   : > { %v4857_v62 = vadd.f32 %v4856_v37, %v4855_v15  ;;  %v4513_v39 = vpop.f32.mrf.mxu0  ;;  %v4798_v10 = vpop.f32.mrf.mxu1 }
 0x3ec   : > { %v4858_v34 = vsel %vm2857_vm6, %v11451_v61, 0.0  ;;  %v4514_v50 = vadd.f32 %v4513_v39, %v4235_v1  ;;  %v11461_v0 = vadd.f32 %v8540_v40, %v4520_v59 }
 0x3ed   : > { %v4859_v31 = vadd.f32 %v4858_v34, %v4857_v62  ;;  %v8487_v36 = vpop.f32.mrf.mxu0 }
 0x3ee   : > { %v11463_v58 = vadd.f32 %v4774_v23, %v4514_v50  ;;  %v4532_v11 = vadd.f32 %v8487_v36, %v13153_v27  ;;  %v4864_v1 = vsel %vm2857_vm6, %v11461_v0, 0.0 }
 0x3ef   : > { %v4861_v55 = vadd.f32 %v4860_v44, %v4859_v31  ;;  %v4525_v19 = vpop.f32.mrf.mxu0 }
 0x3f0   : > { %v4862_v6 = vsel %vm2857_vm6, %v11463_v58, 0.0  ;;  %v4526_v41 = vadd.f32 %v4525_v19, %v4251_v60  ;;  %v11471_v40 = vadd.f32 %v8543_v7, %v4532_v11 }
 0x3f1   : > { %v4863_v32 = vadd.f32 %v4862_v6, %v4861_v55  ;;  %v8490_v16 = vpop.f32.mrf.mxu0 }
 0x3f2   : > { %v11473_v23 = vadd.f32 %v4786_v47, %v4526_v41  ;;  %v4544_v57 = vadd.f32 %v8490_v16, %v11296_v20  ;;  %v4868_v59 = vsel %vm2857_vm6, %v11471_v40, 0.0 }
 0x3f3   : > { %v4865_v33 = vadd.f32 %v4864_v1, %v4863_v32  ;;  %v4537_v29 = vpop.f32.mrf.mxu0 }
 0x3f4   : > { %v4866_v15 = vsel %vm2857_vm6, %v11473_v23, 0.0  ;;  %v4538_v13 = vadd.f32 %v4537_v29, %v4267_v9  ;;  %v11480_v62 = vadd.f32 %v8546_v24, %v4544_v57 }
 0x3f5   : > { %v4867_v37 = vadd.f32 %v4866_v15, %v4865_v33 }
 0x3f6   : > { %v11482_v39 = vadd.f32 %v4798_v10, %v4538_v13  ;;  %v4872_v50 = vsel %vm2857_vm6, %v11480_v62, 0.0 }
 0x3f7   : > { %v4869_v7 = vadd.f32 %v4868_v59, %v4867_v37 }
 0x3f8   : > { %v4870_v34 = vsel %vm2857_vm6, %v11482_v39, 0.0 }
 0x3f9   : > { %v4871_v20 = vadd.f32 %v4870_v34, %v4869_v7 }
 0x3fb   : > { %v4873_v42 = vadd.f32 %v4872_v50, %v4871_v20 }
 0x3fd   : > { %v4874_v60 = vrot.slane %v4873_v42, 4 }
 0x3ff   : > { %v4875_v25 = vadd.f32 %v4874_v60, %v4873_v42 }
 0x401   : > { %v4876_v18 = vrot.slane %v4875_v25, 2 }
 0x403   : > { %v4877_v31 = vadd.f32 %v4876_v18, %v4875_v25 }
 0x405   : > { %v4878_v36 = vrot.slane %v4877_v31, 1 }
 0x407   : > { %v4879_v47 = vadd.f32 %v4878_v36, %v4877_v31 }
 0x409   : > { %v4880_v44 = vmul.f32 0.00390625, %v4879_v47 }
 0x40b   : > { %4882 = vst.msk [vmem:[#allocation4] sm:$0x1] %vm2583_vm5, %v4880_v44 }
 0x412   : > { %v11489_v27 = vld [vmem:[#allocation4] ss:$0 sm:$0xff] }
 0x413   : > { %v4890_v11 = vsub.f32 %v11307_v3, %v11489_v27  ;;  %v4891_v55 = vsub.f32 %v11305_v28, %v11489_v27  ;;  %v4892_v19 = vsub.f32 %v11319_v51, %v11489_v27  ;;  %v4893_v6 = vsub.f32 %v11317_v30, %v11489_v27 }
 0x414   : > { %v4894_v32 = vsub.f32 %v11331_v21, %v11489_v27  ;;  %v4895_v28 = vsub.f32 %v11329_v22, %v11489_v27  ;;  %v4896_v30 = vsub.f32 %v11343_v35, %v11489_v27  ;;  %v4897_v33 = vsub.f32 %v11341_v53, %v11489_v27 }
 0x415   : > { %v4923_v41 = vsel %vm2857_vm6, %v4890_v11, 0.0  ;;  %v4924_v49 = vsel %vm2857_vm6, %v4891_v55, 0.0  ;;  %v4926_v16 = vsel %vm2857_vm6, %v4892_v19, 0.0  ;;  %v4928_v24 = vsel %vm2857_vm6, %v4893_v6, 0.0 }
 0x416   : > { %v4925_v9 = vadd.f32 %v4924_v49, %v4923_v41  ;;  %v4930_v1 = vsel %vm2857_vm6, %v4894_v32, 0.0  ;;  %v4932_v21 = vsel %vm2857_vm6, %v4895_v28, 0.0  ;;  %v4898_v15 = vsub.f32 %v11355_v26, %v11489_v27 }
 0x417   : > { %v4934_v22 = vsel %vm2857_vm6, %v4896_v30, 0.0  ;;  %v4899_v37 = vsub.f32 %v11353_v63, %v11489_v27  ;;  %v4936_v35 = vsel %vm2857_vm6, %v4897_v33, 0.0  ;;  %v4900_v59 = vsub.f32 %v11367_v5, %v11489_v27 }
 0x418   : > { %v4927_v3 = vadd.f32 %v4926_v16, %v4925_v9  ;;  %v4938_v53 = vsel %vm2857_vm6, %v4898_v15, 0.0  ;;  %v4996_v7 = vmul.f32 %v4890_v11, %v4890_v11  ;;  %v4997_v34 = vmul.f32 %v4891_v55, %v4891_v55 }
 0x419   : > { %v4901_v26 = vsub.f32 %v11365_v2, %v11489_v27  ;;  %v4940_v50 = vsel %vm2857_vm6, %v4899_v37, 0.0  ;;  %v4998_v42 = vmul.f32 %v4892_v19, %v4892_v19  ;;  %v4902_v63 = vsub.f32 %v11379_v43, %v11489_v27 }
 0x41a   : > { %v4929_v51 = vadd.f32 %v4928_v24, %v4927_v3  ;;  %v4942_v25 = vsel %vm2857_vm6, %v4900_v59, 0.0  ;;  %v4999_v18 = vmul.f32 %v4893_v6, %v4893_v6  ;;  %v5028_v5 = vsel %vm2857_vm6, %v4996_v7, 0.0 }
 0x41b   : > { %v5029_v31 = vsel %vm2857_vm6, %v4997_v34, 0.0  ;;  %v4903_v44 = vsub.f32 %v11377_v54, %v11489_v27  ;;  %v4944_v2 = vsel %vm2857_vm6, %v4901_v26, 0.0  ;;  %v5000_v11 = vmul.f32 %v4894_v32, %v4894_v32 }
 0x41c   : > { %v4931_v57 = vadd.f32 %v4930_v1, %v4929_v51  ;;  %v5030_v47 = vadd.f32 %v5029_v31, %v5028_v5  ;;  %v5031_v55 = vsel %vm2857_vm6, %v4998_v42, 0.0  ;;  %v4904_v41 = vsub.f32 %v11391_v8, %v11489_v27 }
 0x41d   : > { %v4946_v6 = vsel %vm2857_vm6, %v4902_v63, 0.0  ;;  %v5001_v49 = vmul.f32 %v4895_v28, %v4895_v28  ;;  %v5033_v9 = vsel %vm2857_vm6, %v4999_v18, 0.0  ;;  %v4905_v54 = vsub.f32 %v11389_v14, %v11489_v27 }
 0x41e   : > { %v4933_v29 = vadd.f32 %v4932_v21, %v4931_v57  ;;  %v5032_v43 = vadd.f32 %v5031_v55, %v5030_v47  ;;  %v4948_v24 = vsel %vm2857_vm6, %v4903_v44, 0.0  ;;  %v5002_v32 = vmul.f32 %v4896_v30, %v4896_v30 }
 0x41f   : > { %v5035_v51 = vsel %vm2857_vm6, %v5000_v11, 0.0  ;;  %v4906_v8 = vsub.f32 %v11403_v17, %v11489_v27  ;;  %v4950_v21 = vsel %vm2857_vm6, %v4904_v41, 0.0  ;;  %v5003_v28 = vmul.f32 %v4897_v33, %v4897_v33 }
 0x420   : > { %v4935_v13 = vadd.f32 %v4934_v22, %v4933_v29  ;;  %v5034_v3 = vadd.f32 %v5033_v9, %v5032_v43  ;;  %v5037_v29 = vsel %vm2857_vm6, %v5001_v49, 0.0  ;;  %v4907_v14 = vsub.f32 %v11401_v56, %v11489_v27 }
 0x421   : > { %v5004_v30 = vmul.f32 %v4898_v15, %v4898_v15  ;;  %v4908_v17 = vsub.f32 %v11415_v12, %v11489_v27  ;;  %v4954_v34 = vsel %vm2857_vm6, %v4906_v8, 0.0  ;;  %v5005_v33 = vmul.f32 %v4899_v37, %v4899_v37 }
 0x422   : > { %v4937_v10 = vadd.f32 %v4936_v35, %v4935_v13  ;;  %v5036_v57 = vadd.f32 %v5035_v51, %v5034_v3  ;;  %v4952_v35 = vsel %vm2857_vm6, %v4905_v54, 0.0  ;;  %v4909_v56 = vsub.f32 %v11413_v4, %v11489_v27 }
 0x423   : > { %v5006_v15 = vmul.f32 %v4900_v59, %v4900_v59  ;;  %v4910_v12 = vsub.f32 %v11427_v38, %v11489_v27  ;;  %v4958_v31 = vsel %vm2857_vm6, %v4908_v17, 0.0  ;;  %v5007_v37 = vmul.f32 %v4901_v26, %v4901_v26 }
 0x424   : > { %v4939_v20 = vadd.f32 %v4938_v53, %v4937_v10  ;;  %v5038_v13 = vadd.f32 %v5037_v29, %v5036_v57  ;;  %v5039_v10 = vsel %vm2857_vm6, %v5002_v32, 0.0  ;;  %v4911_v4 = vsub.f32 %v11425_v46, %v11489_v27 }
 0x425   : > { %v4960_v11 = vsel %vm2857_vm6, %v4909_v56, 0.0  ;;  %v5008_v59 = vmul.f32 %v4902_v63, %v4902_v63  ;;  %v5047_v55 = vsel %vm2857_vm6, %v5006_v15, 0.0  ;;  %v4912_v38 = vsub.f32 %v11439_v48, %v11489_v27 }
 0x426   : > { %v4941_v60 = vadd.f32 %v4940_v50, %v4939_v20  ;;  %v5040_v7 = vadd.f32 %v5039_v10, %v5038_v13  ;;  %v5041_v20 = vsel %vm2857_vm6, %v5003_v28, 0.0  ;;  %v5009_v26 = vmul.f32 %v4903_v44, %v4903_v44 }
 0x427   : > { %v5049_v49 = vsel %vm2857_vm6, %v5007_v37, 0.0  ;;  %v4913_v46 = vsub.f32 %v11437_v45, %v11489_v27  ;;  %v4964_v3 = vsel %vm2857_vm6, %v4911_v4, 0.0  ;;  %v5010_v63 = vmul.f32 %v4904_v41, %v4904_v41 }
 0x428   : > { %v4943_v36 = vadd.f32 %v4942_v25, %v4941_v60  ;;  %v5042_v42 = vadd.f32 %v5041_v20, %v5040_v7  ;;  %v4956_v60 = vsel %vm2857_vm6, %v4907_v14, 0.0  ;;  %v5043_v25 = vsel %vm2857_vm6, %v5004_v30, 0.0 }
 0x429   : > { %v4914_v48 = vsub.f32 %v11451_v61, %v11489_v27  ;;  %v5011_v44 = vmul.f32 %v4905_v54, %v4905_v54  ;;  %v5053_v57 = vsel %vm2857_vm6, %v5009_v26, 0.0  ;;  %v4915_v45 = vsub.f32 %v11449_v52, %v11489_v27 }
 0x42a   : > { %v4945_v19 = vadd.f32 %v4944_v2, %v4943_v36  ;;  %v5044_v5 = vadd.f32 %v5043_v25, %v5042_v42  ;;  %v5045_v36 = vsel %vm2857_vm6, %v5005_v33, 0.0  ;;  %v4968_v29 = vsel %vm2857_vm6, %v4913_v46, 0.0 }
 0x42b   : > { %v5012_v41 = vmul.f32 %v4906_v8, %v4906_v8  ;;  %v4916_v61 = vsub.f32 %v11463_v58, %v11489_v27  ;;  %v4970_v30 = vsel %vm2857_vm6, %v4914_v48, 0.0  ;;  %v5013_v54 = vmul.f32 %v4907_v14, %v4907_v14 }
 0x42c   : > { %v4947_v16 = vadd.f32 %v4946_v6, %v4945_v19  ;;  %v5046_v2 = vadd.f32 %v5045_v36, %v5044_v5  ;;  %v4962_v6 = vsel %vm2857_vm6, %v4910_v12, 0.0  ;;  %v5057_v10 = vsel %vm2857_vm6, %v5011_v44, 0.0 }
 0x42d   : > { %v4917_v52 = vsub.f32 %v11461_v0, %v11489_v27  ;;  %v5014_v8 = vmul.f32 %v4908_v17, %v4908_v17  ;;  %v5059_v33 = vsel %vm2857_vm6, %v5012_v41, 0.0  ;;  %v4918_v58 = vsub.f32 %v11473_v23, %v11489_v27 }
 0x42e   : > { %v4949_v1 = vadd.f32 %v4948_v24, %v4947_v16  ;;  %v5048_v43 = vadd.f32 %v5047_v55, %v5046_v2  ;;  %v5051_v24 = vsel %vm2857_vm6, %v5008_v59, 0.0  ;;  %v4974_v42 = vsel %vm2857_vm6, %v4916_v61, 0.0 }
 0x42f   : > { %v5015_v14 = vmul.f32 %v4909_v56, %v4909_v56  ;;  %v4919_v0 = vsub.f32 %v11471_v40, %v11489_v27  ;;  %v5016_v17 = vmul.f32 %v4910_v12, %v4910_v12  ;;  %v5063_v5 = vsel %vm2857_vm6, %v5014_v8, 0.0 }
 0x430   : > { %v4951_v22 = vadd.f32 %v4950_v21, %v4949_v1  ;;  %v5050_v16 = vadd.f32 %v5049_v49, %v5048_v43  ;;  %v4966_v1 = vsel %vm2857_vm6, %v4912_v38, 0.0  ;;  %v4920_v23 = vsub.f32 %v11482_v39, %v11489_v27 }
 0x431   : > { %v4978_v36 = vsel %vm2857_vm6, %v4918_v58, 0.0  ;;  %v5017_v56 = vmul.f32 %v4911_v4, %v4911_v4  ;;  %v4921_v40 = vsub.f32 %v11480_v62, %v11489_v27  ;;  %v4980_v59 = vsel %vm2857_vm6, %v4919_v0, 0.0 }
 0x432   : > { %v4953_v53 = vadd.f32 %v4952_v35, %v4951_v22  ;;  %v5052_v51 = vadd.f32 %v5051_v24, %v5050_v16  ;;  %v5055_v22 = vsel %vm2857_vm6, %v5010_v63, 0.0  ;;  %v5018_v12 = vmul.f32 %v4912_v38, %v4912_v38 }
 0x433   : > { %v5067_v55 = vsel %vm2857_vm6, %v5016_v17, 0.0  ;;  %v5019_v39 = vmul.f32 %v4913_v46, %v4913_v46  ;;  %v5069_v26 = vsel %vm2857_vm6, %v5017_v56, 0.0  ;;  %v5020_v16 = vmul.f32 %v4914_v48, %v4914_v48  ;;  %v4995_v17 = vld [vmem:[#allocation4 + $0x2] sm:$0x1] }
 0x434   : > { %v4955_v50 = vadd.f32 %v4954_v34, %v4953_v53  ;;  %v5054_v28 = vadd.f32 %v5053_v57, %v5052_v51  ;;  %v4972_v34 = vsel %vm2857_vm6, %v4915_v45, 0.0  ;;  %v5021_v63 = vmul.f32 %v4915_v45, %v4915_v45 }
 0x435   : > { %v5073_v38 = vsel %vm2857_vm6, %v5019_v39, 0.0  ;;  %v5022_v51 = vmul.f32 %v4916_v61, %v4916_v61  ;;  %v5023_v57 = vmul.f32 %v4917_v52, %v4917_v52  ;;  %v5024_v48 = vmul.f32 %v4918_v58, %v4918_v58  ;;  %v4922_v61 = vld [vmem:[#allocation4 + $0x1] sm:$0x1] }
 0x436   : > { %v4957_v18 = vadd.f32 %v4956_v60, %v4955_v50  ;;  %v5056_v35 = vadd.f32 %v5055_v22, %v5054_v28  ;;  %v5061_v60 = vsel %vm2857_vm6, %v5013_v54, 0.0  ;;  %v5025_v45 = vmul.f32 %v4919_v0, %v4919_v0 }
 0x437   : > { %v5079_v41 = vsel %vm2857_vm6, %v5022_v51, 0.0 }
 0x438   : > { %v4959_v47 = vadd.f32 %v4958_v31, %v4957_v18  ;;  %v5058_v7 = vadd.f32 %v5057_v10, %v5056_v35  ;;  %v4976_v18 = vsel %vm2857_vm6, %v4917_v52, 0.0  ;;  %v5081_v35 = vsel %vm2857_vm6, %v5023_v57, 0.0 }
 0x439   : > { %v5026_v10 = vmul.f32 %v4920_v23, %v4920_v23  ;;  %v5085_v8 = vsel %vm2857_vm6, %v5025_v45, 0.0 }
 0x43a   : > { %v4961_v19 = vadd.f32 %v4960_v11, %v4959_v47  ;;  %v5060_v50 = vadd.f32 %v5059_v33, %v5058_v7  ;;  %v5065_v47 = vsel %vm2857_vm6, %v5015_v14, 0.0 }
 0x43c   : > { %v4963_v9 = vadd.f32 %v4962_v6, %v4961_v19  ;;  %v5062_v25 = vadd.f32 %v5061_v60, %v5060_v50  ;;  %v4982_v6 = vsel %vm2857_vm6, %v4920_v23, 0.0  ;;  %v5087_v50 = vsel %vm2857_vm6, %v5026_v10, 0.0 }
 0x43e   : > { %v4965_v32 = vadd.f32 %v4964_v3, %v4963_v9  ;;  %v5064_v37 = vadd.f32 %v5063_v5, %v5062_v25  ;;  %v4984_v9 = vsel %vm2857_vm6, %v4921_v40, 0.0  ;;  %v5071_v3 = vsel %vm2857_vm6, %v5018_v12, 0.0 }
 0x440   : > { %v4967_v21 = vadd.f32 %v4966_v1, %v4965_v32  ;;  %v5066_v11 = vadd.f32 %v5065_v47, %v5064_v37  ;;  %v5075_v1 = vsel %vm2857_vm6, %v5020_v16, 0.0 }
 0x442   : > { %v4969_v13 = vadd.f32 %v4968_v29, %v4967_v21  ;;  %v5068_v43 = vadd.f32 %v5067_v55, %v5066_v11  ;;  %v5077_v21 = vsel %vm2857_vm6, %v5021_v63, 0.0 }
 0x444   : > { %v4971_v53 = vadd.f32 %v4970_v30, %v4969_v13  ;;  %v5070_v49 = vadd.f32 %v5069_v26, %v5068_v43 }
 0x446   : > { %v4973_v20 = vadd.f32 %v4972_v34, %v4971_v53  ;;  %v5072_v27 = vadd.f32 %v5071_v3, %v5070_v49  ;;  %v5083_v53 = vsel %vm2857_vm6, %v5024_v48, 0.0  ;;  %v5027_v34 = vmul.f32 %v4921_v40, %v4921_v40 }
 0x448   : > { %v4975_v15 = vadd.f32 %v4974_v42, %v4973_v20  ;;  %v5074_v32 = vadd.f32 %v5073_v38, %v5072_v27  ;;  %v5089_v42 = vsel %vm2857_vm6, %v5027_v34, 0.0 }
 0x44a   : > { %v4977_v31 = vadd.f32 %v4976_v18, %v4975_v15  ;;  %v5076_v44 = vadd.f32 %v5075_v1, %v5074_v32 }
 0x44c   : > { %v4979_v2 = vadd.f32 %v4978_v36, %v4977_v31  ;;  %v5078_v29 = vadd.f32 %v5077_v21, %v5076_v44 }
 0x44e   : > { %v4981_v19 = vadd.f32 %v4980_v59, %v4979_v2  ;;  %v5080_v13 = vadd.f32 %v5079_v41, %v5078_v29 }
 0x450   : > { %v4983_v4 = vadd.f32 %v4982_v6, %v4981_v19  ;;  %v5082_v54 = vadd.f32 %v5081_v35, %v5080_v13 }
 0x452   : > { %v4985_v62 = vadd.f32 %v4984_v9, %v4983_v4  ;;  %v5084_v52 = vadd.f32 %v5083_v53, %v5082_v54 }
 0x454   : > { %v4986_v24 = vrot.slane %v4985_v62, 4  ;;  %v5086_v20 = vadd.f32 %v5085_v8, %v5084_v52 }
 0x456   : > { %v4987_v46 = vadd.f32 %v4986_v24, %v4985_v62  ;;  %v5088_v58 = vadd.f32 %v5087_v50, %v5086_v20 }
 0x458   : > { %v4988_v28 = vrot.slane %v4987_v46, 2  ;;  %v5090_v14 = vadd.f32 %v5089_v42, %v5088_v58 }
 0x45a   : > { %v4989_v22 = vadd.f32 %v4988_v28, %v4987_v46  ;;  %v5091_v60 = vrot.slane %v5090_v14, 4 }
 0x45c   : > { %v4990_v30 = vrot.slane %v4989_v22, 1  ;;  %v5092_v15 = vadd.f32 %v5091_v60, %v5090_v14 }
 0x45e   : > { %v4991_v7 = vadd.f32 %v4990_v30, %v4989_v22  ;;  %v5093_v25 = vrot.slane %v5092_v15, 2 }
 0x460   : > { %v4992_v33 = vadd.f32 %v4991_v7, %v4922_v61  ;;  %v5094_v0 = vadd.f32 %v5093_v25, %v5092_v15 }
 0x462   : > { %4994 = vst.msk [vmem:[#allocation4 + $0x1] sm:$0x1] %vm2583_vm5, %v4992_v33  ;;  %v5095_v18 = vrot.slane %v5094_v0, 1 }
 0x464   : > { %v5096_v5 = vadd.f32 %v5095_v18, %v5094_v0 }
 0x466   : > { %v5097_v31 = vadd.f32 %v5096_v5, %v4995_v17 }
 0x468   : > { %5098 = vst.msk [vmem:[#allocation4 + $0x2] sm:$0x1] %vm2583_vm5, %v5097_v31 }
 0x469 PF: > { %p7274_p6 = scmp.ne.s32.totalorder %s8991_s24, 2 }
 0x46b   : > { %5102 = sbr.rel (%p7274_p6) target bundleno = 1546 (0x60a), region = 72 }
 0x470   : > { %v5163_v37 = vld [vmem:[%s12727_s2 + $0x18] sm:$0xff]  ;;  %v5162_v23 = vld [vmem:[%s12727_s2 + $0x10] sm:$0xff]  ;;  %v5161_v36 = vld [vmem:[%s12727_s2 + $0x8] sm:$0xff]  ;;  %vm5164_vm8 = vcmask 261120   ;;  %vm5120_vm9 = vcmask 253952  }
 0x471   : > { %v11631_v56 = vand.u32 4294901760, %v5163_v37  ;;  %v11633_v47 = vand.u32 4294901760, %v5162_v23  ;;  %v11635_v2 = vand.u32 4294901760, %v5161_v36  ;;  %v5160_v11 = vld [vmem:[%s12727_s2] sm:$0xff]  ;;  %v5129_v59 = vld [vmem:[#allocation2 + $0x8] sm:$0xff]  ;;  %v5130_v43 = vld [vmem:[#allocation2 + $0x10] sm:$0xff] }
 0x472   : > { %v5128_v40 = vld [vmem:[#allocation2] sm:$0xff]  ;;  %v11640_v12 = vand.u32 4294901760, %v5160_v11  ;;  %v5169_v19 = vsel %vm5164_vm8, %v5129_v59, 0  ;;  %v5131_v6 = vld [vmem:[#allocation2 + $0x18] sm:$0xff]  ;;  %v5172_v16 = vsel %vm5164_vm8, %v5130_v43, 0  ;;  %v5133_v45 = vld [vmem:[#allocation2 + $0x28] sm:$0xff] }
 0x473   : > { %v5166_v55 = vsel %vm5164_vm8, %v5128_v40, 0  ;;  %8547 = vmatprep.subr.mxu0 %v11631_v56  ;;  %v11646_v39 = vsub.f32 %v5163_v37, %v11631_v56  ;;  %v11650_v4 = vand.u32 4294901760, %v5169_v19  ;;  %v11653_v49 = vsub.f32 %v5162_v23, %v11633_v47  ;;  %v5132_v13 = vld [vmem:[#allocation2 + $0x20] sm:$0xff]  ;;  %v5134_v10 = vld [vmem:[#allocation2 + $0x30] sm:$0xff]  ;;  %v5135_v53 = vld [vmem:[#allocation2 + $0x38] sm:$0xff] }
 0x474   : > { %v11648_v26 = vand.u32 4294901760, %v5166_v55  ;;  %8548 = vmatpush3.msra.mxu0 %v11631_v56  ;;  %v11657_v9 = vsub.f32 %v5161_v36, %v11635_v2  ;;  %v5175_v3 = vsel %vm5164_vm8, %v5131_v6, 0  ;;  %v11662_v62 = vsub.f32 %v5160_v11, %v11640_v12  ;;  %v5136_v33 = vld [vmem:[#allocation2 + $0x40] sm:$0xff]  ;;  %v5137_v20 = vld [vmem:[#allocation2 + $0x48] sm:$0xff]  ;;  %v5138_v37 = vld [vmem:[#allocation2 + $0x50] sm:$0xff] }
 0x475   : > { %13156 = vst [vmem:[#allocation67_spill] sm:$0xff] %v11650_v4  ;;  %8549 = vmatprep.subr.mxu0 %v11633_v47  ;;  %v11666_v27 = vand.u32 4294901760, %v11646_v39  ;;  %v11672_v38 = vsub.f32 %v5169_v19, %v11650_v4  ;;  %v11675_v24 = vand.u32 4294901760, %v11653_v49  ;;  %v11682_v51 = vand.u32 4294901760, %v5172_v16  ;;  %v5139_v23 = vld [vmem:[#allocation2 + $0x58] sm:$0xff] }
 0x476   : > { %13155 = vst [vmem:[#allocation66_spill] sm:$0xff] %v11648_v26  ;;  %v11669_v63 = vsub.f32 %v5166_v55, %v11648_v26  ;;  %8611 = vmatprep.mubr.f32.mxu1 %v11648_v26  ;;  %8550 = vmatpush3.msra.mxu0 %v11633_v47  ;;  %v11680_v32 = vand.u32 4294901760, %v11657_v9  ;;  %v11684_v1 = vand.u32 4294901760, %v5175_v3  ;;  %v11687_v46 = vand.u32 4294901760, %v11662_v62 }
 0x477   : > { %13157 = vst [vmem:[#allocation68_spill] sm:$0xff] %v11682_v51  ;;  %8551 = vmatprep.subr.mxu0 %v11635_v2  ;;  %v5678_v44 = vsub.f32 %v11646_v39, %v11666_v27  ;;  %v12861_v21 = vand.u32 4294901760, %v11672_v38  ;;  %v5685_v28 = vsub.f32 %v11653_v49, %v11675_v24  ;;  %v11700_v48 = vsub.f32 %v5172_v16, %v11682_v51 }
 0x478   : > { %13158 = vst [vmem:[#allocation69_spill] sm:$0xff] %v11684_v1  ;;  %v12862_v57 = vand.u32 4294901760, %v11669_v63  ;;  %8552 = vmatpush3.msra.mxu0 %v11635_v2  ;;  %v5692_v29 = vsub.f32 %v11657_v9, %v11680_v32  ;;  %v11703_v41 = vsub.f32 %v5175_v3, %v11684_v1  ;;  %v5699_v22 = vsub.f32 %v11662_v62, %v11687_v46 }
 0x479   : > { %8553 = vmatprep.subr.mxu0 %v11640_v12  ;;  %v5679_v35 = vand.u32 4294901760, %v5678_v44  ;;  %v5343_v54 = vsub.f32 %v11672_v38, %v12861_v21  ;;  %v5686_v61 = vand.u32 4294901760, %v5685_v28  ;;  %v12859_v52 = vand.u32 4294901760, %v11700_v48 }
 0x47a   : > { %v5333_v30 = vsub.f32 %v11669_v63, %v12862_v57  ;;  %8554 = vmatpush3.msra.mxu0 %v11640_v12  ;;  %v5693_v7 = vand.u32 4294901760, %v5692_v29  ;;  %v12858_v34 = vand.u32 4294901760, %v11703_v41  ;;  %v5700_v8 = vand.u32 4294901760, %v5699_v22  ;;  %v5150_v57 = vld [vmem:[#allocation2 + $0xb0] sm:$0xff] }
 0x47b   : > { %8603 = vmatprep.subr.mxu1 %v5679_v35  ;;  %v5344_v58 = vand.u32 4294901760, %v5343_v54  ;;  %8659 = vmatprep.subr.mxu0 %v11646_v39  ;;  %v5178_v42 = vsel %vm5164_vm8, %v5132_v13, 0  ;;  %v5181_v14 = vsel %vm5164_vm8, %v5133_v45, 0  ;;  %v5353_v60 = vsub.f32 %v11700_v48, %v12859_v52 }
 0x47c   : > { %v5334_v50 = vand.u32 4294901760, %v5333_v30  ;;  %8604 = vmatpush3.msra.mxu1 %v5679_v35  ;;  %v5363_v15 = vsub.f32 %v11703_v41, %v12858_v34  ;;  %v11726_v25 = vand.u32 4294901760, %v5178_v42  ;;  %v11728_v0 = vand.u32 4294901760, %v5181_v14 }
 0x47d   : > { %8605 = vmatprep.subr.mxu1 %v5686_v61  ;;  %v5184_v18 = vsel %vm5164_vm8, %v5134_v10, 0  ;;  %v5187_v17 = vsel %vm5164_vm8, %v5135_v53, 0  ;;  %v5190_v5 = vsel %vm5164_vm8, %v5136_v33, 0  ;;  %v5193_v31 = vsel %vm5164_vm8, %v5137_v20, 0  ;;  %v5141_v33 = vld [vmem:[#allocation2 + $0x68] sm:$0xff] }
 0x47e   : > { %13159 = vst [vmem:[#allocation70_spill] sm:$0xff] %v11726_v25  ;;  %13160 = vst [vmem:[#allocation71_spill] sm:$0xff] %v11728_v0  ;;  %8555 = vmatprep.mubr.f32.mxu0 %v5334_v50  ;;  %8606 = vmatpush3.msra.mxu1 %v5686_v61  ;;  %v5354_v36 = vand.u32 4294901760, %v5353_v60  ;;  %v5364_v11 = vand.u32 4294901760, %v5363_v15  ;;  %v11735_v40 = vsub.f32 %v5178_v42, %v11726_v25  ;;  %v11741_v55 = vand.u32 4294901760, %v5184_v18 }
 0x47f   : > { %8556 = vmatmul.mubr.f32.vlgmr.msra.gmra.mxu0 %v5344_v58  ;;  %v11738_v59 = vsub.f32 %v5181_v14, %v11728_v0  ;;  %8607 = vmatprep.subr.mxu1 %v5693_v7  ;;  %v11743_v19 = vand.u32 4294901760, %v5187_v17  ;;  %v11745_v43 = vand.u32 4294901760, %v5190_v5  ;;  %v11747_v6 = vand.u32 4294901760, %v5193_v31 }
 0x480   : > { %8660 = vmatpush3.msra.mxu0 %v11646_v39  ;;  %13161 = vst [vmem:[#allocation72_spill] sm:$0xff] %v11741_v55  ;;  %8558 = vmatprep.mubr.f32.mxu0 %v5354_v36  ;;  %v12856_v16 = vand.u32 4294901760, %v11735_v40  ;;  %v5196_v44 = vsel %vm5164_vm8, %v5138_v37, 0  ;;  %v5199_v28 = vsel %vm5164_vm8, %v5139_v23, 0  ;;  %v11754_v39 = vsub.f32 %v5184_v18, %v11741_v55 }
 0x481   : > { %13162 = vst [vmem:[#allocation73_spill] sm:$0xff] %v11743_v19  ;;  %13163 = vst [vmem:[#allocation74_spill] sm:$0xff] %v11745_v43  ;;  %8608 = vmatpush3.msra.mxu1 %v5693_v7  ;;  %v12855_v3 = vand.u32 4294901760, %v11738_v59  ;;  %v11757_v29 = vsub.f32 %v5187_v17, %v11743_v19  ;;  %v11760_v22 = vsub.f32 %v5190_v5, %v11745_v43  ;;  %v11771_v30 = vand.u32 4294901760, %v5196_v44  ;;  %v5142_v17 = vld [vmem:[#allocation2 + $0x70] sm:$0xff]  ;;  %v5143_v5 = vld [vmem:[#allocation2 + $0x78] sm:$0xff] }
 0x482   : > { %13164 = vst [vmem:[#allocation75_spill] sm:$0xff] %v11747_v6  ;;  %8609 = vmatprep.subr.mxu1 %v5700_v8  ;;  %v11763_v13 = vsub.f32 %v5193_v31, %v11747_v6  ;;  %v5373_v45 = vsub.f32 %v11735_v40, %v12856_v16  ;;  %v11773_v54 = vand.u32 4294901760, %v5199_v28  ;;  %v12854_v61 = vand.u32 4294901760, %v11754_v39  ;;  %8661 = vmatprep.subr.mxu0 %v11653_v49 }
 0x483   : > { %8559 = vmatmul.mubr.f32.gmra.mxu0 %v5364_v11  ;;  %8610 = vmatpush3.msra.mxu1 %v5700_v8  ;;  %v5383_v35 = vsub.f32 %v11738_v59, %v12855_v3  ;;  %13165 = vst [vmem:[#allocation76_spill] sm:$0xff] %v11771_v30  ;;  %v12852_v10 = vand.u32 4294901760, %v11757_v29  ;;  %v12851_v53 = vand.u32 4294901760, %v11760_v22  ;;  %v5140_v8 = vld [vmem:[#allocation2 + $0x60] sm:$0xff]  ;;  %v11784_v58 = vsub.f32 %v5196_v44, %v11771_v30  ;;  %v5145_v44 = vld [vmem:[#allocation2 + $0x88] sm:$0xff] }
 0x484   : > { %13166 = vst [vmem:[#allocation77_spill] sm:$0xff] %v11773_v54  ;;  %8612 = vmatmul.mubr.f32.vlgmr.msra.gmra.mxu1 %v11650_v4  ;;  %8715 = vmatprep.subr.mxu1 %v11631_v56  ;;  %v12849_v7 = vand.u32 4294901760, %v11763_v13  ;;  %v5374_v20 = vand.u32 4294901760, %v5373_v45  ;;  %v11787_v42 = vsub.f32 %v5199_v28, %v11773_v54  ;;  %v5393_v14 = vsub.f32 %v11754_v39, %v12854_v61  ;;  %v5144_v11 = vld [vmem:[#allocation2 + $0x80] sm:$0xff] }
 0x485   : > { %8716 = vmatpush3.msra.mxu1 %v11631_v56  ;;  %v5384_v50 = vand.u32 4294901760, %v5383_v35  ;;  %8614 = vmatprep.mubr.f32.mxu1 %v11682_v51  ;;  %v5403_v60 = vsub.f32 %v11757_v29, %v12852_v10  ;;  %v5413_v15 = vsub.f32 %v11760_v22, %v12851_v53  ;;  %v12850_v31 = vand.u32 4294901760, %v11784_v58 }
 0x486   : > { %v5423_v18 = vsub.f32 %v11763_v13, %v12849_v7  ;;  %8561 = vmatprep.mubr.f32.mxu0 %v5374_v20  ;;  %v12853_v37 = vand.u32 4294901760, %v11787_v42  ;;  %8662 = vmatpush3.msra.mxu0 %v11653_v49  ;;  %v5202_v23 = vsel %vm5164_vm8, %v5140_v8, 0  ;;  %v5205_v36 = vsel %vm5164_vm8, %v5141_v33, 0 }
 0x487   : > { %8562 = vmatmul.mubr.f32.gmra.mxu0 %v5384_v50  ;;  %v5394_v28 = vand.u32 4294901760, %v5393_v14  ;;  %v5404_v45 = vand.u32 4294901760, %v5403_v60  ;;  %v5414_v35 = vand.u32 4294901760, %v5413_v15  ;;  %v5433_v7 = vsub.f32 %v11784_v58, %v12850_v31  ;;  %8717 = vmatprep.subr.mxu1 %v11633_v47  ;;  %v5146_v15 = vld [vmem:[#allocation2 + $0x90] sm:$0xff] }
 0x488   : > { %8615 = vmatmul.mubr.f32.gmra.mxu1 %v11684_v1  ;;  %v5424_v20 = vand.u32 4294901760, %v5423_v18  ;;  %v11813_v49 = vand.u32 4294901760, %v5202_v23  ;;  %v11815_v8 = vand.u32 4294901760, %v5205_v36  ;;  %v5208_v33 = vsel %vm5164_vm8, %v5142_v17, 0  ;;  %v5147_v18 = vld [vmem:[#allocation2 + $0x98] sm:$0xff]  ;;  %8663 = vmatprep.subr.mxu0 %v11657_v9 }
 0x489   : > { %8617 = vmatprep.mubr.f32.mxu1 %v11726_v25  ;;  %8564 = vmatprep.mubr.f32.mxu0 %v5394_v28  ;;  %v5211_v50 = vsel %vm5164_vm8, %v5143_v5, 0  ;;  %v5214_v14 = vsel %vm5164_vm8, %v5144_v11, 0  ;;  %v5217_v60 = vsel %vm5164_vm8, %v5145_v44, 0  ;;  %v5434_v31 = vand.u32 4294901760, %v5433_v7 }
 0x48a   : > { %13167 = vst [vmem:[#allocation78_spill] sm:$0xff] %v11813_v49  ;;  %13168 = vst [vmem:[#allocation79_spill] sm:$0xff] %v11815_v8  ;;  %8718 = vmatpush3.msra.mxu1 %v11633_v47  ;;  %v5443_v53 = vsub.f32 %v11787_v42, %v12853_v37  ;;  %v11826_v10 = vsub.f32 %v5202_v23, %v11813_v49  ;;  %v11829_v28 = vsub.f32 %v5205_v36, %v11815_v8 }
 0x48b   : > { %8719 = vmatprep.subr.mxu1 %v11635_v2  ;;  %8565 = vmatmul.mubr.f32.gmra.mxu0 %v5404_v45  ;;  %v11834_v17 = vand.u32 4294901760, %v5208_v33  ;;  %v11836_v7 = vand.u32 4294901760, %v5211_v50  ;;  %v11838_v5 = vand.u32 4294901760, %v5214_v14  ;;  %v11840_v11 = vand.u32 4294901760, %v5217_v60 }
 0x48c   : > { %8618 = vmatmul.mubr.f32.gmra.mxu1 %v11728_v0  ;;  %8567 = vmatprep.mubr.f32.mxu0 %v5414_v35  ;;  %v12857_v23 = vand.u32 4294901760, %v11826_v10  ;;  %v12860_v36 = vand.u32 4294901760, %v11829_v28  ;;  %v5220_v44 = vsel %vm5164_vm8, %v5146_v15, 0  ;;  %v5223_v45 = vsel %vm5164_vm8, %v5147_v18, 0 }
 0x48d   : > { %13169 = vst [vmem:[#allocation80_spill] sm:$0xff] %v11834_v17  ;;  %13170 = vst [vmem:[#allocation81_spill] sm:$0xff] %v11836_v7  ;;  %8620 = vmatprep.mubr.f32.mxu1 %v11741_v55  ;;  %v11848_v37 = vsub.f32 %v5208_v33, %v11834_v17  ;;  %v11851_v61 = vsub.f32 %v5211_v50, %v11836_v7  ;;  %v11854_v3 = vsub.f32 %v5214_v14, %v11838_v5  ;;  %v5151_v14 = vld [vmem:[#allocation2 + $0xb8] sm:$0xff] }
 0x48e   : > { %13171 = vst [vmem:[#allocation82_spill] sm:$0xff] %v11838_v5  ;;  %13172 = vst [vmem:[#allocation83_spill] sm:$0xff] %v11840_v11  ;;  %v11857_v35 = vsub.f32 %v5217_v60, %v11840_v11  ;;  %8664 = vmatpush3.msra.mxu0 %v11657_v9  ;;  %v5444_v16 = vand.u32 4294901760, %v5443_v53  ;;  %v5453_v15 = vsub.f32 %v11826_v10, %v12857_v23  ;;  %v11863_v18 = vand.u32 4294901760, %v5220_v44  ;;  %v5148_v60 = vld [vmem:[#allocation2 + $0xa0] sm:$0xff]  ;;  %v5149_v23 = vld [vmem:[#allocation2 + $0xa8] sm:$0xff] }
 0x48f   : > { %v11865_v33 = vand.u32 4294901760, %v5223_v45  ;;  %8720 = vmatpush3.msra.mxu1 %v11635_v2  ;;  %8665 = vmatprep.subr.mxu0 %v11662_v62  ;;  %v5463_v9 = vsub.f32 %v11829_v28, %v12860_v36  ;;  %v12866_v53 = vand.u32 4294901760, %v11848_v37  ;;  %v12865_v50 = vand.u32 4294901760, %v11851_v61 }
 0x490   : > { %13173 = vst [vmem:[#allocation84_spill] sm:$0xff] %v11863_v18  ;;  %8568 = vmatmul.mubr.f32.gmra.mxu0 %v5424_v20  ;;  %8621 = vmatmul.mubr.f32.gmra.mxu1 %v11743_v19  ;;  %v5454_v34 = vand.u32 4294901760, %v5453_v15  ;;  %v11878_v20 = vsub.f32 %v5220_v44, %v11863_v18  ;;  %v5226_v15 = vsel %vm5164_vm8, %v5148_v60, 0  ;;  %v5229_v44 = vsel %vm5164_vm8, %v5149_v23, 0  ;;  %v5153_v19 = vld [vmem:[#allocation2 + $0xc8] sm:$0xff] }
 0x491   : > { %8570 = vmatprep.mubr.f32.mxu0 %v5434_v31  ;;  %8623 = vmatprep.mubr.f32.mxu1 %v11745_v43  ;;  %v5473_v52 = vsub.f32 %v11848_v37, %v12866_v53  ;;  %v5483_v21 = vsub.f32 %v11851_v61, %v12865_v50  ;;  %v11889_v31 = vsub.f32 %v5223_v45, %v11865_v33  ;;  %v5152_v43 = vld [vmem:[#allocation2 + $0xc0] sm:$0xff]  ;;  %v13174_v50 = vand.u32 4294901760, %v11854_v3 }
 0x492   : > { %8666 = vmatpush3.msra.mxu0 %v11662_v62  ;;  %8721 = vmatprep.subr.mxu1 %v11640_v12  ;;  %v5464_v62 = vand.u32 4294901760, %v5463_v9  ;;  %v11901_v53 = vand.u32 4294901760, %v5226_v15  ;;  %v11903_v36 = vand.u32 4294901760, %v5229_v44  ;;  %v5232_v9 = vsel %vm5164_vm8, %v5150_v57, 0 }
 0x493   : > { %8771 = vmatprep.subr.mxu0 %v11666_v27  ;;  %v5493_v45 = vsub.f32 %v11854_v3, %v13174_v50  ;;  %v5474_v60 = vand.u32 4294901760, %v5473_v52  ;;  %v5235_v55 = vsel %vm5164_vm8, %v5151_v14, 0  ;;  %v5154_v50 = vld [vmem:[#allocation2 + $0xd0] sm:$0xff]  ;;  %8722 = vmatpush3.msra.mxu1 %v11640_v12  ;;  %v5484_v52 = vand.u32 4294901760, %v5483_v21 }
 0x494   : > { %8571 = vmatmul.mubr.f32.gmra.mxu0 %v5444_v16  ;;  %8624 = vmatmul.mubr.f32.gmra.mxu1 %v11747_v6  ;;  %v13175_v16 = vand.u32 4294901760, %v11857_v35  ;;  %v11917_v0 = vsub.f32 %v5229_v44, %v11903_v36  ;;  %v11921_v57 = vand.u32 4294901760, %v5232_v9  ;;  %v5241_v21 = vsel %vm5164_vm8, %v5153_v19, 0 }
 0x495   : > { %8573 = vmatprep.mubr.f32.mxu0 %v5454_v34  ;;  %8626 = vmatprep.mubr.f32.mxu1 %v11771_v30  ;;  %v5238_v34 = vsel %vm5164_vm8, %v5152_v43, 0  ;;  %v11914_v30 = vsub.f32 %v5226_v15, %v11901_v53  ;;  %v11923_v43 = vand.u32 4294901760, %v5235_v55  ;;  %v5494_v15 = vand.u32 4294901760, %v5493_v45 }
 0x496   : > { %v5503_v6 = vsub.f32 %v11857_v35, %v13175_v16  ;;  %13176 = vst [vmem:[#allocation85_spill] sm:$0xff] %v11917_v0  ;;  %8827 = vmatprep.subr.mxu1 %v11631_v56  ;;  %v11925_v14 = vand.u32 4294901760, %v5238_v34  ;;  %v13177_v44 = vand.u32 4294901760, %v11878_v20  ;;  %v5244_v23 = vsel %vm5164_vm8, %v5154_v50, 0 }
 0x497   : > { %v11935_v25 = vsub.f32 %v5232_v9, %v11921_v57  ;;  %v13178_v51 = vand.u32 4294901760, %v11889_v31  ;;  %v11941_v45 = vand.u32 4294901760, %v5241_v21  ;;  %v11950_v9 = vand.u32 4294901760, %v5244_v23 }
 0x498   : > { %8574 = vmatmul.mubr.f32.gmra.mxu0 %v5464_v62  ;;  %8627 = vmatmul.mubr.f32.gmra.mxu1 %v11773_v54  ;;  %v5513_v16 = vsub.f32 %v11878_v20, %v13177_v44  ;;  %v5155_v54 = vld [vmem:[#allocation2 + $0xd8] sm:$0xff]  ;;  %v5504_v1 = vand.u32 4294901760, %v5503_v6  ;;  %v11945_v44 = vsub.f32 %v5235_v55, %v11923_v43  ;;  %v11948_v50 = vsub.f32 %v5238_v34, %v11925_v14  ;;  %v5156_v62 = vld [vmem:[#allocation2 + $0xe0] sm:$0xff]  ;;  %v5157_v55 = vld [vmem:[#allocation2 + $0xe8] sm:$0xff] }
 0x499   : > { %8576 = vmatprep.mubr.f32.mxu0 %v5474_v60  ;;  %8629 = vmatprep.mubr.f32.mxu1 %v11813_v49  ;;  %v5523_v19 = vsub.f32 %v11889_v31, %v13178_v51  ;;  %v5247_v6 = vsel %vm5164_vm8, %v5155_v54, 0  ;;  %v13179_v60 = vand.u32 4294901760, %v11914_v30  ;;  %v13180_v49 = vand.u32 4294901760, %v11917_v0 }
 0x49a   : > { %v5514_v51 = vand.u32 4294901760, %v5513_v16  ;;  %v11962_v4 = vsub.f32 %v5241_v21, %v11941_v45  ;;  %v11964_v54 = vand.u32 4294901760, %v5247_v6  ;;  %v11971_v26 = vsub.f32 %v5244_v23, %v11950_v9 }
 0x49b   : > { %v5543_v34 = vsub.f32 %v11917_v0, %v13180_v49  ;;  %v5524_v16 = vand.u32 4294901760, %v5523_v19  ;;  %v13181_v21 = vand.u32 4294901760, %v11935_v25 }
 0x49c   : > { %8577 = vmatmul.mubr.f32.gmra.mxu0 %v5484_v52  ;;  %8630 = vmatmul.mubr.f32.gmra.mxu1 %v11815_v8  ;;  %v5533_v52 = vsub.f32 %v11914_v30, %v13179_v60  ;;  %v5159_v60 = vld [vmem:[#allocation2 + $0xf8] sm:$0xff]  ;;  %v11983_v23 = vsub.f32 %v5247_v6, %v11964_v54 }
 0x49d   : > { %8579 = vmatprep.mubr.f32.mxu0 %v5494_v15  ;;  %8632 = vmatprep.mubr.f32.mxu1 %v11834_v17  ;;  %v5250_v15 = vsel %vm5164_vm8, %v5156_v62, 0  ;;  %v5158_v17 = vld [vmem:[#allocation2 + $0xf0] sm:$0xff]  ;;  %v5553_v62 = vsub.f32 %v11935_v25, %v13181_v21  ;;  %v13183_v21 = vand.u32 4294901760, %v11948_v50  ;;  %v5259_v8 = vsel %vm5164_vm8, %v5159_v60, 0 }
 0x49e   : > { %v5534_v49 = vand.u32 4294901760, %v5533_v52  ;;  %v11977_v0 = vand.u32 4294901760, %v5250_v15  ;;  %v5256_v19 = vsel %vm5164_vm8, %v5158_v17, 0  ;;  %v13185_v60 = vand.u32 4294901760, %v11971_v26 }
 0x49f   : > { %v5554_v6 = vand.u32 4294901760, %v5553_v62  ;;  %v12010_v62 = vand.u32 4294901760, %v5259_v8 }
 0x4a0   : > { %8580 = vmatmul.mubr.f32.gmra.mxu0 %v5504_v1  ;;  %8633 = vmatmul.mubr.f32.gmra.mxu1 %v11836_v7  ;;  %v5253_v1 = vsel %vm5164_vm8, %v5157_v55, 0  ;;  %v5544_v7 = vand.u32 4294901760, %v5543_v34  ;;  %v5573_v55 = vsub.f32 %v11948_v50, %v13183_v21  ;;  %v11997_v34 = vsub.f32 %v5250_v15, %v11977_v0 }
 0x4a1   : > { %8582 = vmatprep.mubr.f32.mxu0 %v5514_v51  ;;  %8635 = vmatprep.mubr.f32.mxu1 %v11838_v5  ;;  %v13182_v51 = vand.u32 4294901760, %v11945_v44  ;;  %v11993_v5 = vand.u32 4294901760, %v5253_v1 }
 0x4a2   : > { %v5574_v15 = vand.u32 4294901760, %v5573_v55  ;;  %v12026_v55 = vsub.f32 %v5259_v8, %v12010_v62 }
 0x4a3   : > { %v5563_v52 = vsub.f32 %v11945_v44, %v13182_v51  ;;  %v13184_v51 = vand.u32 4294901760, %v11962_v4  ;;  %v12008_v17 = vsub.f32 %v5253_v1, %v11993_v5 }
 0x4a4   : > { %8583 = vmatmul.mubr.f32.gmra.mxu0 %v5524_v16  ;;  %8636 = vmatmul.mubr.f32.gmra.mxu1 %v11840_v11  ;;  %v11999_v16 = vand.u32 4294901760, %v5256_v19  ;;  %v5642_v8 = vand.u32 4294901760, %v12026_v55 }
 0x4a5   : > { %8585 = vmatprep.mubr.f32.mxu0 %v5534_v49  ;;  %8638 = vmatprep.mubr.f32.mxu1 %v11863_v18  ;;  %v5583_v11 = vsub.f32 %v11962_v4, %v13184_v51  ;;  %v5564_v21 = vand.u32 4294901760, %v5563_v52  ;;  %v12905_v49 = vand.u32 4294901760, %v11983_v23  ;;  %v5593_v18 = vsub.f32 %v11971_v26, %v13185_v60 }
 0x4a6   : > { %v12018_v51 = vsub.f32 %v5256_v19, %v11999_v16 }
 0x4a7   : > { %v5584_v1 = vand.u32 4294901760, %v5583_v11  ;;  %v5603_v52 = vsub.f32 %v11983_v23, %v12905_v49  ;;  %v5594_v60 = vand.u32 4294901760, %v5593_v18 }
 0x4a8   : > { %8586 = vmatmul.mubr.f32.gmra.mxu0 %v5544_v7  ;;  %8639 = vmatmul.mubr.f32.gmra.mxu1 %v11865_v33  ;;  %v5612_v7 = vand.u32 4294901760, %v11997_v34 }
 0x4a9   : > { %8588 = vmatprep.mubr.f32.mxu0 %v5554_v6  ;;  %8641 = vmatprep.mubr.f32.mxu1 %v11901_v53  ;;  %v12906_v6 = vand.u32 4294901760, %v12008_v17  ;;  %v5604_v11 = vand.u32 4294901760, %v5603_v52  ;;  %v5643_v52 = vsub.f32 %v12026_v55, %v5642_v8 }
 0x4aa   : > { %v5613_v19 = vsub.f32 %v11997_v34, %v5612_v7 }
 0x4ab   : > { %v5623_v49 = vsub.f32 %v12008_v17, %v12906_v6 }
 0x4ac   : > { %8589 = vmatmul.mubr.f32.gmra.mxu0 %v5564_v21  ;;  %8642 = vmatmul.mubr.f32.gmra.mxu1 %v11903_v36  ;;  %v5632_v21 = vand.u32 4294901760, %v12018_v51  ;;  %v5614_v18 = vand.u32 4294901760, %v5613_v19  ;;  %v13188_v19 = vand.u32 4294901760, %v11700_v48 }
 0x4ad   : > { %8591 = vmatprep.mubr.f32.mxu0 %v5574_v15  ;;  %8644 = vmatprep.mubr.f32.mxu1 %v11921_v57 }
 0x4ae   : > { %v5633_v15 = vsub.f32 %v12018_v51, %v5632_v21 }
 0x4b0   : > { %8592 = vmatmul.mubr.f32.gmra.mxu0 %v5584_v1  ;;  %8645 = vmatmul.mubr.f32.gmra.mxu1 %v11923_v43  ;;  %v5624_v1 = vand.u32 4294901760, %v5623_v49  ;;  %v5634_v6 = vand.u32 4294901760, %v5633_v15  ;;  %v13186_v49 = vand.u32 4294901760, %v11669_v63  ;;  %v13233_v15 = vld [vmem:[#allocation83_spill] sm:$0xff] }
 0x4b1   : > { %8594 = vmatprep.mubr.f32.mxu0 %v5594_v60  ;;  %8647 = vmatprep.mubr.f32.mxu1 %v11925_v14  ;;  %v5644_v60 = vand.u32 4294901760, %v5643_v52  ;;  %v5107_v52 = vld [vmem:[#allocation4 + $0x1] sm:$0x1] }
 0x4b4   : > { %8595 = vmatmul.mubr.f32.gmra.mxu0 %v5604_v11  ;;  %8648 = vmatmul.mubr.f32.gmra.mxu1 %v11941_v45  ;;  %v13230_v11 = vld [vmem:[#allocation80_spill] sm:$0xff] }
 0x4b5   : > { %8597 = vmatprep.mubr.f32.mxu0 %v5614_v18  ;;  %8650 = vmatprep.mubr.f32.mxu1 %v11950_v9  ;;  %v13232_v18 = vld [vmem:[#allocation82_spill] sm:$0xff] }
 0x4b8   : > { %8598 = vmatmul.mubr.f32.gmra.mxu0 %v5624_v1  ;;  %8651 = vmatmul.mubr.f32.gmra.mxu1 %v11964_v54  ;;  %v13234_v1 = vld [vmem:[#allocation84_spill] sm:$0xff] }
 0x4b9   : > { %8600 = vmatprep.mubr.f32.mxu0 %v5634_v6  ;;  %8653 = vmatprep.mubr.f32.mxu1 %v11977_v0  ;;  %v13187_v6 = vand.u32 4294901760, %v11672_v38 }
 0x4bc   : > { %8601 = vmatmul.mubr.f32.gmra.mxu0 %v5644_v60  ;;  %8654 = vmatmul.mubr.f32.gmra.mxu1 %v11993_v5  ;;  %v5108_v60 = vmul.f32 0.00390625, %v5107_v52 }
 0x4bd   : > { %8667 = vmatprep.mubr.f32.mxu0 %v11669_v63  ;;  %8656 = vmatprep.mubr.f32.mxu1 %v11999_v16  ;;  %v13190_v63 = vand.u32 4294901760, %v11735_v40 }
 0x4c0   : > { %8668 = vmatmul.mubr.f32.vlgmr.msra.gmra.mxu0 %v11672_v38  ;;  %8657 = vmatmul.mubr.f32.gmra.mxu1 %v12010_v62  ;;  %v13192_v38 = vand.u32 4294901760, %v11754_v39 }
 0x4c1   : > { %8670 = vmatprep.mubr.f32.mxu0 %v11700_v48  ;;  %8723 = vmatprep.mubr.f32.mxu1 %v13186_v49  ;;  %v13198_v48 = vand.u32 4294901760, %v11826_v10  ;;  %v5111_v49 = vld [vmem:[#allocation4 + $0x2] sm:$0x1] }
 0x4c2   : > { %8772 = vmatpush3.msra.mxu0 %v11666_v27  ;;  %v13189_v27 = vand.u32 4294901760, %v11703_v41 }
 0x4c3   : > { %8773 = vmatprep.subr.mxu0 %v11675_v24 }
 0x4c4   : > { %8671 = vmatmul.mubr.f32.gmra.mxu0 %v11703_v41  ;;  %8724 = vmatmul.mubr.f32.vlgmr.msra.gmra.mxu1 %v13187_v6  ;;  %v13200_v41 = vand.u32 4294901760, %v11848_v37  ;;  %v5112_v6 = vmul.f32 0.00390625, %v5111_v49 }
 0x4c5   : > { %8673 = vmatprep.mubr.f32.mxu0 %v11735_v40  ;;  %8828 = vmatpush3.msra.mxu1 %v11631_v56  ;;  %v13191_v56 = vand.u32 4294901760, %v11738_v59  ;;  %v13201_v40 = vand.u32 4294901760, %v11851_v61 }
 0x4c6   : > { %8726 = vmatprep.mubr.f32.mxu1 %v13188_v19  ;;  %8774 = vmatpush3.msra.mxu0 %v11675_v24  ;;  %v13194_v24 = vand.u32 4294901760, %v11760_v22  ;;  %v5113_v19 = vmul.f32 %v5108_v60, %v5108_v60 }
 0x4c7   : > { %8829 = vmatprep.subr.mxu1 %v11633_v47  ;;  %8775 = vmatprep.subr.mxu0 %v11680_v32 }
 0x4c8   : > { %8674 = vmatmul.mubr.f32.gmra.mxu0 %v11738_v59  ;;  %8727 = vmatmul.mubr.f32.gmra.mxu1 %v13189_v27  ;;  %v13202_v59 = vand.u32 4294901760, %v11854_v3  ;;  %v5114_v27 = vsub.f32 %v5112_v6, %v5113_v19 }
 0x4c9   : > { %8676 = vmatprep.mubr.f32.mxu0 %v11754_v39  ;;  %8729 = vmatprep.mubr.f32.mxu1 %v13190_v63  ;;  %v13203_v39 = vand.u32 4294901760, %v11857_v35 }
 0x4ca   : > { %8830 = vmatpush3.msra.mxu1 %v11633_v47  ;;  %8776 = vmatpush3.msra.mxu0 %v11680_v32  ;;  %v13193_v47 = vand.u32 4294901760, %v11757_v29  ;;  %v13196_v32 = vand.u32 4294901760, %v11784_v58  ;;  %v5115_v63 = vmax.f32 %v5114_v27, 0.0 }
 0x4cb   : > { %8831 = vmatprep.subr.mxu1 %v11635_v2  ;;  %8777 = vmatprep.subr.mxu0 %v11687_v46 }
 0x4cc   : > { %8677 = vmatmul.mubr.f32.gmra.mxu0 %v11757_v29  ;;  %8730 = vmatmul.mubr.f32.gmra.mxu1 %v13191_v56  ;;  %v13204_v29 = vand.u32 4294901760, %v11878_v20  ;;  %v5117_v56 = vadd.f32 1e-05, %v5115_v63 }
 0x4cd   : > { %8679 = vmatprep.mubr.f32.mxu0 %v11760_v22  ;;  %8732 = vmatprep.mubr.f32.mxu1 %v13192_v38  ;;  %v13205_v22 = vld [vmem:[#allocation85_spill] sm:$0xff] }
 0x4ce   : > { %8832 = vmatpush3.msra.mxu1 %v11635_v2  ;;  %8778 = vmatpush3.msra.mxu0 %v11687_v46  ;;  %v13195_v2 = vand.u32 4294901760, %v11763_v13  ;;  %v13197_v46 = vand.u32 4294901760, %v11787_v42  ;;  %8975 = vrsqrt.f32 %v5117_v56 }
 0x4cf   : > { %8833 = vmatprep.subr.mxu1 %v11640_v12 }
 0x4d0   : > { %8680 = vmatmul.mubr.f32.gmra.mxu0 %v11763_v13  ;;  %8733 = vmatmul.mubr.f32.gmra.mxu1 %v13193_v47  ;;  %v13206_v13 = vand.u32 4294901760, %v11889_v31 }
 0x4d1   : > { %8682 = vmatprep.mubr.f32.mxu0 %v11784_v58  ;;  %8735 = vmatprep.mubr.f32.mxu1 %v13194_v24  ;;  %v13210_v58 = vand.u32 4294901760, %v11945_v44 }
 0x4d2   : > { %8834 = vmatpush3.msra.mxu1 %v11640_v12  ;;  %v13199_v12 = vand.u32 4294901760, %v11829_v28 }
 0x4d4   : > { %8683 = vmatmul.mubr.f32.gmra.mxu0 %v11787_v42  ;;  %8736 = vmatmul.mubr.f32.gmra.mxu1 %v13195_v2  ;;  %v13212_v42 = vand.u32 4294901760, %v11962_v4 }
 0x4d5   : > { %8685 = vmatprep.mubr.f32.mxu0 %v11826_v10  ;;  %8738 = vmatprep.mubr.f32.mxu1 %v13196_v32  ;;  %v13209_v10 = vand.u32 4294901760, %v11935_v25 }
 0x4d8   : > { %8686 = vmatmul.mubr.f32.gmra.mxu0 %v11829_v28  ;;  %8739 = vmatmul.mubr.f32.gmra.mxu1 %v13197_v46  ;;  %v13216_v28 = vld [vmem:[#allocation66_spill] sm:$0xff] }
 0x4d9   : > { %8688 = vmatprep.mubr.f32.mxu0 %v11848_v37  ;;  %8741 = vmatprep.mubr.f32.mxu1 %v13198_v48  ;;  %v13214_v37 = vand.u32 4294901760, %v11983_v23 }
 0x4dc   : > { %8689 = vmatmul.mubr.f32.gmra.mxu0 %v11851_v61  ;;  %8742 = vmatmul.mubr.f32.gmra.mxu1 %v13199_v12  ;;  %v13208_v61 = vand.u32 4294901760, %v13205_v22 }
 0x4dd   : > { %8691 = vmatprep.mubr.f32.mxu0 %v11854_v3  ;;  %8744 = vmatprep.mubr.f32.mxu1 %v13200_v41  ;;  %v13207_v3 = vand.u32 4294901760, %v11914_v30 }
 0x4e0   : > { %8692 = vmatmul.mubr.f32.gmra.mxu0 %v11857_v35  ;;  %8745 = vmatmul.mubr.f32.gmra.mxu1 %v13201_v40  ;;  %v13218_v35 = vld [vmem:[#allocation68_spill] sm:$0xff] }
 0x4e1   : > { %8694 = vmatprep.mubr.f32.mxu0 %v11878_v20  ;;  %8747 = vmatprep.mubr.f32.mxu1 %v13202_v59  ;;  %v13219_v20 = vld [vmem:[#allocation69_spill] sm:$0xff] }
 0x4e4   : > { %8695 = vmatmul.mubr.f32.gmra.mxu0 %v11889_v31  ;;  %8748 = vmatmul.mubr.f32.gmra.mxu1 %v13203_v39  ;;  %v13220_v31 = vld [vmem:[#allocation70_spill] sm:$0xff] }
 0x4e5   : > { %8697 = vmatprep.mubr.f32.mxu0 %v11914_v30  ;;  %8750 = vmatprep.mubr.f32.mxu1 %v13204_v29  ;;  %v13211_v30 = vand.u32 4294901760, %v11948_v50 }
 0x4e8   : > { %8698 = vmatmul.mubr.f32.gmra.mxu0 %v13205_v22  ;;  %8751 = vmatmul.mubr.f32.gmra.mxu1 %v13206_v13 }
 0x4e9   : > { %8700 = vmatprep.mubr.f32.mxu0 %v11935_v25  ;;  %8753 = vmatprep.mubr.f32.mxu1 %v13207_v3  ;;  %v13213_v25 = vand.u32 4294901760, %v11971_v26 }
 0x4ec   : > { %8701 = vmatmul.mubr.f32.gmra.mxu0 %v11945_v44  ;;  %8754 = vmatmul.mubr.f32.gmra.mxu1 %v13208_v61  ;;  %v13221_v44 = vld [vmem:[#allocation71_spill] sm:$0xff] }
 0x4ed   : > { %8703 = vmatprep.mubr.f32.mxu0 %v11948_v50  ;;  %8756 = vmatprep.mubr.f32.mxu1 %v13209_v10  ;;  %v13222_v50 = vld [vmem:[#allocation72_spill] sm:$0xff] }
 0x4f0   : > { %8704 = vmatmul.mubr.f32.gmra.mxu0 %v11962_v4  ;;  %8757 = vmatmul.mubr.f32.gmra.mxu1 %v13210_v58  ;;  %v13215_v4 = vand.u32 4294901760, %v12008_v17 }
 0x4f1   : > { %8706 = vmatprep.mubr.f32.mxu0 %v11971_v26  ;;  %8759 = vmatprep.mubr.f32.mxu1 %v13211_v30  ;;  %v13217_v26 = vld [vmem:[#allocation67_spill] sm:$0xff] }
 0x4f4   : > { %8707 = vmatmul.mubr.f32.gmra.mxu0 %v11983_v23  ;;  %8760 = vmatmul.mubr.f32.gmra.mxu1 %v13212_v42  ;;  %v13223_v23 = vld [vmem:[#allocation73_spill] sm:$0xff] }
 0x4f5   : > { %8709 = vmatprep.mubr.f32.mxu0 %v11997_v34  ;;  %8762 = vmatprep.mubr.f32.mxu1 %v13213_v25  ;;  %v13225_v34 = vld [vmem:[#allocation75_spill] sm:$0xff] }
 0x4f8   : > { %8710 = vmatmul.mubr.f32.gmra.mxu0 %v12008_v17  ;;  %8763 = vmatmul.mubr.f32.gmra.mxu1 %v13214_v37  ;;  %v13224_v17 = vld [vmem:[#allocation74_spill] sm:$0xff] }
 0x4f9   : > { %8712 = vmatprep.mubr.f32.mxu0 %v12018_v51  ;;  %8765 = vmatprep.mubr.f32.mxu1 %v5612_v7  ;;  %v13226_v7 = vld [vmem:[#allocation76_spill] sm:$0xff]  ;;  %v13227_v51 = vld [vmem:[#allocation77_spill] sm:$0xff] }
 0x4fc   : > { %8713 = vmatmul.mubr.f32.gmra.mxu0 %v12026_v55  ;;  %8766 = vmatmul.mubr.f32.gmra.mxu1 %v13215_v4  ;;  %v13228_v55 = vld [vmem:[#allocation78_spill] sm:$0xff] }
 0x4fd   : > { %8779 = vmatprep.mubr.f32.mxu0 %v13216_v28  ;;  %8768 = vmatprep.mubr.f32.mxu1 %v5632_v21  ;;  %v13229_v21 = vld [vmem:[#allocation79_spill] sm:$0xff] }
 0x500   : > { %8780 = vmatmul.mubr.f32.vlgmr.msra.gmra.mxu0 %v13217_v26  ;;  %8769 = vmatmul.mubr.f32.gmra.mxu1 %v5642_v8  ;;  %v13231_v8 = vld [vmem:[#allocation81_spill] sm:$0xff] }
 0x501   : > { %8782 = vmatprep.mubr.f32.mxu0 %v13218_v35  ;;  %8835 = vmatprep.mubr.f32.mxu1 %v13216_v28 }
 0x504   : > { %8783 = vmatmul.mubr.f32.gmra.mxu0 %v13219_v20  ;;  %8836 = vmatmul.mubr.f32.vlgmr.msra.gmra.mxu1 %v13217_v26 }
 0x505   : > { %8785 = vmatprep.mubr.f32.mxu0 %v13220_v31  ;;  %8838 = vmatprep.mubr.f32.mxu1 %v13218_v35 }
 0x508   : > { %8786 = vmatmul.mubr.f32.gmra.mxu0 %v13221_v44  ;;  %8839 = vmatmul.mubr.f32.gmra.mxu1 %v13219_v20 }
 0x509   : > { %8788 = vmatprep.mubr.f32.mxu0 %v13222_v50  ;;  %8841 = vmatprep.mubr.f32.mxu1 %v13220_v31 }
 0x50c   : > { %8789 = vmatmul.mubr.f32.gmra.mxu0 %v13223_v23  ;;  %8842 = vmatmul.mubr.f32.gmra.mxu1 %v13221_v44 }
 0x50d   : > { %8791 = vmatprep.mubr.f32.mxu0 %v13224_v17  ;;  %8844 = vmatprep.mubr.f32.mxu1 %v13222_v50 }
 0x510   : > { %8792 = vmatmul.mubr.f32.gmra.mxu0 %v13225_v34  ;;  %8845 = vmatmul.mubr.f32.gmra.mxu1 %v13223_v23 }
 0x511   : > { %8794 = vmatprep.mubr.f32.mxu0 %v13226_v7  ;;  %8847 = vmatprep.mubr.f32.mxu1 %v13224_v17 }
 0x514   : > { %8795 = vmatmul.mubr.f32.gmra.mxu0 %v13227_v51  ;;  %8848 = vmatmul.mubr.f32.gmra.mxu1 %v13225_v34 }
 0x515   : > { %8797 = vmatprep.mubr.f32.mxu0 %v13228_v55  ;;  %8850 = vmatprep.mubr.f32.mxu1 %v13226_v7 }
 0x518   : > { %8798 = vmatmul.mubr.f32.gmra.mxu0 %v13229_v21  ;;  %8851 = vmatmul.mubr.f32.gmra.mxu1 %v13227_v51 }
 0x519   : > { %8800 = vmatprep.mubr.f32.mxu0 %v13230_v11  ;;  %8853 = vmatprep.mubr.f32.mxu1 %v13228_v55 }
 0x51c   : > { %8801 = vmatmul.mubr.f32.gmra.mxu0 %v13231_v8  ;;  %8854 = vmatmul.mubr.f32.gmra.mxu1 %v13229_v21 }
 0x51d   : > { %8803 = vmatprep.mubr.f32.mxu0 %v13232_v18  ;;  %8856 = vmatprep.mubr.f32.mxu1 %v13230_v11 }
 0x520   : > { %8804 = vmatmul.mubr.f32.gmra.mxu0 %v13233_v15  ;;  %8857 = vmatmul.mubr.f32.gmra.mxu1 %v13231_v8 }
 0x521   : > { %8806 = vmatprep.mubr.f32.mxu0 %v13234_v1  ;;  %8859 = vmatprep.mubr.f32.mxu1 %v13232_v18 }
 0x524   : > { %8807 = vmatmul.mubr.f32.gmra.mxu0 %v11865_v33  ;;  %8860 = vmatmul.mubr.f32.gmra.mxu1 %v13233_v15 }
 0x525   : > { %8809 = vmatprep.mubr.f32.mxu0 %v11901_v53  ;;  %8862 = vmatprep.mubr.f32.mxu1 %v13234_v1 }
 0x528   : > { %8810 = vmatmul.mubr.f32.gmra.mxu0 %v11903_v36  ;;  %8863 = vmatmul.mubr.f32.gmra.mxu1 %v11865_v33  ;;  %v5109_v33 = vld [vmem:[#allocation4] sm:$0x1] }
 0x529   : > { %8812 = vmatprep.mubr.f32.mxu0 %v11921_v57  ;;  %8865 = vmatprep.mubr.f32.mxu1 %v11901_v53  ;;  %v5116_v53 = vld [vmem:[%s12730_s5] sm:$0x1] }
 0x52c   : > { %8813 = vmatmul.mubr.f32.gmra.mxu0 %v11923_v43  ;;  %8866 = vmatmul.mubr.f32.gmra.mxu1 %v11903_v36  ;;  %v8976_v36 = vpop.eup %8975 }
 0x52d   : > { %8815 = vmatprep.mubr.f32.mxu0 %v11925_v14  ;;  %8868 = vmatprep.mubr.f32.mxu1 %v11921_v57  ;;  %v5110_v57 = vadd.f32 %v5109_v33, %v5108_v60 }
 0x530   : > { %8816 = vmatmul.mubr.f32.gmra.mxu0 %v11941_v45  ;;  %8869 = vmatmul.mubr.f32.gmra.mxu1 %v11923_v43  ;;  %v5119_v43 = vmul.f32 %v8976_v36, %v5116_v53 }
 0x531   : > { %8818 = vmatprep.mubr.f32.mxu0 %v11950_v9  ;;  %8871 = vmatprep.mubr.f32.mxu1 %v11925_v14 }
 0x532   : > { %5121 = vst.msk [vmem:[#allocation6] sm:$0x1] %vm5120_vm9, %v5119_v43 }
 0x534   : > { %8819 = vmatmul.mubr.f32.gmra.mxu0 %v11964_v54  ;;  %8872 = vmatmul.mubr.f32.gmra.mxu1 %v11941_v45  ;;  %v5123_v45 = vmul.f32 %v5119_v43, %v5110_v57 }
 0x535   : > { %8821 = vmatprep.mubr.f32.mxu0 %v11977_v0  ;;  %8874 = vmatprep.mubr.f32.mxu1 %v11950_v9 }
 0x538   : > { %8822 = vmatmul.mubr.f32.gmra.mxu0 %v11993_v5  ;;  %8875 = vmatmul.mubr.f32.gmra.mxu1 %v11964_v54 }
 0x539   : > { %8824 = vmatprep.mubr.f32.mxu0 %v11999_v16  ;;  %8877 = vmatprep.mubr.f32.mxu1 %v11977_v0  ;;  %v5122_v0 = vld [vmem:[%s12731_s6] sm:$0x1] }
 0x53c   : > { %8825 = vmatmul.mubr.f32.gmra.mxu0 %v12010_v62  ;;  %8878 = vmatmul.mubr.f32.gmra.mxu1 %v11993_v5  ;;  %v5124_v5 = vsub.f32 %v5122_v0, %v5123_v45 }
 0x53d   : > { %8880 = vmatprep.mubr.f32.mxu1 %v11999_v16 }
 0x53e   : > { %5125 = vst.msk [vmem:[#allocation6 + $0x1] sm:$0x1] %vm5120_vm9, %v5124_v5 }
 0x53f   : > { %v8557_v14 = vpop.f32.mrf.mxu0 }
 0x540   : > { %8881 = vmatmul.mubr.f32.gmra.mxu1 %v12010_v62 }
 0x541   : > { %v5336_v9 = vpop.f32.mrf.mxu0 }
 0x543   : > { %v8560_v54 = vpop.f32.mrf.mxu0 }
 0x544   : > { %v8613_v38 = vpop.f32.mrf.mxu1 }
 0x545   : > { %v5356_v47 = vpop.f32.mrf.mxu0  ;;  %v12232_v24 = vadd.f32 %v8613_v38, %v8557_v14 }
 0x546   : > { %v5737_v16 = vpop.f32.mrf.mxu1 }
 0x547   : > { %v12234_v2 = vadd.f32 %v5737_v16, %v5336_v9  ;;  %v8563_v32 = vpop.f32.mrf.mxu0 }
 0x548   : > { %v8616_v46 = vpop.f32.mrf.mxu1 }
 0x549   : > { %v12236_v62 = vadd.f32 %v8616_v46, %v8560_v54  ;;  %v5376_v48 = vpop.f32.mrf.mxu0 }
 0x54a   : > { %v5749_v12 = vpop.f32.mrf.mxu1 }
 0x54b   : > { %v12238_v41 = vadd.f32 %v5749_v12, %v5356_v47  ;;  %v8566_v40 = vpop.f32.mrf.mxu0 }
 0x54c   : > { %v8619_v59 = vpop.f32.mrf.mxu1 }
 0x54d   : > { %v12240_v39 = vadd.f32 %v8619_v59, %v8563_v32  ;;  %v5396_v29 = vpop.f32.mrf.mxu0 }
 0x54e   : > { %v5761_v22 = vpop.f32.mrf.mxu1 }
 0x54f   : > { %v12242_v13 = vadd.f32 %v5761_v22, %v5376_v48 }
 0x550   : > { %v8569_v3 = vpop.f32.mrf.mxu0  ;;  %v8622_v61 = vpop.f32.mrf.mxu1 }
 0x551   : > { %v12244_v10 = vadd.f32 %v8622_v61, %v8566_v40 }
 0x552   : > { %v5416_v58 = vpop.f32.mrf.mxu0  ;;  %v5773_v30 = vpop.f32.mrf.mxu1 }
 0x553   : > { %v12246_v42 = vadd.f32 %v5773_v30, %v5396_v29 }
 0x554   : > { %v8572_v25 = vpop.f32.mrf.mxu0  ;;  %v8625_v37 = vpop.f32.mrf.mxu1 }
 0x555   : > { %v12248_v4 = vadd.f32 %v8625_v37, %v8569_v3 }
 0x556   : > { %v5436_v28 = vpop.f32.mrf.mxu0  ;;  %v5785_v26 = vpop.f32.mrf.mxu1 }
 0x557   : > { %v12250_v35 = vadd.f32 %v5785_v26, %v5416_v58 }
 0x558   : > { %v8575_v20 = vpop.f32.mrf.mxu0  ;;  %v8628_v31 = vpop.f32.mrf.mxu1 }
 0x559   : > { %v12252_v44 = vadd.f32 %v8628_v31, %v8572_v25 }
 0x55a   : > { %v5456_v50 = vpop.f32.mrf.mxu0  ;;  %v5797_v23 = vpop.f32.mrf.mxu1 }
 0x55b   : > { %v12254_v17 = vadd.f32 %v5797_v23, %v5436_v28 }
 0x55c   : > { %v8578_v34 = vpop.f32.mrf.mxu0  ;;  %v8631_v7 = vpop.f32.mrf.mxu1 }
 0x55d   : > { %v12256_v51 = vadd.f32 %v8631_v7, %v8575_v20 }
 0x55e   : > { %v5476_v55 = vpop.f32.mrf.mxu0  ;;  %v5809_v21 = vpop.f32.mrf.mxu1 }
 0x55f   : > { %v12258_v11 = vadd.f32 %v5809_v21, %v5456_v50 }
 0x560   : > { %v8581_v8 = vpop.f32.mrf.mxu0  ;;  %v8634_v18 = vpop.f32.mrf.mxu1 }
 0x561   : > { %v12260_v15 = vadd.f32 %v8634_v18, %v8578_v34 }
 0x562   : > { %v5496_v1 = vpop.f32.mrf.mxu0  ;;  %v5821_v52 = vpop.f32.mrf.mxu1 }
 0x563   : > { %v12262_v60 = vadd.f32 %v5821_v52, %v5476_v55 }
 0x564   : > { %v8584_v49 = vpop.f32.mrf.mxu0  ;;  %v8637_v6 = vpop.f32.mrf.mxu1 }
 0x565   : > { %v12264_v19 = vadd.f32 %v8637_v6, %v8581_v8 }
 0x566   : > { %v5516_v27 = vpop.f32.mrf.mxu0  ;;  %v5833_v63 = vpop.f32.mrf.mxu1 }
 0x567   : > { %v12266_v56 = vadd.f32 %v5833_v63, %v5496_v1 }
 0x568   : > { %v8587_v36 = vpop.f32.mrf.mxu0  ;;  %v8640_v33 = vpop.f32.mrf.mxu1 }
 0x569   : > { %v12268_v53 = vadd.f32 %v8640_v33, %v8584_v49 }
 0x56a   : > { %v5536_v57 = vpop.f32.mrf.mxu0  ;;  %v5845_v43 = vpop.f32.mrf.mxu1 }
 0x56b   : > { %13235 = vst [vmem:[#allocation85_spill] sm:$0xff] %v12268_v53  ;;  %v12270_v14 = vadd.f32 %v5845_v43, %v5516_v27 }
 0x56c   : > { %v8590_v45 = vpop.f32.mrf.mxu0  ;;  %v8643_v0 = vpop.f32.mrf.mxu1 }
 0x56d   : > { %13236 = vst [vmem:[#allocation66_spill] sm:$0xff] %v12270_v14  ;;  %v12272_v9 = vadd.f32 %v8643_v0, %v8587_v36 }
 0x56e   : > { %v5556_v5 = vpop.f32.mrf.mxu0  ;;  %v5857_v54 = vpop.f32.mrf.mxu1 }
 0x56f   : > { %13237 = vst [vmem:[#allocation67_spill] sm:$0xff] %v12272_v9  ;;  %v12274_v38 = vadd.f32 %v5857_v54, %v5536_v57 }
 0x570   : > { %v8593_v47 = vpop.f32.mrf.mxu0  ;;  %v8646_v16 = vpop.f32.mrf.mxu1 }
 0x571   : > { %13238 = vst [vmem:[#allocation68_spill] sm:$0xff] %v12274_v38  ;;  %v12276_v32 = vadd.f32 %v8646_v16, %v8590_v45 }
 0x572   : > { %v5576_v46 = vpop.f32.mrf.mxu0  ;;  %v5869_v48 = vpop.f32.mrf.mxu1 }
 0x573   : > { %13239 = vst [vmem:[#allocation69_spill] sm:$0xff] %v12276_v32  ;;  %v12278_v12 = vadd.f32 %v5869_v48, %v5556_v5 }
 0x574   : > { %v8596_v40 = vpop.f32.mrf.mxu0  ;;  %v8649_v59 = vpop.f32.mrf.mxu1 }
 0x575   : > { %13240 = vst [vmem:[#allocation70_spill] sm:$0xff] %v12278_v12  ;;  %v12280_v29 = vadd.f32 %v8649_v59, %v8593_v47 }
 0x576   : > { %v5596_v22 = vpop.f32.mrf.mxu0  ;;  %v5881_v3 = vpop.f32.mrf.mxu1 }
 0x577   : > { %13241 = vst [vmem:[#allocation71_spill] sm:$0xff] %v12280_v29  ;;  %v12282_v61 = vadd.f32 %v5881_v3, %v5576_v46 }
 0x578   : > { %v8599_v58 = vpop.f32.mrf.mxu0  ;;  %v8652_v30 = vpop.f32.mrf.mxu1 }
 0x579   : > { %13242 = vst [vmem:[#allocation72_spill] sm:$0xff] %v12282_v61  ;;  %v12284_v25 = vadd.f32 %v8652_v30, %v8596_v40 }
 0x57a   : > { %v5616_v37 = vpop.f32.mrf.mxu0  ;;  %v5893_v28 = vpop.f32.mrf.mxu1 }
 0x57b   : > { %13243 = vst [vmem:[#allocation73_spill] sm:$0xff] %v12284_v25  ;;  %v12286_v26 = vadd.f32 %v5893_v28, %v5596_v22 }
 0x57c   : > { %v8602_v20 = vpop.f32.mrf.mxu0  ;;  %v8655_v31 = vpop.f32.mrf.mxu1 }
 0x57d   : > { %13244 = vst [vmem:[#allocation74_spill] sm:$0xff] %v12286_v26  ;;  %v12288_v50 = vadd.f32 %v8655_v31, %v8599_v58 }
 0x57e   : > { %v5636_v23 = vpop.f32.mrf.mxu0  ;;  %v5905_v34 = vpop.f32.mrf.mxu1 }
 0x57f   : > { %13245 = vst [vmem:[#allocation75_spill] sm:$0xff] %v12288_v50  ;;  %v12290_v7 = vadd.f32 %v5905_v34, %v5616_v37 }
 0x580   : > { %v12292_v55 = vpop.f32.mrf.mxu0  ;;  %v8658_v21 = vpop.f32.mrf.mxu1 }
 0x581   : > { %13246 = vst [vmem:[#allocation76_spill] sm:$0xff] %v12290_v7  ;;  %v12294_v8 = vadd.f32 %v8658_v21, %v8602_v20 }
 0x582   : > { %v12296_v18 = vpop.f32.mrf.mxu0  ;;  %v5917_v1 = vpop.f32.mrf.mxu1 }
 0x583   : > { %13247 = vst [vmem:[#allocation77_spill] sm:$0xff] %v12294_v8  ;;  %v12298_v52 = vadd.f32 %v5917_v1, %v5636_v23 }
 0x584   : > { %v12300_v49 = vpop.f32.mrf.mxu0  ;;  %v12302_v6 = vpop.f32.mrf.mxu1 }
 0x585   : > { %13248 = vst [vmem:[#allocation78_spill] sm:$0xff] %v12298_v52 }
 0x586   : > { %v12304_v27 = vpop.f32.mrf.mxu0  ;;  %v12306_v63 = vpop.f32.mrf.mxu1 }
 0x588   : > { %v12308_v36 = vpop.f32.mrf.mxu0  ;;  %v12310_v33 = vpop.f32.mrf.mxu1 }
 0x58a   : > { %v12312_v57 = vpop.f32.mrf.mxu0  ;;  %v12314_v43 = vpop.f32.mrf.mxu1 }
 0x58c   : > { %v12316_v45 = vpop.f32.mrf.mxu0  ;;  %v12318_v0 = vpop.f32.mrf.mxu1 }
 0x58e   : > { %v12320_v5 = vpop.f32.mrf.mxu0  ;;  %v12322_v54 = vpop.f32.mrf.mxu1 }
 0x590   : > { %v12324_v47 = vpop.f32.mrf.mxu0  ;;  %v12326_v16 = vpop.f32.mrf.mxu1 }
 0x592   : > { %v12328_v46 = vpop.f32.mrf.mxu0  ;;  %v12330_v48 = vpop.f32.mrf.mxu1 }
 0x594   : > { %v12332_v40 = vpop.f32.mrf.mxu0  ;;  %v12334_v59 = vpop.f32.mrf.mxu1 }
 0x596   : > { %v12336_v22 = vpop.f32.mrf.mxu0  ;;  %v12338_v3 = vpop.f32.mrf.mxu1 }
 0x598   : > { %v12340_v58 = vpop.f32.mrf.mxu0  ;;  %v12342_v30 = vpop.f32.mrf.mxu1 }
 0x59a   : > { %v12344_v37 = vpop.f32.mrf.mxu0  ;;  %v12346_v28 = vpop.f32.mrf.mxu1 }
 0x59c   : > { %v12348_v20 = vpop.f32.mrf.mxu0  ;;  %v12350_v31 = vpop.f32.mrf.mxu1 }
 0x59e   : > { %v12352_v23 = vpop.f32.mrf.mxu0  ;;  %v12354_v34 = vpop.f32.mrf.mxu1 }
 0x5a0   : > { %v12356_v21 = vpop.f32.mrf.mxu0  ;;  %v12358_v1 = vpop.f32.mrf.mxu1 }
 0x5a2   : > { %v12360_v52 = vpop.f32.mrf.mxu0  ;;  %v12362_v8 = vpop.f32.mrf.mxu1 }
 0x5a4   : > { %v12364_v7 = vpop.f32.mrf.mxu0  ;;  %v12366_v50 = vpop.f32.mrf.mxu1 }
 0x5a5   : > { %13249 = vst [vmem:[#allocation79_spill] sm:$0xff] %v12364_v7  ;;  %13250 = vst [vmem:[#allocation80_spill] sm:$0xff] %v12366_v50 }
 0x5a6   : > { %v12368_v26 = vpop.f32.mrf.mxu0  ;;  %v12370_v25 = vpop.f32.mrf.mxu1 }
 0x5a7   : > { %13251 = vst [vmem:[#allocation81_spill] sm:$0xff] %v12368_v26  ;;  %13252 = vst [vmem:[#allocation82_spill] sm:$0xff] %v12370_v25 }
 0x5a8   : > { %v12372_v61 = vpop.f32.mrf.mxu0  ;;  %v12374_v29 = vpop.f32.mrf.mxu1 }
 0x5a9   : > { %13253 = vst [vmem:[#allocation83_spill] sm:$0xff] %v12372_v61  ;;  %13254 = vst [vmem:[#allocation84_spill] sm:$0xff] %v12374_v29 }
 0x5aa   : > { %v12376_v12 = vpop.f32.mrf.mxu0  ;;  %v12378_v32 = vpop.f32.mrf.mxu1 }
 0x5ab   : > { %13255 = vst [vmem:[#allocation86_spill] sm:$0xff] %v12376_v12  ;;  %13256 = vst [vmem:[#allocation87_spill] sm:$0xff] %v12378_v32 }
 0x5ac   : > { %v12380_v38 = vpop.f32.mrf.mxu0  ;;  %v12382_v9 = vpop.f32.mrf.mxu1 }
 0x5ad   : > { %13257 = vst [vmem:[#allocation88_spill] sm:$0xff] %v12380_v38  ;;  %13258 = vst [vmem:[#allocation89_spill] sm:$0xff] %v12382_v9 }
 0x5ae   : > { %v12384_v14 = vpop.f32.mrf.mxu0  ;;  %v12386_v7 = vpop.f32.mrf.mxu1 }
 0x5af   : > { %13259 = vst [vmem:[#allocation90_spill] sm:$0xff] %v12384_v14  ;;  %13260 = vst [vmem:[#allocation91_spill] sm:$0xff] %v12386_v7 }
 0x5b0   : > { %v12388_v53 = vpop.f32.mrf.mxu0  ;;  %v12390_v26 = vpop.f32.mrf.mxu1 }
 0x5b1   : > { %13261 = vst [vmem:[#allocation92_spill] sm:$0xff] %v12388_v53  ;;  %13262 = vst [vmem:[#allocation93_spill] sm:$0xff] %v12390_v26 }
 0x5b2   : > { %v12392_v25 = vpop.f32.mrf.mxu0  ;;  %v12394_v61 = vpop.f32.mrf.mxu1 }
 0x5b3   : > { %13263 = vst [vmem:[#allocation94_spill] sm:$0xff] %v12392_v25  ;;  %13264 = vst [vmem:[#allocation95_spill] sm:$0xff] %v12394_v61 }
 0x5b4   : > { %v12396_v29 = vpop.f32.mrf.mxu0  ;;  %v12398_v12 = vpop.f32.mrf.mxu1 }
 0x5b5   : > { %13265 = vst [vmem:[#allocation96_spill] sm:$0xff] %v12396_v29  ;;  %13266 = vst [vmem:[#allocation97_spill] sm:$0xff] %v12398_v12 }
 0x5b6   : > { %v12400_v32 = vpop.f32.mrf.mxu0  ;;  %v12402_v38 = vpop.f32.mrf.mxu1 }
 0x5b7   : > { %13267 = vst [vmem:[#allocation98_spill] sm:$0xff] %v12400_v32  ;;  %13268 = vst [vmem:[#allocation99_spill] sm:$0xff] %v12402_v38  ;;  %v6011_v32 = vadd.f32 %v12292_v55, %v12232_v24  ;;  %v12432_v24 = vld [vmem:[#allocation6] ss:$0 sm:$0xff]  ;;  %v6018_v55 = vadd.f32 %v12304_v27, %v12238_v41  ;;  %v6032_v41 = vadd.f32 %v12312_v57, %v12242_v13 }
 0x5b8   : > { %v12404_v9 = vpop.f32.mrf.mxu0  ;;  %v12406_v14 = vpop.f32.mrf.mxu1 }
 0x5b9   : > { %13269 = vst [vmem:[#allocation100_spill] sm:$0xff] %v12404_v9  ;;  %13270 = vst [vmem:[#allocation101_spill] sm:$0xff] %v12406_v14  ;;  %v6004_v9 = vadd.f32 %v12296_v18, %v12234_v2 }
 0x5ba   : > { %v12408_v7 = vpop.f32.mrf.mxu0  ;;  %v12410_v53 = vpop.f32.mrf.mxu1 }
 0x5bb   : > { %13271 = vst [vmem:[#allocation102_spill] sm:$0xff] %v12408_v7  ;;  %13272 = vst [vmem:[#allocation103_spill] sm:$0xff] %v12410_v53  ;;  %v6306_v7 = vadd.f32 %v12302_v6, %v6011_v32  ;;  %v6039_v6 = vadd.f32 %v12308_v36, %v12240_v39 }
 0x5bc   : > { %v12412_v26 = vpop.f32.mrf.mxu0  ;;  %v12414_v25 = vpop.f32.mrf.mxu1 }
 0x5bd   : > { %13273 = vst [vmem:[#allocation104_spill] sm:$0xff] %v12412_v26  ;;  %13274 = vst [vmem:[#allocation105_spill] sm:$0xff] %v12414_v25  ;;  %v6025_v26 = vadd.f32 %v12300_v49, %v12236_v62 }
 0x5be   : > { %v12416_v61 = vpop.f32.mrf.mxu0  ;;  %v12418_v29 = vpop.f32.mrf.mxu1 }
 0x5bf   : > { %13275 = vst [vmem:[#allocation106_spill] sm:$0xff] %v12416_v61  ;;  %13276 = vst [vmem:[#allocation107_spill] sm:$0xff] %v12418_v29  ;;  %v6298_v61 = vadd.f32 %v12306_v63, %v6004_v9  ;;  %v6322_v2 = vadd.f32 %v12310_v33, %v6025_v26  ;;  %v6314_v9 = vadd.f32 %v12314_v43, %v6018_v55 }
 0x5c0   : > { %v8781_v38 = vpop.f32.mrf.mxu0  ;;  %v12422_v12 = vpop.f32.mrf.mxu1  ;;  %v6338_v26 = vadd.f32 %v12318_v0, %v6039_v6  ;;  %v6053_v63 = vadd.f32 %v12316_v45, %v12244_v10  ;;  %v6046_v0 = vadd.f32 %v12320_v5, %v12246_v42  ;;  %v6067_v6 = vadd.f32 %v12324_v47, %v12248_v4 }
 0x5c1   : > { %13277 = vst [vmem:[#allocation108_spill] sm:$0xff] %v12422_v12  ;;  %v6635_v29 = vadd.f32 %v8781_v38, %v6306_v7  ;;  %v12439_v12 = vld [vmem:[#allocation6 + $0x1] ss:$0 sm:$0xff] }
 0x5c2   : > { %v6628_v53 = vpop.f32.mrf.mxu0  ;;  %v12427_v14 = vpop.f32.mrf.mxu1  ;;  %v6354_v10 = vadd.f32 %v12326_v16, %v6053_v63  ;;  %v6346_v42 = vadd.f32 %v12330_v48, %v6046_v0  ;;  %v6370_v4 = vadd.f32 %v12334_v59, %v6067_v6  ;;  %v6109_v6 = vadd.f32 %v12348_v20, %v12260_v15 }
 0x5c3   : > { %13278 = vst [vmem:[#allocation109_spill] sm:$0xff] %v12427_v14  ;;  %v6629_v18 = vadd.f32 %v6628_v53, %v6298_v61 }
 0x5c4   : > { %v8784_v25 = vpop.f32.mrf.mxu0  ;;  %v8837_v50 = vpop.f32.mrf.mxu1  ;;  %v6418_v15 = vadd.f32 %v12358_v1, %v6109_v6 }
 0x5c5   : > { %v6896_v32 = vadd.f32 %v8837_v50, %v6635_v29  ;;  %v6647_v38 = vadd.f32 %v8784_v25, %v6322_v2  ;;  %v6330_v25 = vadd.f32 %v12322_v54, %v6032_v41 }
 0x5c6   : > { %v6640_v14 = vpop.f32.mrf.mxu0  ;;  %v6889_v62 = vpop.f32.mrf.mxu1 }
 0x5c7   : > { %v7085_v7 = vmul.f32 %v12432_v24, %v6896_v32  ;;  %v6890_v49 = vadd.f32 %v6889_v62, %v6629_v18  ;;  %v6641_v61 = vadd.f32 %v6640_v14, %v6314_v9 }
 0x5c8   : > { %v8787_v53 = vpop.f32.mrf.mxu0  ;;  %v8840_v29 = vpop.f32.mrf.mxu1 }
 0x5c9   : > { %v7122_v39 = vadd.f32 %v12439_v12, %v7085_v7  ;;  %v7084_v50 = vmul.f32 %v12432_v24, %v6890_v49  ;;  %v6908_v27 = vadd.f32 %v8840_v29, %v6647_v38  ;;  %v6659_v13 = vadd.f32 %v8787_v53, %v6338_v26 }
 0x5ca   : > { %v6652_v36 = vpop.f32.mrf.mxu0  ;;  %v6901_v33 = vpop.f32.mrf.mxu1  ;;  %v6060_v49 = vadd.f32 %v12328_v46, %v12250_v35 }
 0x5cb   : > { %7154 = vst.msk [vmem:[%s12732_s7 + $0x8] sm:$0xff] %vm5164_vm8, %v7122_v39  ;;  %v7121_v14 = vadd.f32 %v12439_v12, %v7084_v50  ;;  %v7087_v57 = vmul.f32 %v12432_v24, %v6908_v27  ;;  %v6902_v43 = vadd.f32 %v6901_v33, %v6641_v61  ;;  %v6653_v55 = vadd.f32 %v6652_v36, %v6330_v25 }
 0x5cc   : > { %v8790_v45 = vpop.f32.mrf.mxu0  ;;  %v8843_v54 = vpop.f32.mrf.mxu1  ;;  %v6081_v61 = vadd.f32 %v12332_v40, %v12252_v44  ;;  %v6362_v35 = vadd.f32 %v12338_v3, %v6060_v49  ;;  %v6074_v25 = vadd.f32 %v12336_v22, %v12254_v17 }
 0x5cd   : > { %7153 = vst.msk [vmem:[%s12732_s7] sm:$0xff] %vm5164_vm8, %v7121_v14  ;;  %v7124_v2 = vadd.f32 %v12439_v12, %v7087_v57  ;;  %v7086_v18 = vmul.f32 %v12432_v24, %v6902_v43  ;;  %v6920_v32 = vadd.f32 %v8843_v54, %v6659_v13  ;;  %v6671_v62 = vadd.f32 %v8790_v45, %v6354_v10 }
 0x5ce   : > { %v6664_v5 = vpop.f32.mrf.mxu0  ;;  %v6913_v16 = vpop.f32.mrf.mxu1  ;;  %v6386_v44 = vadd.f32 %v12342_v30, %v6081_v61  ;;  %v6095_v57 = vadd.f32 %v12340_v58, %v12256_v51  ;;  %v6378_v17 = vadd.f32 %v12346_v28, %v6074_v25  ;;  %v6088_v54 = vadd.f32 %v12344_v37, %v12258_v11  ;;  %v13279_v61 = vld [vmem:[#allocation80_spill] sm:$0xff]  ;;  %v13282_v25 = vld [vmem:[#allocation82_spill] sm:$0xff] }
 0x5cf   : > { %7156 = vst.msk [vmem:[%s12732_s7 + $0x18] sm:$0xff] %vm5164_vm8, %v7124_v2  ;;  %v7123_v9 = vadd.f32 %v12439_v12, %v7086_v18  ;;  %v7089_v38 = vmul.f32 %v12432_v24, %v6920_v32  ;;  %v6914_v7 = vadd.f32 %v6913_v16, %v6653_v55  ;;  %v6665_v41 = vadd.f32 %v6664_v5, %v6346_v42 }
 0x5d0   : > { %v8793_v47 = vpop.f32.mrf.mxu0  ;;  %v8846_v48 = vpop.f32.mrf.mxu1  ;;  %v6402_v51 = vadd.f32 %v12350_v31, %v6095_v57  ;;  %v6394_v11 = vadd.f32 %v12354_v34, %v6088_v54 }
 0x5d1   : > { %7155 = vst.msk [vmem:[%s12732_s7 + $0x10] sm:$0xff] %vm5164_vm8, %v7123_v9  ;;  %v7126_v26 = vadd.f32 %v12439_v12, %v7089_v38  ;;  %v7088_v53 = vmul.f32 %v12432_v24, %v6914_v7  ;;  %v6932_v29 = vadd.f32 %v8846_v48, %v6671_v62  ;;  %v6683_v39 = vadd.f32 %v8793_v47, %v6370_v4 }
 0x5d2   : > { %v6676_v46 = vpop.f32.mrf.mxu0  ;;  %v6925_v59 = vpop.f32.mrf.mxu1  ;;  %v6102_v9 = vadd.f32 %v12352_v23, %v12262_v60  ;;  %v6123_v47 = vadd.f32 %v12356_v21, %v12264_v19 }
 0x5d3   : > { %7158 = vst.msk [vmem:[%s12732_s7 + $0x28] sm:$0xff] %vm5164_vm8, %v7126_v26  ;;  %v7125_v50 = vadd.f32 %v12439_v12, %v7088_v53  ;;  %v7091_v27 = vmul.f32 %v12432_v24, %v6932_v29  ;;  %v6926_v63 = vadd.f32 %v6925_v59, %v6665_v41  ;;  %v6677_v36 = vadd.f32 %v6676_v46, %v6362_v35 }
 0x5d4   : > { %v8796_v40 = vpop.f32.mrf.mxu0  ;;  %v8849_v3 = vpop.f32.mrf.mxu1  ;;  %v6410_v60 = vadd.f32 %v12362_v8, %v6102_v9  ;;  %v6116_v29 = vadd.f32 %v12360_v52, %v12266_v56  ;;  %v6434_v19 = vadd.f32 %v13279_v61, %v6123_v47  ;;  %v13293_v47 = vld [vmem:[#allocation88_spill] sm:$0xff] }
 0x5d5   : > { %7157 = vst.msk [vmem:[%s12732_s7 + $0x20] sm:$0xff] %vm5164_vm8, %v7125_v50  ;;  %v7128_v33 = vadd.f32 %v12439_v12, %v7091_v27  ;;  %v7090_v13 = vmul.f32 %v12432_v24, %v6926_v63  ;;  %v6944_v14 = vadd.f32 %v8849_v3, %v6683_v39  ;;  %v6695_v43 = vadd.f32 %v8796_v40, %v6386_v44  ;;  %v13280_v50 = vld [vmem:[#allocation85_spill] sm:$0xff]  ;;  %v13281_v27 = vld [vmem:[#allocation79_spill] sm:$0xff] }
 0x5d6   : > { %v6688_v22 = vpop.f32.mrf.mxu0  ;;  %v6937_v30 = vpop.f32.mrf.mxu1  ;;  %v6137_v63 = vadd.f32 %v13281_v27, %v13280_v50  ;;  %v6426_v56 = vadd.f32 %v13282_v25, %v6116_v29 }
 0x5d7   : > { %7160 = vst.msk [vmem:[%s12732_s7 + $0x38] sm:$0xff] %vm5164_vm8, %v7128_v33  ;;  %v7127_v0 = vadd.f32 %v12439_v12, %v7090_v13  ;;  %v7093_v10 = vmul.f32 %v12432_v24, %v6944_v14  ;;  %v6938_v45 = vadd.f32 %v6937_v30, %v6677_v36  ;;  %v6689_v55 = vadd.f32 %v6688_v22, %v6378_v17  ;;  %v13283_v13 = vld [vmem:[#allocation66_spill] sm:$0xff]  ;;  %v13284_v14 = vld [vmem:[#allocation81_spill] sm:$0xff]  ;;  %v13285_v17 = vld [vmem:[#allocation84_spill] sm:$0xff] }
 0x5d8   : > { %v8799_v58 = vpop.f32.mrf.mxu0  ;;  %v8852_v28 = vpop.f32.mrf.mxu1  ;;  %v6130_v57 = vadd.f32 %v13284_v14, %v13283_v13  ;;  %v6450_v22 = vadd.f32 %v13285_v17, %v6137_v63 }
 0x5d9   : > { %7159 = vst.msk [vmem:[%s12732_s7 + $0x30] sm:$0xff] %vm5164_vm8, %v7127_v0  ;;  %v7130_v2 = vadd.f32 %v12439_v12, %v7093_v10  ;;  %v7092_v18 = vmul.f32 %v12432_v24, %v6938_v45  ;;  %v6956_v32 = vadd.f32 %v8852_v28, %v6695_v43  ;;  %v6707_v42 = vadd.f32 %v8799_v58, %v6402_v51  ;;  %v13286_v51 = vld [vmem:[#allocation67_spill] sm:$0xff] }
 0x5da   : > { %v6700_v37 = vpop.f32.mrf.mxu0  ;;  %v6949_v31 = vpop.f32.mrf.mxu1  ;;  %v13287_v58 = vld [vmem:[#allocation83_spill] sm:$0xff] }
 0x5db   : > { %7162 = vst.msk [vmem:[%s12732_s7 + $0x48] sm:$0xff] %vm5164_vm8, %v7130_v2  ;;  %v7129_v5 = vadd.f32 %v12439_v12, %v7092_v18  ;;  %v7095_v16 = vmul.f32 %v12432_v24, %v6956_v32  ;;  %v6950_v62 = vadd.f32 %v6949_v31, %v6689_v55  ;;  %v6701_v38 = vadd.f32 %v6700_v37, %v6394_v11  ;;  %v13288_v55 = vld [vmem:[#allocation87_spill] sm:$0xff] }
 0x5dc   : > { %v8802_v20 = vpop.f32.mrf.mxu0  ;;  %v8855_v34 = vpop.f32.mrf.mxu1  ;;  %v6151_v28 = vadd.f32 %v13287_v58, %v13286_v51  ;;  %v6442_v2 = vadd.f32 %v13288_v55, %v6130_v57 }
 0x5dd   : > { %7161 = vst.msk [vmem:[%s12732_s7 + $0x40] sm:$0xff] %vm5164_vm8, %v7129_v5  ;;  %v7132_v7 = vadd.f32 %v12439_v12, %v7095_v16  ;;  %v7094_v49 = vmul.f32 %v12432_v24, %v6950_v62  ;;  %v6968_v4 = vadd.f32 %v8855_v34, %v6707_v42  ;;  %v6719_v48 = vadd.f32 %v8802_v20, %v6418_v15  ;;  %v13289_v42 = vld [vmem:[#allocation68_spill] sm:$0xff]  ;;  %v13290_v5 = vld [vmem:[#allocation86_spill] sm:$0xff]  ;;  %v13291_v62 = vld [vmem:[#allocation89_spill] sm:$0xff] }
 0x5de   : > { %v6712_v23 = vpop.f32.mrf.mxu0  ;;  %v6961_v1 = vpop.f32.mrf.mxu1  ;;  %v6144_v16 = vadd.f32 %v13290_v5, %v13289_v42  ;;  %v6466_v9 = vadd.f32 %v13291_v62, %v6151_v28 }
 0x5df   : > { %7164 = vst.msk [vmem:[%s12732_s7 + $0x58] sm:$0xff] %vm5164_vm8, %v7132_v7  ;;  %v7131_v41 = vadd.f32 %v12439_v12, %v7094_v49  ;;  %v7097_v26 = vmul.f32 %v12432_v24, %v6968_v4  ;;  %v6962_v53 = vadd.f32 %v6961_v1, %v6701_v38  ;;  %v6713_v35 = vadd.f32 %v6712_v23, %v6410_v60  ;;  %v13292_v4 = vld [vmem:[#allocation69_spill] sm:$0xff]  ;;  %v13294_v23 = vld [vmem:[#allocation91_spill] sm:$0xff] }
 0x5e0   : > { %v8805_v21 = vpop.f32.mrf.mxu0  ;;  %v8858_v8 = vpop.f32.mrf.mxu1  ;;  %v6165_v60 = vadd.f32 %v13293_v47, %v13292_v4  ;;  %v6458_v1 = vadd.f32 %v13294_v23, %v6144_v16 }
 0x5e1   : > { %7163 = vst.msk [vmem:[%s12732_s7 + $0x50] sm:$0xff] %vm5164_vm8, %v7131_v41  ;;  %v7134_v46 = vadd.f32 %v12439_v12, %v7097_v26  ;;  %v7096_v59 = vmul.f32 %v12432_v24, %v6962_v53  ;;  %v6980_v39 = vadd.f32 %v8858_v8, %v6719_v48  ;;  %v6731_v40 = vadd.f32 %v8805_v21, %v6434_v19  ;;  %v13295_v19 = vld [vmem:[#allocation70_spill] sm:$0xff] }
 0x5e2   : > { %v6724_v52 = vpop.f32.mrf.mxu0  ;;  %v6973_v44 = vpop.f32.mrf.mxu1  ;;  %v13296_v21 = vld [vmem:[#allocation90_spill] sm:$0xff] }
 0x5e3   : > { %7166 = vst.msk [vmem:[%s12732_s7 + $0x68] sm:$0xff] %vm5164_vm8, %v7134_v46  ;;  %v7133_v3 = vadd.f32 %v12439_v12, %v7096_v59  ;;  %v7099_v36 = vmul.f32 %v12432_v24, %v6980_v39  ;;  %v6974_v33 = vadd.f32 %v6973_v44, %v6713_v35  ;;  %v6725_v0 = vadd.f32 %v6724_v52, %v6426_v56  ;;  %v13297_v35 = vld [vmem:[#allocation93_spill] sm:$0xff]  ;;  %v13298_v56 = vld [vmem:[#allocation71_spill] sm:$0xff]  ;;  %v13299_v52 = vld [vmem:[#allocation92_spill] sm:$0xff] }
 0x5e4   : > { %v8808_v30 = vpop.f32.mrf.mxu0  ;;  %v8861_v43 = vpop.f32.mrf.mxu1  ;;  %v6158_v8 = vadd.f32 %v13296_v21, %v13295_v19  ;;  %v6482_v46 = vadd.f32 %v13297_v35, %v6165_v60  ;;  %v6179_v44 = vadd.f32 %v13299_v52, %v13298_v56 }
 0x5e5   : > { %7165 = vst.msk [vmem:[%s12732_s7 + $0x60] sm:$0xff] %vm5164_vm8, %v7133_v3  ;;  %v7136_v10 = vadd.f32 %v12439_v12, %v7099_v36  ;;  %v7098_v45 = vmul.f32 %v12432_v24, %v6974_v33  ;;  %v6992_v54 = vadd.f32 %v8861_v43, %v6731_v40  ;;  %v6743_v6 = vadd.f32 %v8808_v30, %v6450_v22  ;;  %v13300_v40 = vld [vmem:[#allocation95_spill] sm:$0xff]  ;;  %v13301_v22 = vld [vmem:[#allocation72_spill] sm:$0xff]  ;;  %v13302_v30 = vld [vmem:[#allocation94_spill] sm:$0xff] }
 0x5e6   : > { %v6736_v18 = vpop.f32.mrf.mxu0  ;;  %v6985_v32 = vpop.f32.mrf.mxu1  ;;  %v6474_v3 = vadd.f32 %v13300_v40, %v6158_v8  ;;  %v6172_v43 = vadd.f32 %v13302_v30, %v13301_v22 }
 0x5e7   : > { %7168 = vst.msk [vmem:[%s12732_s7 + $0x78] sm:$0xff] %vm5164_vm8, %v7136_v10  ;;  %v7135_v11 = vadd.f32 %v12439_v12, %v7098_v45  ;;  %v7101_v37 = vmul.f32 %v12432_v24, %v6992_v54  ;;  %v6986_v31 = vadd.f32 %v6985_v32, %v6725_v0  ;;  %v6737_v34 = vadd.f32 %v6736_v18, %v6442_v2  ;;  %v13303_v0 = vld [vmem:[#allocation97_spill] sm:$0xff]  ;;  %v13305_v18 = vld [vmem:[#allocation96_spill] sm:$0xff] }
 0x5e8   : > { %v8811_v15 = vpop.f32.mrf.mxu0  ;;  %v8864_v20 = vpop.f32.mrf.mxu1  ;;  %v6498_v10 = vadd.f32 %v13303_v0, %v6179_v44  ;;  %v13304_v2 = vld [vmem:[#allocation73_spill] sm:$0xff] }
 0x5e9   : > { %7167 = vst.msk [vmem:[%s12732_s7 + $0x70] sm:$0xff] %vm5164_vm8, %v7135_v11  ;;  %v7138_v38 = vadd.f32 %v12439_v12, %v7101_v37  ;;  %v7100_v7 = vmul.f32 %v12432_v24, %v6986_v31  ;;  %v7004_v49 = vadd.f32 %v8864_v20, %v6743_v6  ;;  %v6755_v26 = vadd.f32 %v8811_v15, %v6466_v9  ;;  %v13306_v6 = vld [vmem:[#allocation99_spill] sm:$0xff]  ;;  %v13307_v9 = vld [vmem:[#allocation74_spill] sm:$0xff] }
 0x5ea   : > { %v6748_v48 = vpop.f32.mrf.mxu0  ;;  %v6997_v41 = vpop.f32.mrf.mxu1  ;;  %v6193_v32 = vadd.f32 %v13305_v18, %v13304_v2  ;;  %v6490_v11 = vadd.f32 %v13306_v6, %v6172_v43  ;;  %v13308_v15 = vld [vmem:[#allocation98_spill] sm:$0xff] }
 0x5eb   : > { %7170 = vst.msk [vmem:[%s12732_s7 + $0x88] sm:$0xff] %vm5164_vm8, %v7138_v38  ;;  %v7137_v53 = vadd.f32 %v12439_v12, %v7100_v7  ;;  %v7103_v29 = vmul.f32 %v12432_v24, %v7004_v49  ;;  %v6998_v61 = vadd.f32 %v6997_v41, %v6737_v34  ;;  %v6749_v50 = vadd.f32 %v6748_v48, %v6458_v1  ;;  %v13309_v34 = vld [vmem:[#allocation101_spill] sm:$0xff]  ;;  %v13310_v1 = vld [vmem:[#allocation75_spill] sm:$0xff]  ;;  %v13311_v48 = vld [vmem:[#allocation100_spill] sm:$0xff] }
 0x5ec   : > { %v8814_v59 = vpop.f32.mrf.mxu0  ;;  %v8867_v39 = vpop.f32.mrf.mxu1  ;;  %v6186_v20 = vadd.f32 %v13308_v15, %v13307_v9  ;;  %v6514_v38 = vadd.f32 %v13309_v34, %v6193_v32  ;;  %v6207_v41 = vadd.f32 %v13311_v48, %v13310_v1 }
 0x5ed   : > { %7169 = vst.msk [vmem:[%s12732_s7 + $0x80] sm:$0xff] %vm5164_vm8, %v7137_v53  ;;  %v7140_v27 = vadd.f32 %v12439_v12, %v7103_v29  ;;  %v7102_v63 = vmul.f32 %v12432_v24, %v6998_v61  ;;  %v7016_v25 = vadd.f32 %v8867_v39, %v6755_v26  ;;  %v6767_v13 = vadd.f32 %v8814_v59, %v6482_v46  ;;  %v13312_v26 = vld [vmem:[#allocation103_spill] sm:$0xff]  ;;  %v13313_v46 = vld [vmem:[#allocation76_spill] sm:$0xff]  ;;  %v13314_v59 = vld [vmem:[#allocation102_spill] sm:$0xff] }
 0x5ee   : > { %v6760_v36 = vpop.f32.mrf.mxu0  ;;  %v7009_v33 = vpop.f32.mrf.mxu1  ;;  %v6506_v53 = vadd.f32 %v13312_v26, %v6186_v20  ;;  %v6200_v39 = vadd.f32 %v13314_v59, %v13313_v46 }
 0x5ef   : > { %7172 = vst.msk [vmem:[%s12732_s7 + $0x98] sm:$0xff] %vm5164_vm8, %v7140_v27  ;;  %v7139_v14 = vadd.f32 %v12439_v12, %v7102_v63  ;;  %v7105_v57 = vmul.f32 %v12432_v24, %v7016_v25  ;;  %v7010_v17 = vadd.f32 %v7009_v33, %v6749_v50  ;;  %v6761_v51 = vadd.f32 %v6760_v36, %v6474_v3  ;;  %v13315_v50 = vld [vmem:[#allocation105_spill] sm:$0xff]  ;;  %v13317_v36 = vld [vmem:[#allocation104_spill] sm:$0xff] }
 0x5f0   : > { %v8817_v45 = vpop.f32.mrf.mxu0  ;;  %v8870_v54 = vpop.f32.mrf.mxu1  ;;  %v6530_v27 = vadd.f32 %v13315_v50, %v6207_v41  ;;  %v13316_v3 = vld [vmem:[#allocation77_spill] sm:$0xff] }
 0x5f1   : > { %7171 = vst.msk [vmem:[%s12732_s7 + $0x90] sm:$0xff] %vm5164_vm8, %v7139_v14  ;;  %v7142_v58 = vadd.f32 %v12439_v12, %v7105_v57  ;;  %v7104_v28 = vmul.f32 %v12432_v24, %v7010_v17  ;;  %v7028_v55 = vadd.f32 %v8870_v54, %v6767_v13  ;;  %v6779_v42 = vadd.f32 %v8817_v45, %v6498_v10  ;;  %v13318_v13 = vld [vmem:[#allocation107_spill] sm:$0xff]  ;;  %v13319_v10 = vld [vmem:[#allocation78_spill] sm:$0xff] }
 0x5f2   : > { %v6772_v37 = vpop.f32.mrf.mxu0  ;;  %v7021_v31 = vpop.f32.mrf.mxu1  ;;  %v6221_v33 = vadd.f32 %v13317_v36, %v13316_v3  ;;  %v6522_v14 = vadd.f32 %v13318_v13, %v6200_v39  ;;  %v13320_v45 = vld [vmem:[#allocation106_spill] sm:$0xff] }
 0x5f3   : > { %7174 = vst.msk [vmem:[%s12732_s7 + $0xa8] sm:$0xff] %vm5164_vm8, %v7142_v58  ;;  %v7141_v5 = vadd.f32 %v12439_v12, %v7104_v28  ;;  %v7107_v16 = vmul.f32 %v12432_v24, %v7028_v55  ;;  %v7022_v62 = vadd.f32 %v7021_v31, %v6761_v51  ;;  %v6773_v4 = vadd.f32 %v6772_v37, %v6490_v11  ;;  %v13321_v51 = vld [vmem:[#allocation108_spill] sm:$0xff]  ;;  %v13322_v11 = vld [vmem:[#allocation109_spill] sm:$0xff] }
 0x5f4   : > { %v8820_v7 = vpop.f32.mrf.mxu0  ;;  %v8873_v49 = vpop.f32.mrf.mxu1  ;;  %v6214_v54 = vadd.f32 %v13320_v45, %v13319_v10  ;;  %v6546_v58 = vadd.f32 %v13321_v51, %v6221_v33 }
 0x5f5   : > { %7173 = vst.msk [vmem:[%s12732_s7 + $0xa0] sm:$0xff] %vm5164_vm8, %v7141_v5  ;;  %v7144_v47 = vadd.f32 %v12439_v12, %v7107_v16  ;;  %v7106_v60 = vmul.f32 %v12432_v24, %v7022_v62  ;;  %v7040_v23 = vadd.f32 %v8873_v49, %v6779_v42  ;;  %v6791_v19 = vadd.f32 %v8820_v7, %v6514_v38 }
 0x5f6   : > { %v6784_v29 = vpop.f32.mrf.mxu0  ;;  %v7033_v61 = vpop.f32.mrf.mxu1  ;;  %v6538_v37 = vadd.f32 %v13322_v11, %v6214_v54 }
 0x5f7   : > { %7176 = vst.msk [vmem:[%s12732_s7 + $0xb8] sm:$0xff] %vm5164_vm8, %v7144_v47  ;;  %v7143_v21 = vadd.f32 %v12439_v12, %v7106_v60  ;;  %v7109_v8 = vmul.f32 %v12432_v24, %v7040_v23  ;;  %v7034_v35 = vadd.f32 %v7033_v61, %v6773_v4  ;;  %v6785_v56 = vadd.f32 %v6784_v29, %v6506_v53 }
 0x5f8   : > { %v8823_v63 = vpop.f32.mrf.mxu0  ;;  %v8876_v25 = vpop.f32.mrf.mxu1 }
 0x5f9   : > { %7175 = vst.msk [vmem:[%s12732_s7 + $0xb0] sm:$0xff] %vm5164_vm8, %v7143_v21  ;;  %v7146_v52 = vadd.f32 %v12439_v12, %v7109_v8  ;;  %v7108_v44 = vmul.f32 %v12432_v24, %v7034_v35  ;;  %v7052_v40 = vadd.f32 %v8876_v25, %v6791_v19  ;;  %v6803_v22 = vadd.f32 %v8823_v63, %v6530_v27 }
 0x5fa   : > { %v6796_v57 = vpop.f32.mrf.mxu0  ;;  %v7045_v17 = vpop.f32.mrf.mxu1 }
 0x5fb   : > { %7178 = vst.msk [vmem:[%s12732_s7 + $0xc8] sm:$0xff] %vm5164_vm8, %v7146_v52  ;;  %v7145_v30 = vadd.f32 %v12439_v12, %v7108_v44  ;;  %v7111_v43 = vmul.f32 %v12432_v24, %v7052_v40  ;;  %v7046_v0 = vadd.f32 %v7045_v17, %v6785_v56  ;;  %v6797_v2 = vadd.f32 %v6796_v57, %v6522_v14 }
 0x5fc   : > { %v8826_v28 = vpop.f32.mrf.mxu0  ;;  %v8879_v55 = vpop.f32.mrf.mxu1 }
 0x5fd   : > { %7177 = vst.msk [vmem:[%s12732_s7 + $0xc0] sm:$0xff] %vm5164_vm8, %v7145_v30  ;;  %v7148_v18 = vadd.f32 %v12439_v12, %v7111_v43  ;;  %v7110_v32 = vmul.f32 %v12432_v24, %v7046_v0  ;;  %v7064_v6 = vadd.f32 %v8879_v55, %v6803_v22  ;;  %v6815_v5 = vadd.f32 %v8826_v28, %v6546_v58 }
 0x5fe   : > { %v6808_v31 = vpop.f32.mrf.mxu0  ;;  %v7057_v42 = vpop.f32.mrf.mxu1 }
 0x5ff   : > { %7180 = vst.msk [vmem:[%s12732_s7 + $0xd8] sm:$0xff] %vm5164_vm8, %v7148_v18  ;;  %v7147_v16 = vadd.f32 %v12439_v12, %v7110_v32  ;;  %v7113_v62 = vmul.f32 %v12432_v24, %v7064_v6  ;;  %v7058_v9 = vadd.f32 %v7057_v42, %v6797_v2  ;;  %v6809_v20 = vadd.f32 %v6808_v31, %v6538_v37 }
 0x600   : > { %v8882_v15 = vpop.f32.mrf.mxu1 }
 0x601   : > { %7179 = vst.msk [vmem:[%s12732_s7 + $0xd0] sm:$0xff] %vm5164_vm8, %v7147_v16  ;;  %v7150_v34 = vadd.f32 %v12439_v12, %v7113_v62  ;;  %v7112_v38 = vmul.f32 %v12432_v24, %v7058_v9  ;;  %v7076_v7 = vadd.f32 %v8882_v15, %v6815_v5 }
 0x602   : > { %v7069_v49 = vpop.f32.mrf.mxu1 }
 0x603   : > { %7182 = vst.msk [vmem:[%s12732_s7 + $0xe8] sm:$0xff] %vm5164_vm8, %v7150_v34  ;;  %v7149_v4 = vadd.f32 %v12439_v12, %v7112_v38  ;;  %v7115_v47 = vmul.f32 %v12432_v24, %v7076_v7  ;;  %v7070_v60 = vadd.f32 %v7069_v49, %v6809_v20 }
 0x605   : > { %7181 = vst.msk [vmem:[%s12732_s7 + $0xe0] sm:$0xff] %vm5164_vm8, %v7149_v4  ;;  %v7152_v23 = vadd.f32 %v12439_v12, %v7115_v47  ;;  %v7114_v1 = vmul.f32 %v12432_v24, %v7070_v60 }
 0x607   : > { %7184 = vst.msk [vmem:[%s12732_s7 + $0xf8] sm:$0xff] %vm5164_vm8, %v7152_v23  ;;  %v7151_v48 = vadd.f32 %v12439_v12, %v7114_v1 }
 0x609   : > { %7183 = vst.msk [vmem:[%s12732_s7 + $0xf0] sm:$0xff] %vm5164_vm8, %v7151_v48 }
 0x60a PF: > { %s17_s26 = sadd.s32 1, %s8999_s26   ;;  %s13323_s24 = smov %s8995_s25 }
 0x60b   : > { %p14_p7 = scmp.ge.s32.totalorder %s17_s26, 5   ;;  %s13324_s25 = smov %s13326_s27 }
 0x60d   :  { %16 = sbr.rel (!%p14_p7) target bundleno = 2 (0x2), region = 109 }

</bundles_post_ra>
